<compile_context>
chip_gen: v6e
topology: v6e:2x2x1
jax: 0.10.0
libtpu: 0.0.40
codegen_flags: <defaults>
</compile_context>

<pallas_src>
import functools
import math

import jax
import jax.numpy as jnp
from jax.experimental import pallas as pl
from jax.experimental.pallas import tpu as pltpu

# ---------------- mini-BERT config (small shapes, same forward structure) -------------
VOCAB = 50
MAX_POS = 16
TYPE_VOCAB = 2
HIDDEN = 32
NUM_HEADS = 4
HEAD_DIM = HIDDEN // NUM_HEADS
INTERMEDIATE = 64
NUM_LAYERS = 2
NUM_CLASSES = 2
CLS_PAD = 128                    # lane-dense classifier output width
LN_EPS = 1e-12                   # BertLayerNorm eps
ATTN_SCALE = 1.0 / math.sqrt(HEAD_DIM)


# --------------------------------- in-kernel helpers -----------------------------------
def _layernorm(x, g, b):
    mu = jnp.mean(x, axis=-1, keepdims=True)
    var = jnp.mean(jnp.square(x - mu), axis=-1, keepdims=True)
    return (x - mu) * jax.lax.rsqrt(var + LN_EPS) * g + b


def _gelu(y):
    # TODO(synk): exact erf-based BERT GELU has no clean Mosaic lowering; tanh approx.
    return 0.5 * y * (1.0 + jnp.tanh(0.7978845608028654 * (y + 0.044715 * y * y * y)))


# ---------------------------------- fused Pallas kernel --------------------------------
def _fused_bert_kernel(x_ref, mask_ref, emb_g_ref, emb_b_ref,
                       wqkv_ref, bqkv_ref, wo_ref, bo_ref,
                       ln1g_ref, ln1b_ref, w1_ref, b1_ref,
                       w2_ref, b2_ref, ln2g_ref, ln2b_ref,
                       poolw_ref, poolb_ref, clsw_ref, clsb_ref,
                       o_ref, *, batch, seq):
    # embeddings -> LayerNorm (no fake zero residual)
    x = x_ref[...].astype(jnp.float32)                        # (B*S, H)
    x = _layernorm(x, emb_g_ref[...], emb_b_ref[...])
    mask = mask_ref[...].astype(jnp.float32)                  # (B, S) additive mask

    for l in range(NUM_LAYERS):                               # static unroll over layers
        # ---- packed QKV: one (B*S, H) @ (H, 3H) matmul ----
        qkv = jnp.dot(x, wqkv_ref[l], preferred_element_type=jnp.float32) + bqkv_ref[l]
        q = qkv[:, :HIDDEN]
        k = qkv[:, HIDDEN:2 * HIDDEN]
        v = qkv[:, 2 * HIDDEN:]

        # ---- attention: static loops over (batch, head), all 2-D dots in vregs ----
        ctx_rows = []
        for b in range(batch):
            r0 = b * seq
            m_b = mask[b:b + 1, :]                            # (1, S)
            heads = []
            for h in range(NUM_HEADS):
                c0 = h * HEAD_DIM
                q_bh = q[r0:r0 + seq, c0:c0 + HEAD_DIM]       # (S, Dh)
                k_bh = k[r0:r0 + seq, c0:c0 + HEAD_DIM]
                v_bh = v[r0:r0 + seq, c0:c0 + HEAD_DIM]
                s = jax.lax.dot_general(                      # q @ k^T, no transpose op
                    q_bh, k_bh, (((1,), (1,)), ((), ())),
                    preferred_element_type=jnp.float32)       # (S, S)
                s = s * ATTN_SCALE + m_b
                s = s - jnp.max(s, axis=-1, keepdims=True)
                p = jnp.exp(s)
                p = p * pl.reciprocal(jnp.sum(p, axis=-1, keepdims=True), approx=True)
                heads.append(jnp.dot(p, v_bh, preferred_element_type=jnp.float32))
            ctx_rows.append(jnp.concatenate(heads, axis=-1))  # (S, H)
        ctx = jnp.concatenate(ctx_rows, axis=0)               # (B*S, H)

        # ---- output projection + residual LayerNorm ----
        attn_out = jnp.dot(ctx, wo_ref[l], preferred_element_type=jnp.float32) + bo_ref[l]
        x = _layernorm(attn_out + x, ln1g_ref[l], ln1b_ref[l])

        # ---- feed forward + residual LayerNorm ----
        h1 = _gelu(jnp.dot(x, w1_ref[l], preferred_element_type=jnp.float32) + b1_ref[l])
        h2 = jnp.dot(h1, w2_ref[l], preferred_element_type=jnp.float32) + b2_ref[l]
        x = _layernorm(h2 + x, ln2g_ref[l], ln2b_ref[l])

    # ---- pooler: first token of each sequence -> dense + tanh ----
    first = jnp.concatenate([x[b * seq:b * seq + 1, :] for b in range(batch)], axis=0)
    pooled = jnp.tanh(
        jnp.dot(first, poolw_ref[...], preferred_element_type=jnp.float32) + poolb_ref[...])

    # ---- classifier head (dropout -> identity); lane-dense padded output ----
    logits = jnp.dot(pooled, clsw_ref[...], preferred_element_type=jnp.float32) + clsb_ref[...]
    o_ref[...] = logits.astype(o_ref.dtype)


def _vmem_spec(shape):
    zeros = (0,) * len(shape)
    return pl.BlockSpec(shape, lambda i, _z=zeros: _z)


# ------------------------------- parameters (deterministic) ---------------------------
def init_params(key):
    keys = iter(jax.random.split(key, 64))

    def w(shape, scale=0.02):
        return (scale * jax.random.normal(next(keys), shape)).astype(jnp.float32)

    def zeros(shape):
        return jnp.zeros(shape, jnp.float32)

    def ones(shape):
        return jnp.ones(shape, jnp.float32)

    params = {
        "word_emb": w((VOCAB, HIDDEN)),
        "pos_emb": w((MAX_POS, HIDDEN)),
        "type_emb": w((TYPE_VOCAB, HIDDEN)),
        "emb_ln_g": ones((HIDDEN,)),
        "emb_ln_b": zeros((HIDDEN,)),
        "layers": [],
        "pool_w": w((HIDDEN, HIDDEN)),
        "pool_b": zeros((HIDDEN,)),
        "cls_w": w((HIDDEN, NUM_CLASSES)),
        "cls_b": zeros((NUM_CLASSES,)),
    }
    for _ in range(NUM_LAYERS):
        params["layers"].append({
            "wq": w((HIDDEN, HIDDEN)), "bq": zeros((HIDDEN,)),
            "wk": w((HIDDEN, HIDDEN)), "bk": zeros((HIDDEN,)),
            "wv": w((HIDDEN, HIDDEN)), "bv": zeros((HIDDEN,)),
            "wo": w((HIDDEN, HIDDEN)), "bo": zeros((HIDDEN,)),
            "ln1_g": ones((HIDDEN,)), "ln1_b": zeros((HIDDEN,)),
            "w1": w((HIDDEN, INTERMEDIATE)), "b1": zeros((INTERMEDIATE,)),
            "w2": w((INTERMEDIATE, HIDDEN)), "b2": zeros((HIDDEN,)),
            "ln2_g": ones((HIDDEN,)), "ln2_b": zeros((HIDDEN,)),
        })
    return params


# -------------------------------------- forward ---------------------------------------
def raw_bert_cls_forward(params, input_ids, token_type_ids=None, attention_mask=None):
    B, S = input_ids.shape
    if token_type_ids is None:
        token_type_ids = jnp.zeros_like(input_ids)
    if attention_mask is None:
        attention_mask = jnp.ones_like(input_ids)

    # --- embeddings (table gathers are wrapper-side glue; LN happens in the kernel) ---
    pos_ids = jnp.arange(S, dtype=jnp.int32)
    emb = (params["word_emb"][input_ids]
           + params["pos_emb"][pos_ids][None, :, :]
           + params["type_emb"][token_type_ids])                 # (B, S, H)
    x = emb.reshape(B * S, HIDDEN).astype(jnp.float32)

    # additive attention mask: (1 - mask) * -10000, shape (B, S)
    mask_add = (1.0 - attention_mask.astype(jnp.float32)) * -10000.0

    # --- stack per-layer weights; pack W_q|W_k|W_v into one (H, 3H) matrix ---
    ls = params["layers"]
    stack = lambda name: jnp.stack([lp[name] for lp in ls])
    wqkv = jnp.stack([jnp.concatenate([lp["wq"], lp["wk"], lp["wv"]], axis=1) for lp in ls])
    bqkv = jnp.stack([jnp.concatenate([lp["bq"], lp["bk"], lp["bv"]])[None, :] for lp in ls])
    wo = stack("wo");  bo = stack("bo")[:, None, :]
    ln1g = stack("ln1_g")[:, None, :];  ln1b = stack("ln1_b")[:, None, :]
    w1 = stack("w1");  b1 = stack("b1")[:, None, :]
    w2 = stack("w2");  b2 = stack("b2")[:, None, :]
    ln2g = stack("ln2_g")[:, None, :];  ln2b = stack("ln2_b")[:, None, :]

    # lane-dense classifier: zero-pad (H, 2) -> (H, 128); true logits are [:, :2]
    cls_w_pad = jnp.zeros((HIDDEN, CLS_PAD), jnp.float32).at[:, :NUM_CLASSES].set(params["cls_w"])
    cls_b_pad = jnp.zeros((1, CLS_PAD), jnp.float32).at[0, :NUM_CLASSES].set(params["cls_b"])

    args = (
        x, mask_add,
        params["emb_ln_g"][None, :], params["emb_ln_b"][None, :],
        wqkv, bqkv, wo, bo, ln1g, ln1b, w1, b1, w2, b2, ln2g, ln2b,
        params["pool_w"], params["pool_b"][None, :],
        cls_w_pad, cls_b_pad,
    )

    logits_pad = pl.pallas_call(
        functools.partial(_fused_bert_kernel, batch=B, seq=S),
        out_shape=jax.ShapeDtypeStruct((B, CLS_PAD), jnp.float32),
        grid=(1,),
        in_specs=[_vmem_spec(a.shape) for a in args],
        out_specs=_vmem_spec((B, CLS_PAD)),
        compiler_params=pltpu.CompilerParams(dimension_semantics=("arbitrary",)),
    )(*args)

    return logits_pad[:, :NUM_CLASSES]


# ---------------------------------------- main ----------------------------------------
if __name__ == "__main__":
    key = jax.random.PRNGKey(0)
    pkey, ikey = jax.random.split(key)
    params = init_params(pkey)

    B, S = 2, 8
    input_ids = jax.random.randint(ikey, (B, S), 0, VOCAB, dtype=jnp.int32)
    token_type_ids = jnp.zeros((B, S), jnp.int32)
    attention_mask = jnp.ones((B, S), jnp.int32).at[1, S - 2:].set(0)  # pad last 2 of row 1

    logits = raw_bert_cls_forward(params, input_ids, token_type_ids, attention_mask)
    logits = jax.block_until_ready(logits)
    assert logits.shape == (B, NUM_CLASSES)
    print("KERNEL_OK")
</pallas_src>

<mosaic_0001>
module attributes {stable_mosaic.version = 11 : i64} {
  func.func @_fused_bert_kernel(%arg0: i32, %arg1: memref<16x32xf32, #tpu.memory_space<vmem>>, %arg2: memref<2x8xf32, #tpu.memory_space<vmem>>, %arg3: memref<1x32xf32, #tpu.memory_space<vmem>>, %arg4: memref<1x32xf32, #tpu.memory_space<vmem>>, %arg5: memref<2x32x96xf32, #tpu.memory_space<vmem>>, %arg6: memref<2x1x96xf32, #tpu.memory_space<vmem>>, %arg7: memref<2x32x32xf32, #tpu.memory_space<vmem>>, %arg8: memref<2x1x32xf32, #tpu.memory_space<vmem>>, %arg9: memref<2x1x32xf32, #tpu.memory_space<vmem>>, %arg10: memref<2x1x32xf32, #tpu.memory_space<vmem>>, %arg11: memref<2x32x64xf32, #tpu.memory_space<vmem>>, %arg12: memref<2x1x64xf32, #tpu.memory_space<vmem>>, %arg13: memref<2x64x32xf32, #tpu.memory_space<vmem>>, %arg14: memref<2x1x32xf32, #tpu.memory_space<vmem>>, %arg15: memref<2x1x32xf32, #tpu.memory_space<vmem>>, %arg16: memref<2x1x32xf32, #tpu.memory_space<vmem>>, %arg17: memref<32x32xf32, #tpu.memory_space<vmem>>, %arg18: memref<1x32xf32, #tpu.memory_space<vmem>>, %arg19: memref<32x128xf32, #tpu.memory_space<vmem>>, %arg20: memref<1x128xf32, #tpu.memory_space<vmem>>, %arg21: memref<2x128xf32, #tpu.memory_space<vmem>>) attributes {dimension_semantics = [#tpu.dimension_semantics<arbitrary>], iteration_bounds = array<i64: 1>, scalar_prefetch = 0 : i64, scratch_operands = 0 : i64, tpu.core_type = #tpu.core_type<tc>, window_params = [{pipeline_mode = #tpu.pipeline_mode<synchronous>, transform_indices = @transform_0, window_bounds = array<i64: 16, 32>}, {pipeline_mode = #tpu.pipeline_mode<synchronous>, transform_indices = @transform_1, window_bounds = array<i64: 2, 8>}, {pipeline_mode = #tpu.pipeline_mode<synchronous>, transform_indices = @transform_2, window_bounds = array<i64: 1, 32>}, {pipeline_mode = #tpu.pipeline_mode<synchronous>, transform_indices = @transform_3, window_bounds = array<i64: 1, 32>}, {pipeline_mode = #tpu.pipeline_mode<synchronous>, transform_indices = @transform_4, window_bounds = array<i64: 2, 32, 96>}, {pipeline_mode = #tpu.pipeline_mode<synchronous>, transform_indices = @transform_5, window_bounds = array<i64: 2, 1, 96>}, {pipeline_mode = #tpu.pipeline_mode<synchronous>, transform_indices = @transform_6, window_bounds = array<i64: 2, 32, 32>}, {pipeline_mode = #tpu.pipeline_mode<synchronous>, transform_indices = @transform_7, window_bounds = array<i64: 2, 1, 32>}, {pipeline_mode = #tpu.pipeline_mode<synchronous>, transform_indices = @transform_8, window_bounds = array<i64: 2, 1, 32>}, {pipeline_mode = #tpu.pipeline_mode<synchronous>, transform_indices = @transform_9, window_bounds = array<i64: 2, 1, 32>}, {pipeline_mode = #tpu.pipeline_mode<synchronous>, transform_indices = @transform_10, window_bounds = array<i64: 2, 32, 64>}, {pipeline_mode = #tpu.pipeline_mode<synchronous>, transform_indices = @transform_11, window_bounds = array<i64: 2, 1, 64>}, {pipeline_mode = #tpu.pipeline_mode<synchronous>, transform_indices = @transform_12, window_bounds = array<i64: 2, 64, 32>}, {pipeline_mode = #tpu.pipeline_mode<synchronous>, transform_indices = @transform_13, window_bounds = array<i64: 2, 1, 32>}, {pipeline_mode = #tpu.pipeline_mode<synchronous>, transform_indices = @transform_14, window_bounds = array<i64: 2, 1, 32>}, {pipeline_mode = #tpu.pipeline_mode<synchronous>, transform_indices = @transform_15, window_bounds = array<i64: 2, 1, 32>}, {pipeline_mode = #tpu.pipeline_mode<synchronous>, transform_indices = @transform_16, window_bounds = array<i64: 32, 32>}, {pipeline_mode = #tpu.pipeline_mode<synchronous>, transform_indices = @transform_17, window_bounds = array<i64: 1, 32>}, {pipeline_mode = #tpu.pipeline_mode<synchronous>, transform_indices = @transform_18, window_bounds = array<i64: 32, 128>}, {pipeline_mode = #tpu.pipeline_mode<synchronous>, transform_indices = @transform_19, window_bounds = array<i64: 1, 128>}, {pipeline_mode = #tpu.pipeline_mode<synchronous>, transform_indices = @transform_20, window_bounds = array<i64: 2, 128>}]} {
    %c0 = arith.constant 0 : index
    %c0_0 = arith.constant 0 : index
    %0 = vector.load %arg1[%c0, %c0_0] : memref<16x32xf32, #tpu.memory_space<vmem>>, vector<16x32xf32>
    %c0_1 = arith.constant 0 : index
    %c0_2 = arith.constant 0 : index
    %1 = vector.load %arg3[%c0_1, %c0_2] : memref<1x32xf32, #tpu.memory_space<vmem>>, vector<1x32xf32>
    %c0_3 = arith.constant 0 : index
    %c0_4 = arith.constant 0 : index
    %2 = vector.load %arg4[%c0_3, %c0_4] : memref<1x32xf32, #tpu.memory_space<vmem>>, vector<1x32xf32>
    %cst = arith.constant dense<0.000000e+00> : vector<16xf32>
    %3 = vector.multi_reduction <add>, %0, %cst [1] : vector<16x32xf32> to vector<16xf32>
    %4 = vector.shape_cast %3 : vector<16xf32> to vector<16x1xf32>
    %cst_5 = arith.constant 3.200000e+01 : f32
    %5 = vector.broadcast %cst_5 : f32 to vector<16x1xf32>
    %6 = arith.divf %4, %5 : vector<16x1xf32>
    %7 = vector.broadcast %6 : vector<16x1xf32> to vector<16x32xf32>
    %8 = arith.subf %0, %7 : vector<16x32xf32>
    %9 = arith.mulf %8, %8 : vector<16x32xf32>
    %cst_6 = arith.constant dense<0.000000e+00> : vector<16xf32>
    %10 = vector.multi_reduction <add>, %9, %cst_6 [1] : vector<16x32xf32> to vector<16xf32>
    %11 = vector.shape_cast %10 : vector<16xf32> to vector<16x1xf32>
    %cst_7 = arith.constant 3.200000e+01 : f32
    %12 = vector.broadcast %cst_7 : f32 to vector<16x1xf32>
    %13 = arith.divf %11, %12 : vector<16x1xf32>
    %14 = vector.broadcast %6 : vector<16x1xf32> to vector<16x32xf32>
    %15 = arith.subf %0, %14 : vector<16x32xf32>
    %cst_8 = arith.constant 9.99999996E-13 : f32
    %16 = vector.broadcast %cst_8 : f32 to vector<16x1xf32>
    %17 = arith.addf %13, %16 : vector<16x1xf32>
    %18 = math.rsqrt %17 : vector<16x1xf32>
    %19 = vector.broadcast %18 : vector<16x1xf32> to vector<16x32xf32>
    %20 = arith.mulf %15, %19 : vector<16x32xf32>
    %21 = vector.broadcast %1 : vector<1x32xf32> to vector<16x32xf32>
    %22 = arith.mulf %20, %21 : vector<16x32xf32>
    %23 = vector.broadcast %2 : vector<1x32xf32> to vector<16x32xf32>
    %24 = arith.addf %22, %23 : vector<16x32xf32>
    %c0_9 = arith.constant 0 : index
    %c0_10 = arith.constant 0 : index
    %25 = vector.load %arg2[%c0_9, %c0_10] : memref<2x8xf32, #tpu.memory_space<vmem>>, vector<2x8xf32>
    %c0_11 = arith.constant 0 : index
    %c0_12 = arith.constant 0 : index
    %c0_13 = arith.constant 0 : index
    %26 = vector.load %arg5[%c0_11, %c0_12, %c0_13] : memref<2x32x96xf32, #tpu.memory_space<vmem>>, vector<1x32x96xf32>
    %27 = vector.shape_cast %26 : vector<1x32x96xf32> to vector<32x96xf32>
    %cst_14 = arith.constant dense<0.000000e+00> : vector<16x96xf32>
    %28 = tpu.matmul %24, %27, %cst_14 {dimension_numbers = #tpu.dot_dimension_numbers<[1], [0], [0], [1], [0, 0, 1, 1], [], []>} : vector<16x32xf32>, vector<32x96xf32>, vector<16x96xf32> -> vector<16x96xf32>
    %c0_15 = arith.constant 0 : index
    %c0_16 = arith.constant 0 : index
    %c0_17 = arith.constant 0 : index
    %29 = vector.load %arg6[%c0_15, %c0_16, %c0_17] : memref<2x1x96xf32, #tpu.memory_space<vmem>>, vector<1x1x96xf32>
    %30 = vector.shape_cast %29 : vector<1x1x96xf32> to vector<1x96xf32>
    %31 = vector.broadcast %30 : vector<1x96xf32> to vector<16x96xf32>
    %32 = arith.addf %28, %31 : vector<16x96xf32>
    %33 = vector.extract_strided_slice %32 {offsets = [0, 0], sizes = [16, 32], strides = [1, 1]} : vector<16x96xf32> to vector<16x32xf32>
    %34 = vector.extract_strided_slice %32 {offsets = [0, 32], sizes = [16, 32], strides = [1, 1]} : vector<16x96xf32> to vector<16x32xf32>
    %35 = vector.extract_strided_slice %32 {offsets = [0, 64], sizes = [16, 32], strides = [1, 1]} : vector<16x96xf32> to vector<16x32xf32>
    %36 = vector.extract_strided_slice %25 {offsets = [0, 0], sizes = [1, 8], strides = [1, 1]} : vector<2x8xf32> to vector<1x8xf32>
    %37 = vector.extract_strided_slice %33 {offsets = [0, 0], sizes = [8, 8], strides = [1, 1]} : vector<16x32xf32> to vector<8x8xf32>
    %38 = vector.extract_strided_slice %34 {offsets = [0, 0], sizes = [8, 8], strides = [1, 1]} : vector<16x32xf32> to vector<8x8xf32>
    %39 = vector.extract_strided_slice %35 {offsets = [0, 0], sizes = [8, 8], strides = [1, 1]} : vector<16x32xf32> to vector<8x8xf32>
    %cst_18 = arith.constant dense<0.000000e+00> : vector<8x8xf32>
    %40 = tpu.matmul %37, %38, %cst_18 {dimension_numbers = #tpu.dot_dimension_numbers<[1], [1], [0], [0], [0, 0, 1, 0], [], []>} : vector<8x8xf32>, vector<8x8xf32>, vector<8x8xf32> -> vector<8x8xf32>
    %cst_19 = arith.constant 0.353553385 : f32
    %41 = vector.broadcast %cst_19 : f32 to vector<8x8xf32>
    %42 = arith.mulf %40, %41 : vector<8x8xf32>
    %43 = vector.broadcast %36 : vector<1x8xf32> to vector<8x8xf32>
    %44 = arith.addf %42, %43 : vector<8x8xf32>
    %cst_20 = arith.constant dense<0xFF800000> : vector<8xf32>
    %45 = vector.multi_reduction <maximumf>, %44, %cst_20 [1] : vector<8x8xf32> to vector<8xf32>
    %46 = vector.shape_cast %45 : vector<8xf32> to vector<8x1xf32>
    %47 = vector.broadcast %46 : vector<8x1xf32> to vector<8x8xf32>
    %48 = arith.subf %44, %47 : vector<8x8xf32>
    %49 = math.exp %48 : vector<8x8xf32>
    %cst_21 = arith.constant dense<0.000000e+00> : vector<8xf32>
    %50 = vector.multi_reduction <add>, %49, %cst_21 [1] : vector<8x8xf32> to vector<8xf32>
    %51 = vector.shape_cast %50 : vector<8xf32> to vector<8x1xf32>
    %52 = tpu.reciprocal %51 {approx = true} : vector<8x1xf32> -> vector<8x1xf32>
    %53 = vector.broadcast %52 : vector<8x1xf32> to vector<8x8xf32>
    %54 = arith.mulf %49, %53 : vector<8x8xf32>
    %cst_22 = arith.constant dense<0.000000e+00> : vector<8x8xf32>
    %55 = tpu.matmul %54, %39, %cst_22 {dimension_numbers = #tpu.dot_dimension_numbers<[1], [0], [0], [1], [0, 0, 1, 1], [], []>} : vector<8x8xf32>, vector<8x8xf32>, vector<8x8xf32> -> vector<8x8xf32>
    %56 = vector.extract_strided_slice %33 {offsets = [0, 8], sizes = [8, 8], strides = [1, 1]} : vector<16x32xf32> to vector<8x8xf32>
    %57 = vector.extract_strided_slice %34 {offsets = [0, 8], sizes = [8, 8], strides = [1, 1]} : vector<16x32xf32> to vector<8x8xf32>
    %58 = vector.extract_strided_slice %35 {offsets = [0, 8], sizes = [8, 8], strides = [1, 1]} : vector<16x32xf32> to vector<8x8xf32>
    %cst_23 = arith.constant dense<0.000000e+00> : vector<8x8xf32>
    %59 = tpu.matmul %56, %57, %cst_23 {dimension_numbers = #tpu.dot_dimension_numbers<[1], [1], [0], [0], [0, 0, 1, 0], [], []>} : vector<8x8xf32>, vector<8x8xf32>, vector<8x8xf32> -> vector<8x8xf32>
    %cst_24 = arith.constant 0.353553385 : f32
    %60 = vector.broadcast %cst_24 : f32 to vector<8x8xf32>
    %61 = arith.mulf %59, %60 : vector<8x8xf32>
    %62 = vector.broadcast %36 : vector<1x8xf32> to vector<8x8xf32>
    %63 = arith.addf %61, %62 : vector<8x8xf32>
    %cst_25 = arith.constant dense<0xFF800000> : vector<8xf32>
    %64 = vector.multi_reduction <maximumf>, %63, %cst_25 [1] : vector<8x8xf32> to vector<8xf32>
    %65 = vector.shape_cast %64 : vector<8xf32> to vector<8x1xf32>
    %66 = vector.broadcast %65 : vector<8x1xf32> to vector<8x8xf32>
    %67 = arith.subf %63, %66 : vector<8x8xf32>
    %68 = math.exp %67 : vector<8x8xf32>
    %cst_26 = arith.constant dense<0.000000e+00> : vector<8xf32>
    %69 = vector.multi_reduction <add>, %68, %cst_26 [1] : vector<8x8xf32> to vector<8xf32>
    %70 = vector.shape_cast %69 : vector<8xf32> to vector<8x1xf32>
    %71 = tpu.reciprocal %70 {approx = true} : vector<8x1xf32> -> vector<8x1xf32>
    %72 = vector.broadcast %71 : vector<8x1xf32> to vector<8x8xf32>
    %73 = arith.mulf %68, %72 : vector<8x8xf32>
    %cst_27 = arith.constant dense<0.000000e+00> : vector<8x8xf32>
    %74 = tpu.matmul %73, %58, %cst_27 {dimension_numbers = #tpu.dot_dimension_numbers<[1], [0], [0], [1], [0, 0, 1, 1], [], []>} : vector<8x8xf32>, vector<8x8xf32>, vector<8x8xf32> -> vector<8x8xf32>
    %75 = vector.extract_strided_slice %33 {offsets = [0, 16], sizes = [8, 8], strides = [1, 1]} : vector<16x32xf32> to vector<8x8xf32>
    %76 = vector.extract_strided_slice %34 {offsets = [0, 16], sizes = [8, 8], strides = [1, 1]} : vector<16x32xf32> to vector<8x8xf32>
    %77 = vector.extract_strided_slice %35 {offsets = [0, 16], sizes = [8, 8], strides = [1, 1]} : vector<16x32xf32> to vector<8x8xf32>
    %cst_28 = arith.constant dense<0.000000e+00> : vector<8x8xf32>
    %78 = tpu.matmul %75, %76, %cst_28 {dimension_numbers = #tpu.dot_dimension_numbers<[1], [1], [0], [0], [0, 0, 1, 0], [], []>} : vector<8x8xf32>, vector<8x8xf32>, vector<8x8xf32> -> vector<8x8xf32>
    %cst_29 = arith.constant 0.353553385 : f32
    %79 = vector.broadcast %cst_29 : f32 to vector<8x8xf32>
    %80 = arith.mulf %78, %79 : vector<8x8xf32>
    %81 = vector.broadcast %36 : vector<1x8xf32> to vector<8x8xf32>
    %82 = arith.addf %80, %81 : vector<8x8xf32>
    %cst_30 = arith.constant dense<0xFF800000> : vector<8xf32>
    %83 = vector.multi_reduction <maximumf>, %82, %cst_30 [1] : vector<8x8xf32> to vector<8xf32>
    %84 = vector.shape_cast %83 : vector<8xf32> to vector<8x1xf32>
    %85 = vector.broadcast %84 : vector<8x1xf32> to vector<8x8xf32>
    %86 = arith.subf %82, %85 : vector<8x8xf32>
    %87 = math.exp %86 : vector<8x8xf32>
    %cst_31 = arith.constant dense<0.000000e+00> : vector<8xf32>
    %88 = vector.multi_reduction <add>, %87, %cst_31 [1] : vector<8x8xf32> to vector<8xf32>
    %89 = vector.shape_cast %88 : vector<8xf32> to vector<8x1xf32>
    %90 = tpu.reciprocal %89 {approx = true} : vector<8x1xf32> -> vector<8x1xf32>
    %91 = vector.broadcast %90 : vector<8x1xf32> to vector<8x8xf32>
    %92 = arith.mulf %87, %91 : vector<8x8xf32>
    %cst_32 = arith.constant dense<0.000000e+00> : vector<8x8xf32>
    %93 = tpu.matmul %92, %77, %cst_32 {dimension_numbers = #tpu.dot_dimension_numbers<[1], [0], [0], [1], [0, 0, 1, 1], [], []>} : vector<8x8xf32>, vector<8x8xf32>, vector<8x8xf32> -> vector<8x8xf32>
    %94 = vector.extract_strided_slice %33 {offsets = [0, 24], sizes = [8, 8], strides = [1, 1]} : vector<16x32xf32> to vector<8x8xf32>
    %95 = vector.extract_strided_slice %34 {offsets = [0, 24], sizes = [8, 8], strides = [1, 1]} : vector<16x32xf32> to vector<8x8xf32>
    %96 = vector.extract_strided_slice %35 {offsets = [0, 24], sizes = [8, 8], strides = [1, 1]} : vector<16x32xf32> to vector<8x8xf32>
    %cst_33 = arith.constant dense<0.000000e+00> : vector<8x8xf32>
    %97 = tpu.matmul %94, %95, %cst_33 {dimension_numbers = #tpu.dot_dimension_numbers<[1], [1], [0], [0], [0, 0, 1, 0], [], []>} : vector<8x8xf32>, vector<8x8xf32>, vector<8x8xf32> -> vector<8x8xf32>
    %cst_34 = arith.constant 0.353553385 : f32
    %98 = vector.broadcast %cst_34 : f32 to vector<8x8xf32>
    %99 = arith.mulf %97, %98 : vector<8x8xf32>
    %100 = vector.broadcast %36 : vector<1x8xf32> to vector<8x8xf32>
    %101 = arith.addf %99, %100 : vector<8x8xf32>
    %cst_35 = arith.constant dense<0xFF800000> : vector<8xf32>
    %102 = vector.multi_reduction <maximumf>, %101, %cst_35 [1] : vector<8x8xf32> to vector<8xf32>
    %103 = vector.shape_cast %102 : vector<8xf32> to vector<8x1xf32>
    %104 = vector.broadcast %103 : vector<8x1xf32> to vector<8x8xf32>
    %105 = arith.subf %101, %104 : vector<8x8xf32>
    %106 = math.exp %105 : vector<8x8xf32>
    %cst_36 = arith.constant dense<0.000000e+00> : vector<8xf32>
    %107 = vector.multi_reduction <add>, %106, %cst_36 [1] : vector<8x8xf32> to vector<8xf32>
    %108 = vector.shape_cast %107 : vector<8xf32> to vector<8x1xf32>
    %109 = tpu.reciprocal %108 {approx = true} : vector<8x1xf32> -> vector<8x1xf32>
    %110 = vector.broadcast %109 : vector<8x1xf32> to vector<8x8xf32>
    %111 = arith.mulf %106, %110 : vector<8x8xf32>
    %cst_37 = arith.constant dense<0.000000e+00> : vector<8x8xf32>
    %112 = tpu.matmul %111, %96, %cst_37 {dimension_numbers = #tpu.dot_dimension_numbers<[1], [0], [0], [1], [0, 0, 1, 1], [], []>} : vector<8x8xf32>, vector<8x8xf32>, vector<8x8xf32> -> vector<8x8xf32>
    %113 = tpu.concatenate %55, %74, %93, %112 in 1 : vector<8x8xf32>, vector<8x8xf32>, vector<8x8xf32>, vector<8x8xf32> -> vector<8x32xf32>
    %114 = vector.extract_strided_slice %25 {offsets = [1, 0], sizes = [1, 8], strides = [1, 1]} : vector<2x8xf32> to vector<1x8xf32>
    %115 = vector.extract_strided_slice %33 {offsets = [8, 0], sizes = [8, 8], strides = [1, 1]} : vector<16x32xf32> to vector<8x8xf32>
    %116 = vector.extract_strided_slice %34 {offsets = [8, 0], sizes = [8, 8], strides = [1, 1]} : vector<16x32xf32> to vector<8x8xf32>
    %117 = vector.extract_strided_slice %35 {offsets = [8, 0], sizes = [8, 8], strides = [1, 1]} : vector<16x32xf32> to vector<8x8xf32>
    %cst_38 = arith.constant dense<0.000000e+00> : vector<8x8xf32>
    %118 = tpu.matmul %115, %116, %cst_38 {dimension_numbers = #tpu.dot_dimension_numbers<[1], [1], [0], [0], [0, 0, 1, 0], [], []>} : vector<8x8xf32>, vector<8x8xf32>, vector<8x8xf32> -> vector<8x8xf32>
    %cst_39 = arith.constant 0.353553385 : f32
    %119 = vector.broadcast %cst_39 : f32 to vector<8x8xf32>
    %120 = arith.mulf %118, %119 : vector<8x8xf32>
    %121 = vector.broadcast %114 : vector<1x8xf32> to vector<8x8xf32>
    %122 = arith.addf %120, %121 : vector<8x8xf32>
    %cst_40 = arith.constant dense<0xFF800000> : vector<8xf32>
    %123 = vector.multi_reduction <maximumf>, %122, %cst_40 [1] : vector<8x8xf32> to vector<8xf32>
    %124 = vector.shape_cast %123 : vector<8xf32> to vector<8x1xf32>
    %125 = vector.broadcast %124 : vector<8x1xf32> to vector<8x8xf32>
    %126 = arith.subf %122, %125 : vector<8x8xf32>
    %127 = math.exp %126 : vector<8x8xf32>
    %cst_41 = arith.constant dense<0.000000e+00> : vector<8xf32>
    %128 = vector.multi_reduction <add>, %127, %cst_41 [1] : vector<8x8xf32> to vector<8xf32>
    %129 = vector.shape_cast %128 : vector<8xf32> to vector<8x1xf32>
    %130 = tpu.reciprocal %129 {approx = true} : vector<8x1xf32> -> vector<8x1xf32>
    %131 = vector.broadcast %130 : vector<8x1xf32> to vector<8x8xf32>
    %132 = arith.mulf %127, %131 : vector<8x8xf32>
    %cst_42 = arith.constant dense<0.000000e+00> : vector<8x8xf32>
    %133 = tpu.matmul %132, %117, %cst_42 {dimension_numbers = #tpu.dot_dimension_numbers<[1], [0], [0], [1], [0, 0, 1, 1], [], []>} : vector<8x8xf32>, vector<8x8xf32>, vector<8x8xf32> -> vector<8x8xf32>
    %134 = vector.extract_strided_slice %33 {offsets = [8, 8], sizes = [8, 8], strides = [1, 1]} : vector<16x32xf32> to vector<8x8xf32>
    %135 = vector.extract_strided_slice %34 {offsets = [8, 8], sizes = [8, 8], strides = [1, 1]} : vector<16x32xf32> to vector<8x8xf32>
    %136 = vector.extract_strided_slice %35 {offsets = [8, 8], sizes = [8, 8], strides = [1, 1]} : vector<16x32xf32> to vector<8x8xf32>
    %cst_43 = arith.constant dense<0.000000e+00> : vector<8x8xf32>
    %137 = tpu.matmul %134, %135, %cst_43 {dimension_numbers = #tpu.dot_dimension_numbers<[1], [1], [0], [0], [0, 0, 1, 0], [], []>} : vector<8x8xf32>, vector<8x8xf32>, vector<8x8xf32> -> vector<8x8xf32>
    %cst_44 = arith.constant 0.353553385 : f32
    %138 = vector.broadcast %cst_44 : f32 to vector<8x8xf32>
    %139 = arith.mulf %137, %138 : vector<8x8xf32>
    %140 = vector.broadcast %114 : vector<1x8xf32> to vector<8x8xf32>
    %141 = arith.addf %139, %140 : vector<8x8xf32>
    %cst_45 = arith.constant dense<0xFF800000> : vector<8xf32>
    %142 = vector.multi_reduction <maximumf>, %141, %cst_45 [1] : vector<8x8xf32> to vector<8xf32>
    %143 = vector.shape_cast %142 : vector<8xf32> to vector<8x1xf32>
    %144 = vector.broadcast %143 : vector<8x1xf32> to vector<8x8xf32>
    %145 = arith.subf %141, %144 : vector<8x8xf32>
    %146 = math.exp %145 : vector<8x8xf32>
    %cst_46 = arith.constant dense<0.000000e+00> : vector<8xf32>
    %147 = vector.multi_reduction <add>, %146, %cst_46 [1] : vector<8x8xf32> to vector<8xf32>
    %148 = vector.shape_cast %147 : vector<8xf32> to vector<8x1xf32>
    %149 = tpu.reciprocal %148 {approx = true} : vector<8x1xf32> -> vector<8x1xf32>
    %150 = vector.broadcast %149 : vector<8x1xf32> to vector<8x8xf32>
    %151 = arith.mulf %146, %150 : vector<8x8xf32>
    %cst_47 = arith.constant dense<0.000000e+00> : vector<8x8xf32>
    %152 = tpu.matmul %151, %136, %cst_47 {dimension_numbers = #tpu.dot_dimension_numbers<[1], [0], [0], [1], [0, 0, 1, 1], [], []>} : vector<8x8xf32>, vector<8x8xf32>, vector<8x8xf32> -> vector<8x8xf32>
    %153 = vector.extract_strided_slice %33 {offsets = [8, 16], sizes = [8, 8], strides = [1, 1]} : vector<16x32xf32> to vector<8x8xf32>
    %154 = vector.extract_strided_slice %34 {offsets = [8, 16], sizes = [8, 8], strides = [1, 1]} : vector<16x32xf32> to vector<8x8xf32>
    %155 = vector.extract_strided_slice %35 {offsets = [8, 16], sizes = [8, 8], strides = [1, 1]} : vector<16x32xf32> to vector<8x8xf32>
    %cst_48 = arith.constant dense<0.000000e+00> : vector<8x8xf32>
    %156 = tpu.matmul %153, %154, %cst_48 {dimension_numbers = #tpu.dot_dimension_numbers<[1], [1], [0], [0], [0, 0, 1, 0], [], []>} : vector<8x8xf32>, vector<8x8xf32>, vector<8x8xf32> -> vector<8x8xf32>
    %cst_49 = arith.constant 0.353553385 : f32
    %157 = vector.broadcast %cst_49 : f32 to vector<8x8xf32>
    %158 = arith.mulf %156, %157 : vector<8x8xf32>
    %159 = vector.broadcast %114 : vector<1x8xf32> to vector<8x8xf32>
    %160 = arith.addf %158, %159 : vector<8x8xf32>
    %cst_50 = arith.constant dense<0xFF800000> : vector<8xf32>
    %161 = vector.multi_reduction <maximumf>, %160, %cst_50 [1] : vector<8x8xf32> to vector<8xf32>
    %162 = vector.shape_cast %161 : vector<8xf32> to vector<8x1xf32>
    %163 = vector.broadcast %162 : vector<8x1xf32> to vector<8x8xf32>
    %164 = arith.subf %160, %163 : vector<8x8xf32>
    %165 = math.exp %164 : vector<8x8xf32>
    %cst_51 = arith.constant dense<0.000000e+00> : vector<8xf32>
    %166 = vector.multi_reduction <add>, %165, %cst_51 [1] : vector<8x8xf32> to vector<8xf32>
    %167 = vector.shape_cast %166 : vector<8xf32> to vector<8x1xf32>
    %168 = tpu.reciprocal %167 {approx = true} : vector<8x1xf32> -> vector<8x1xf32>
    %169 = vector.broadcast %168 : vector<8x1xf32> to vector<8x8xf32>
    %170 = arith.mulf %165, %169 : vector<8x8xf32>
    %cst_52 = arith.constant dense<0.000000e+00> : vector<8x8xf32>
    %171 = tpu.matmul %170, %155, %cst_52 {dimension_numbers = #tpu.dot_dimension_numbers<[1], [0], [0], [1], [0, 0, 1, 1], [], []>} : vector<8x8xf32>, vector<8x8xf32>, vector<8x8xf32> -> vector<8x8xf32>
    %172 = vector.extract_strided_slice %33 {offsets = [8, 24], sizes = [8, 8], strides = [1, 1]} : vector<16x32xf32> to vector<8x8xf32>
    %173 = vector.extract_strided_slice %34 {offsets = [8, 24], sizes = [8, 8], strides = [1, 1]} : vector<16x32xf32> to vector<8x8xf32>
    %174 = vector.extract_strided_slice %35 {offsets = [8, 24], sizes = [8, 8], strides = [1, 1]} : vector<16x32xf32> to vector<8x8xf32>
    %cst_53 = arith.constant dense<0.000000e+00> : vector<8x8xf32>
    %175 = tpu.matmul %172, %173, %cst_53 {dimension_numbers = #tpu.dot_dimension_numbers<[1], [1], [0], [0], [0, 0, 1, 0], [], []>} : vector<8x8xf32>, vector<8x8xf32>, vector<8x8xf32> -> vector<8x8xf32>
    %cst_54 = arith.constant 0.353553385 : f32
    %176 = vector.broadcast %cst_54 : f32 to vector<8x8xf32>
    %177 = arith.mulf %175, %176 : vector<8x8xf32>
    %178 = vector.broadcast %114 : vector<1x8xf32> to vector<8x8xf32>
    %179 = arith.addf %177, %178 : vector<8x8xf32>
    %cst_55 = arith.constant dense<0xFF800000> : vector<8xf32>
    %180 = vector.multi_reduction <maximumf>, %179, %cst_55 [1] : vector<8x8xf32> to vector<8xf32>
    %181 = vector.shape_cast %180 : vector<8xf32> to vector<8x1xf32>
    %182 = vector.broadcast %181 : vector<8x1xf32> to vector<8x8xf32>
    %183 = arith.subf %179, %182 : vector<8x8xf32>
    %184 = math.exp %183 : vector<8x8xf32>
    %cst_56 = arith.constant dense<0.000000e+00> : vector<8xf32>
    %185 = vector.multi_reduction <add>, %184, %cst_56 [1] : vector<8x8xf32> to vector<8xf32>
    %186 = vector.shape_cast %185 : vector<8xf32> to vector<8x1xf32>
    %187 = tpu.reciprocal %186 {approx = true} : vector<8x1xf32> -> vector<8x1xf32>
    %188 = vector.broadcast %187 : vector<8x1xf32> to vector<8x8xf32>
    %189 = arith.mulf %184, %188 : vector<8x8xf32>
    %cst_57 = arith.constant dense<0.000000e+00> : vector<8x8xf32>
    %190 = tpu.matmul %189, %174, %cst_57 {dimension_numbers = #tpu.dot_dimension_numbers<[1], [0], [0], [1], [0, 0, 1, 1], [], []>} : vector<8x8xf32>, vector<8x8xf32>, vector<8x8xf32> -> vector<8x8xf32>
    %191 = tpu.concatenate %133, %152, %171, %190 in 1 : vector<8x8xf32>, vector<8x8xf32>, vector<8x8xf32>, vector<8x8xf32> -> vector<8x32xf32>
    %192 = tpu.concatenate %113, %191 in 0 : vector<8x32xf32>, vector<8x32xf32> -> vector<16x32xf32>
    %c0_58 = arith.constant 0 : index
    %c0_59 = arith.constant 0 : index
    %c0_60 = arith.constant 0 : index
    %193 = vector.load %arg7[%c0_58, %c0_59, %c0_60] : memref<2x32x32xf32, #tpu.memory_space<vmem>>, vector<1x32x32xf32>
    %194 = vector.shape_cast %193 : vector<1x32x32xf32> to vector<32x32xf32>
    %cst_61 = arith.constant dense<0.000000e+00> : vector<16x32xf32>
    %195 = tpu.matmul %192, %194, %cst_61 {dimension_numbers = #tpu.dot_dimension_numbers<[1], [0], [0], [1], [0, 0, 1, 1], [], []>} : vector<16x32xf32>, vector<32x32xf32>, vector<16x32xf32> -> vector<16x32xf32>
    %c0_62 = arith.constant 0 : index
    %c0_63 = arith.constant 0 : index
    %c0_64 = arith.constant 0 : index
    %196 = vector.load %arg8[%c0_62, %c0_63, %c0_64] : memref<2x1x32xf32, #tpu.memory_space<vmem>>, vector<1x1x32xf32>
    %197 = vector.shape_cast %196 : vector<1x1x32xf32> to vector<1x32xf32>
    %198 = vector.broadcast %197 : vector<1x32xf32> to vector<16x32xf32>
    %199 = arith.addf %195, %198 : vector<16x32xf32>
    %200 = arith.addf %199, %24 : vector<16x32xf32>
    %c0_65 = arith.constant 0 : index
    %c0_66 = arith.constant 0 : index
    %c0_67 = arith.constant 0 : index
    %201 = vector.load %arg9[%c0_65, %c0_66, %c0_67] : memref<2x1x32xf32, #tpu.memory_space<vmem>>, vector<1x1x32xf32>
    %202 = vector.shape_cast %201 : vector<1x1x32xf32> to vector<1x32xf32>
    %c0_68 = arith.constant 0 : index
    %c0_69 = arith.constant 0 : index
    %c0_70 = arith.constant 0 : index
    %203 = vector.load %arg10[%c0_68, %c0_69, %c0_70] : memref<2x1x32xf32, #tpu.memory_space<vmem>>, vector<1x1x32xf32>
    %204 = vector.shape_cast %203 : vector<1x1x32xf32> to vector<1x32xf32>
    %cst_71 = arith.constant dense<0.000000e+00> : vector<16xf32>
    %205 = vector.multi_reduction <add>, %200, %cst_71 [1] : vector<16x32xf32> to vector<16xf32>
    %206 = vector.shape_cast %205 : vector<16xf32> to vector<16x1xf32>
    %cst_72 = arith.constant 3.200000e+01 : f32
    %207 = vector.broadcast %cst_72 : f32 to vector<16x1xf32>
    %208 = arith.divf %206, %207 : vector<16x1xf32>
    %209 = vector.broadcast %208 : vector<16x1xf32> to vector<16x32xf32>
    %210 = arith.subf %200, %209 : vector<16x32xf32>
    %211 = arith.mulf %210, %210 : vector<16x32xf32>
    %cst_73 = arith.constant dense<0.000000e+00> : vector<16xf32>
    %212 = vector.multi_reduction <add>, %211, %cst_73 [1] : vector<16x32xf32> to vector<16xf32>
    %213 = vector.shape_cast %212 : vector<16xf32> to vector<16x1xf32>
    %cst_74 = arith.constant 3.200000e+01 : f32
    %214 = vector.broadcast %cst_74 : f32 to vector<16x1xf32>
    %215 = arith.divf %213, %214 : vector<16x1xf32>
    %216 = vector.broadcast %208 : vector<16x1xf32> to vector<16x32xf32>
    %217 = arith.subf %200, %216 : vector<16x32xf32>
    %cst_75 = arith.constant 9.99999996E-13 : f32
    %218 = vector.broadcast %cst_75 : f32 to vector<16x1xf32>
    %219 = arith.addf %215, %218 : vector<16x1xf32>
    %220 = math.rsqrt %219 : vector<16x1xf32>
    %221 = vector.broadcast %220 : vector<16x1xf32> to vector<16x32xf32>
    %222 = arith.mulf %217, %221 : vector<16x32xf32>
    %223 = vector.broadcast %202 : vector<1x32xf32> to vector<16x32xf32>
    %224 = arith.mulf %222, %223 : vector<16x32xf32>
    %225 = vector.broadcast %204 : vector<1x32xf32> to vector<16x32xf32>
    %226 = arith.addf %224, %225 : vector<16x32xf32>
    %c0_76 = arith.constant 0 : index
    %c0_77 = arith.constant 0 : index
    %c0_78 = arith.constant 0 : index
    %227 = vector.load %arg11[%c0_76, %c0_77, %c0_78] : memref<2x32x64xf32, #tpu.memory_space<vmem>>, vector<1x32x64xf32>
    %228 = vector.shape_cast %227 : vector<1x32x64xf32> to vector<32x64xf32>
    %cst_79 = arith.constant dense<0.000000e+00> : vector<16x64xf32>
    %229 = tpu.matmul %226, %228, %cst_79 {dimension_numbers = #tpu.dot_dimension_numbers<[1], [0], [0], [1], [0, 0, 1, 1], [], []>} : vector<16x32xf32>, vector<32x64xf32>, vector<16x64xf32> -> vector<16x64xf32>
    %c0_80 = arith.constant 0 : index
    %c0_81 = arith.constant 0 : index
    %c0_82 = arith.constant 0 : index
    %230 = vector.load %arg12[%c0_80, %c0_81, %c0_82] : memref<2x1x64xf32, #tpu.memory_space<vmem>>, vector<1x1x64xf32>
    %231 = vector.shape_cast %230 : vector<1x1x64xf32> to vector<1x64xf32>
    %232 = vector.broadcast %231 : vector<1x64xf32> to vector<16x64xf32>
    %233 = arith.addf %229, %232 : vector<16x64xf32>
    %cst_83 = arith.constant 5.000000e-01 : f32
    %234 = vector.broadcast %cst_83 : f32 to vector<16x64xf32>
    %235 = arith.mulf %234, %233 : vector<16x64xf32>
    %cst_84 = arith.constant 4.471500e-02 : f32
    %236 = vector.broadcast %cst_84 : f32 to vector<16x64xf32>
    %237 = arith.mulf %236, %233 : vector<16x64xf32>
    %238 = arith.mulf %237, %233 : vector<16x64xf32>
    %239 = arith.mulf %238, %233 : vector<16x64xf32>
    %240 = arith.addf %233, %239 : vector<16x64xf32>
    %cst_85 = arith.constant 0.797884583 : f32
    %241 = vector.broadcast %cst_85 : f32 to vector<16x64xf32>
    %242 = arith.mulf %241, %240 : vector<16x64xf32>
    %243 = math.tanh %242 : vector<16x64xf32>
    %cst_86 = arith.constant 1.000000e+00 : f32
    %244 = vector.broadcast %cst_86 : f32 to vector<16x64xf32>
    %245 = arith.addf %244, %243 : vector<16x64xf32>
    %246 = arith.mulf %235, %245 : vector<16x64xf32>
    %c0_87 = arith.constant 0 : index
    %c0_88 = arith.constant 0 : index
    %c0_89 = arith.constant 0 : index
    %247 = vector.load %arg13[%c0_87, %c0_88, %c0_89] : memref<2x64x32xf32, #tpu.memory_space<vmem>>, vector<1x64x32xf32>
    %248 = vector.shape_cast %247 : vector<1x64x32xf32> to vector<64x32xf32>
    %cst_90 = arith.constant dense<0.000000e+00> : vector<16x32xf32>
    %249 = tpu.matmul %246, %248, %cst_90 {dimension_numbers = #tpu.dot_dimension_numbers<[1], [0], [0], [1], [0, 0, 1, 1], [], []>} : vector<16x64xf32>, vector<64x32xf32>, vector<16x32xf32> -> vector<16x32xf32>
    %c0_91 = arith.constant 0 : index
    %c0_92 = arith.constant 0 : index
    %c0_93 = arith.constant 0 : index
    %250 = vector.load %arg14[%c0_91, %c0_92, %c0_93] : memref<2x1x32xf32, #tpu.memory_space<vmem>>, vector<1x1x32xf32>
    %251 = vector.shape_cast %250 : vector<1x1x32xf32> to vector<1x32xf32>
    %252 = vector.broadcast %251 : vector<1x32xf32> to vector<16x32xf32>
    %253 = arith.addf %249, %252 : vector<16x32xf32>
    %254 = arith.addf %253, %226 : vector<16x32xf32>
    %c0_94 = arith.constant 0 : index
    %c0_95 = arith.constant 0 : index
    %c0_96 = arith.constant 0 : index
    %255 = vector.load %arg15[%c0_94, %c0_95, %c0_96] : memref<2x1x32xf32, #tpu.memory_space<vmem>>, vector<1x1x32xf32>
    %256 = vector.shape_cast %255 : vector<1x1x32xf32> to vector<1x32xf32>
    %c0_97 = arith.constant 0 : index
    %c0_98 = arith.constant 0 : index
    %c0_99 = arith.constant 0 : index
    %257 = vector.load %arg16[%c0_97, %c0_98, %c0_99] : memref<2x1x32xf32, #tpu.memory_space<vmem>>, vector<1x1x32xf32>
    %258 = vector.shape_cast %257 : vector<1x1x32xf32> to vector<1x32xf32>
    %cst_100 = arith.constant dense<0.000000e+00> : vector<16xf32>
    %259 = vector.multi_reduction <add>, %254, %cst_100 [1] : vector<16x32xf32> to vector<16xf32>
    %260 = vector.shape_cast %259 : vector<16xf32> to vector<16x1xf32>
    %cst_101 = arith.constant 3.200000e+01 : f32
    %261 = vector.broadcast %cst_101 : f32 to vector<16x1xf32>
    %262 = arith.divf %260, %261 : vector<16x1xf32>
    %263 = vector.broadcast %262 : vector<16x1xf32> to vector<16x32xf32>
    %264 = arith.subf %254, %263 : vector<16x32xf32>
    %265 = arith.mulf %264, %264 : vector<16x32xf32>
    %cst_102 = arith.constant dense<0.000000e+00> : vector<16xf32>
    %266 = vector.multi_reduction <add>, %265, %cst_102 [1] : vector<16x32xf32> to vector<16xf32>
    %267 = vector.shape_cast %266 : vector<16xf32> to vector<16x1xf32>
    %cst_103 = arith.constant 3.200000e+01 : f32
    %268 = vector.broadcast %cst_103 : f32 to vector<16x1xf32>
    %269 = arith.divf %267, %268 : vector<16x1xf32>
    %270 = vector.broadcast %262 : vector<16x1xf32> to vector<16x32xf32>
    %271 = arith.subf %254, %270 : vector<16x32xf32>
    %cst_104 = arith.constant 9.99999996E-13 : f32
    %272 = vector.broadcast %cst_104 : f32 to vector<16x1xf32>
    %273 = arith.addf %269, %272 : vector<16x1xf32>
    %274 = math.rsqrt %273 : vector<16x1xf32>
    %275 = vector.broadcast %274 : vector<16x1xf32> to vector<16x32xf32>
    %276 = arith.mulf %271, %275 : vector<16x32xf32>
    %277 = vector.broadcast %256 : vector<1x32xf32> to vector<16x32xf32>
    %278 = arith.mulf %276, %277 : vector<16x32xf32>
    %279 = vector.broadcast %258 : vector<1x32xf32> to vector<16x32xf32>
    %280 = arith.addf %278, %279 : vector<16x32xf32>
    %c1 = arith.constant 1 : index
    %c0_105 = arith.constant 0 : index
    %c0_106 = arith.constant 0 : index
    %281 = vector.load %arg5[%c1, %c0_105, %c0_106] : memref<2x32x96xf32, #tpu.memory_space<vmem>>, vector<1x32x96xf32>
    %282 = vector.shape_cast %281 : vector<1x32x96xf32> to vector<32x96xf32>
    %cst_107 = arith.constant dense<0.000000e+00> : vector<16x96xf32>
    %283 = tpu.matmul %280, %282, %cst_107 {dimension_numbers = #tpu.dot_dimension_numbers<[1], [0], [0], [1], [0, 0, 1, 1], [], []>} : vector<16x32xf32>, vector<32x96xf32>, vector<16x96xf32> -> vector<16x96xf32>
    %c1_108 = arith.constant 1 : index
    %c0_109 = arith.constant 0 : index
    %c0_110 = arith.constant 0 : index
    %284 = vector.load %arg6[%c1_108, %c0_109, %c0_110] : memref<2x1x96xf32, #tpu.memory_space<vmem>>, vector<1x1x96xf32>
    %285 = vector.shape_cast %284 : vector<1x1x96xf32> to vector<1x96xf32>
    %286 = vector.broadcast %285 : vector<1x96xf32> to vector<16x96xf32>
    %287 = arith.addf %283, %286 : vector<16x96xf32>
    %288 = vector.extract_strided_slice %287 {offsets = [0, 0], sizes = [16, 32], strides = [1, 1]} : vector<16x96xf32> to vector<16x32xf32>
    %289 = vector.extract_strided_slice %287 {offsets = [0, 32], sizes = [16, 32], strides = [1, 1]} : vector<16x96xf32> to vector<16x32xf32>
    %290 = vector.extract_strided_slice %287 {offsets = [0, 64], sizes = [16, 32], strides = [1, 1]} : vector<16x96xf32> to vector<16x32xf32>
    %291 = vector.extract_strided_slice %25 {offsets = [0, 0], sizes = [1, 8], strides = [1, 1]} : vector<2x8xf32> to vector<1x8xf32>
    %292 = vector.extract_strided_slice %288 {offsets = [0, 0], sizes = [8, 8], strides = [1, 1]} : vector<16x32xf32> to vector<8x8xf32>
    %293 = vector.extract_strided_slice %289 {offsets = [0, 0], sizes = [8, 8], strides = [1, 1]} : vector<16x32xf32> to vector<8x8xf32>
    %294 = vector.extract_strided_slice %290 {offsets = [0, 0], sizes = [8, 8], strides = [1, 1]} : vector<16x32xf32> to vector<8x8xf32>
    %cst_111 = arith.constant dense<0.000000e+00> : vector<8x8xf32>
    %295 = tpu.matmul %292, %293, %cst_111 {dimension_numbers = #tpu.dot_dimension_numbers<[1], [1], [0], [0], [0, 0, 1, 0], [], []>} : vector<8x8xf32>, vector<8x8xf32>, vector<8x8xf32> -> vector<8x8xf32>
    %cst_112 = arith.constant 0.353553385 : f32
    %296 = vector.broadcast %cst_112 : f32 to vector<8x8xf32>
    %297 = arith.mulf %295, %296 : vector<8x8xf32>
    %298 = vector.broadcast %291 : vector<1x8xf32> to vector<8x8xf32>
    %299 = arith.addf %297, %298 : vector<8x8xf32>
    %cst_113 = arith.constant dense<0xFF800000> : vector<8xf32>
    %300 = vector.multi_reduction <maximumf>, %299, %cst_113 [1] : vector<8x8xf32> to vector<8xf32>
    %301 = vector.shape_cast %300 : vector<8xf32> to vector<8x1xf32>
    %302 = vector.broadcast %301 : vector<8x1xf32> to vector<8x8xf32>
    %303 = arith.subf %299, %302 : vector<8x8xf32>
    %304 = math.exp %303 : vector<8x8xf32>
    %cst_114 = arith.constant dense<0.000000e+00> : vector<8xf32>
    %305 = vector.multi_reduction <add>, %304, %cst_114 [1] : vector<8x8xf32> to vector<8xf32>
    %306 = vector.shape_cast %305 : vector<8xf32> to vector<8x1xf32>
    %307 = tpu.reciprocal %306 {approx = true} : vector<8x1xf32> -> vector<8x1xf32>
    %308 = vector.broadcast %307 : vector<8x1xf32> to vector<8x8xf32>
    %309 = arith.mulf %304, %308 : vector<8x8xf32>
    %cst_115 = arith.constant dense<0.000000e+00> : vector<8x8xf32>
    %310 = tpu.matmul %309, %294, %cst_115 {dimension_numbers = #tpu.dot_dimension_numbers<[1], [0], [0], [1], [0, 0, 1, 1], [], []>} : vector<8x8xf32>, vector<8x8xf32>, vector<8x8xf32> -> vector<8x8xf32>
    %311 = vector.extract_strided_slice %288 {offsets = [0, 8], sizes = [8, 8], strides = [1, 1]} : vector<16x32xf32> to vector<8x8xf32>
    %312 = vector.extract_strided_slice %289 {offsets = [0, 8], sizes = [8, 8], strides = [1, 1]} : vector<16x32xf32> to vector<8x8xf32>
    %313 = vector.extract_strided_slice %290 {offsets = [0, 8], sizes = [8, 8], strides = [1, 1]} : vector<16x32xf32> to vector<8x8xf32>
    %cst_116 = arith.constant dense<0.000000e+00> : vector<8x8xf32>
    %314 = tpu.matmul %311, %312, %cst_116 {dimension_numbers = #tpu.dot_dimension_numbers<[1], [1], [0], [0], [0, 0, 1, 0], [], []>} : vector<8x8xf32>, vector<8x8xf32>, vector<8x8xf32> -> vector<8x8xf32>
    %cst_117 = arith.constant 0.353553385 : f32
    %315 = vector.broadcast %cst_117 : f32 to vector<8x8xf32>
    %316 = arith.mulf %314, %315 : vector<8x8xf32>
    %317 = vector.broadcast %291 : vector<1x8xf32> to vector<8x8xf32>
    %318 = arith.addf %316, %317 : vector<8x8xf32>
    %cst_118 = arith.constant dense<0xFF800000> : vector<8xf32>
    %319 = vector.multi_reduction <maximumf>, %318, %cst_118 [1] : vector<8x8xf32> to vector<8xf32>
    %320 = vector.shape_cast %319 : vector<8xf32> to vector<8x1xf32>
    %321 = vector.broadcast %320 : vector<8x1xf32> to vector<8x8xf32>
    %322 = arith.subf %318, %321 : vector<8x8xf32>
    %323 = math.exp %322 : vector<8x8xf32>
    %cst_119 = arith.constant dense<0.000000e+00> : vector<8xf32>
    %324 = vector.multi_reduction <add>, %323, %cst_119 [1] : vector<8x8xf32> to vector<8xf32>
    %325 = vector.shape_cast %324 : vector<8xf32> to vector<8x1xf32>
    %326 = tpu.reciprocal %325 {approx = true} : vector<8x1xf32> -> vector<8x1xf32>
    %327 = vector.broadcast %326 : vector<8x1xf32> to vector<8x8xf32>
    %328 = arith.mulf %323, %327 : vector<8x8xf32>
    %cst_120 = arith.constant dense<0.000000e+00> : vector<8x8xf32>
    %329 = tpu.matmul %328, %313, %cst_120 {dimension_numbers = #tpu.dot_dimension_numbers<[1], [0], [0], [1], [0, 0, 1, 1], [], []>} : vector<8x8xf32>, vector<8x8xf32>, vector<8x8xf32> -> vector<8x8xf32>
    %330 = vector.extract_strided_slice %288 {offsets = [0, 16], sizes = [8, 8], strides = [1, 1]} : vector<16x32xf32> to vector<8x8xf32>
    %331 = vector.extract_strided_slice %289 {offsets = [0, 16], sizes = [8, 8], strides = [1, 1]} : vector<16x32xf32> to vector<8x8xf32>
    %332 = vector.extract_strided_slice %290 {offsets = [0, 16], sizes = [8, 8], strides = [1, 1]} : vector<16x32xf32> to vector<8x8xf32>
    %cst_121 = arith.constant dense<0.000000e+00> : vector<8x8xf32>
    %333 = tpu.matmul %330, %331, %cst_121 {dimension_numbers = #tpu.dot_dimension_numbers<[1], [1], [0], [0], [0, 0, 1, 0], [], []>} : vector<8x8xf32>, vector<8x8xf32>, vector<8x8xf32> -> vector<8x8xf32>
    %cst_122 = arith.constant 0.353553385 : f32
    %334 = vector.broadcast %cst_122 : f32 to vector<8x8xf32>
    %335 = arith.mulf %333, %334 : vector<8x8xf32>
    %336 = vector.broadcast %291 : vector<1x8xf32> to vector<8x8xf32>
    %337 = arith.addf %335, %336 : vector<8x8xf32>
    %cst_123 = arith.constant dense<0xFF800000> : vector<8xf32>
    %338 = vector.multi_reduction <maximumf>, %337, %cst_123 [1] : vector<8x8xf32> to vector<8xf32>
    %339 = vector.shape_cast %338 : vector<8xf32> to vector<8x1xf32>
    %340 = vector.broadcast %339 : vector<8x1xf32> to vector<8x8xf32>
    %341 = arith.subf %337, %340 : vector<8x8xf32>
    %342 = math.exp %341 : vector<8x8xf32>
    %cst_124 = arith.constant dense<0.000000e+00> : vector<8xf32>
    %343 = vector.multi_reduction <add>, %342, %cst_124 [1] : vector<8x8xf32> to vector<8xf32>
    %344 = vector.shape_cast %343 : vector<8xf32> to vector<8x1xf32>
    %345 = tpu.reciprocal %344 {approx = true} : vector<8x1xf32> -> vector<8x1xf32>
    %346 = vector.broadcast %345 : vector<8x1xf32> to vector<8x8xf32>
    %347 = arith.mulf %342, %346 : vector<8x8xf32>
    %cst_125 = arith.constant dense<0.000000e+00> : vector<8x8xf32>
    %348 = tpu.matmul %347, %332, %cst_125 {dimension_numbers = #tpu.dot_dimension_numbers<[1], [0], [0], [1], [0, 0, 1, 1], [], []>} : vector<8x8xf32>, vector<8x8xf32>, vector<8x8xf32> -> vector<8x8xf32>
    %349 = vector.extract_strided_slice %288 {offsets = [0, 24], sizes = [8, 8], strides = [1, 1]} : vector<16x32xf32> to vector<8x8xf32>
    %350 = vector.extract_strided_slice %289 {offsets = [0, 24], sizes = [8, 8], strides = [1, 1]} : vector<16x32xf32> to vector<8x8xf32>
    %351 = vector.extract_strided_slice %290 {offsets = [0, 24], sizes = [8, 8], strides = [1, 1]} : vector<16x32xf32> to vector<8x8xf32>
    %cst_126 = arith.constant dense<0.000000e+00> : vector<8x8xf32>
    %352 = tpu.matmul %349, %350, %cst_126 {dimension_numbers = #tpu.dot_dimension_numbers<[1], [1], [0], [0], [0, 0, 1, 0], [], []>} : vector<8x8xf32>, vector<8x8xf32>, vector<8x8xf32> -> vector<8x8xf32>
    %cst_127 = arith.constant 0.353553385 : f32
    %353 = vector.broadcast %cst_127 : f32 to vector<8x8xf32>
    %354 = arith.mulf %352, %353 : vector<8x8xf32>
    %355 = vector.broadcast %291 : vector<1x8xf32> to vector<8x8xf32>
    %356 = arith.addf %354, %355 : vector<8x8xf32>
    %cst_128 = arith.constant dense<0xFF800000> : vector<8xf32>
    %357 = vector.multi_reduction <maximumf>, %356, %cst_128 [1] : vector<8x8xf32> to vector<8xf32>
    %358 = vector.shape_cast %357 : vector<8xf32> to vector<8x1xf32>
    %359 = vector.broadcast %358 : vector<8x1xf32> to vector<8x8xf32>
    %360 = arith.subf %356, %359 : vector<8x8xf32>
    %361 = math.exp %360 : vector<8x8xf32>
    %cst_129 = arith.constant dense<0.000000e+00> : vector<8xf32>
    %362 = vector.multi_reduction <add>, %361, %cst_129 [1] : vector<8x8xf32> to vector<8xf32>
    %363 = vector.shape_cast %362 : vector<8xf32> to vector<8x1xf32>
    %364 = tpu.reciprocal %363 {approx = true} : vector<8x1xf32> -> vector<8x1xf32>
    %365 = vector.broadcast %364 : vector<8x1xf32> to vector<8x8xf32>
    %366 = arith.mulf %361, %365 : vector<8x8xf32>
    %cst_130 = arith.constant dense<0.000000e+00> : vector<8x8xf32>
    %367 = tpu.matmul %366, %351, %cst_130 {dimension_numbers = #tpu.dot_dimension_numbers<[1], [0], [0], [1], [0, 0, 1, 1], [], []>} : vector<8x8xf32>, vector<8x8xf32>, vector<8x8xf32> -> vector<8x8xf32>
    %368 = tpu.concatenate %310, %329, %348, %367 in 1 : vector<8x8xf32>, vector<8x8xf32>, vector<8x8xf32>, vector<8x8xf32> -> vector<8x32xf32>
    %369 = vector.extract_strided_slice %25 {offsets = [1, 0], sizes = [1, 8], strides = [1, 1]} : vector<2x8xf32> to vector<1x8xf32>
    %370 = vector.extract_strided_slice %288 {offsets = [8, 0], sizes = [8, 8], strides = [1, 1]} : vector<16x32xf32> to vector<8x8xf32>
    %371 = vector.extract_strided_slice %289 {offsets = [8, 0], sizes = [8, 8], strides = [1, 1]} : vector<16x32xf32> to vector<8x8xf32>
    %372 = vector.extract_strided_slice %290 {offsets = [8, 0], sizes = [8, 8], strides = [1, 1]} : vector<16x32xf32> to vector<8x8xf32>
    %cst_131 = arith.constant dense<0.000000e+00> : vector<8x8xf32>
    %373 = tpu.matmul %370, %371, %cst_131 {dimension_numbers = #tpu.dot_dimension_numbers<[1], [1], [0], [0], [0, 0, 1, 0], [], []>} : vector<8x8xf32>, vector<8x8xf32>, vector<8x8xf32> -> vector<8x8xf32>
    %cst_132 = arith.constant 0.353553385 : f32
    %374 = vector.broadcast %cst_132 : f32 to vector<8x8xf32>
    %375 = arith.mulf %373, %374 : vector<8x8xf32>
    %376 = vector.broadcast %369 : vector<1x8xf32> to vector<8x8xf32>
    %377 = arith.addf %375, %376 : vector<8x8xf32>
    %cst_133 = arith.constant dense<0xFF800000> : vector<8xf32>
    %378 = vector.multi_reduction <maximumf>, %377, %cst_133 [1] : vector<8x8xf32> to vector<8xf32>
    %379 = vector.shape_cast %378 : vector<8xf32> to vector<8x1xf32>
    %380 = vector.broadcast %379 : vector<8x1xf32> to vector<8x8xf32>
    %381 = arith.subf %377, %380 : vector<8x8xf32>
    %382 = math.exp %381 : vector<8x8xf32>
    %cst_134 = arith.constant dense<0.000000e+00> : vector<8xf32>
    %383 = vector.multi_reduction <add>, %382, %cst_134 [1] : vector<8x8xf32> to vector<8xf32>
    %384 = vector.shape_cast %383 : vector<8xf32> to vector<8x1xf32>
    %385 = tpu.reciprocal %384 {approx = true} : vector<8x1xf32> -> vector<8x1xf32>
    %386 = vector.broadcast %385 : vector<8x1xf32> to vector<8x8xf32>
    %387 = arith.mulf %382, %386 : vector<8x8xf32>
    %cst_135 = arith.constant dense<0.000000e+00> : vector<8x8xf32>
    %388 = tpu.matmul %387, %372, %cst_135 {dimension_numbers = #tpu.dot_dimension_numbers<[1], [0], [0], [1], [0, 0, 1, 1], [], []>} : vector<8x8xf32>, vector<8x8xf32>, vector<8x8xf32> -> vector<8x8xf32>
    %389 = vector.extract_strided_slice %288 {offsets = [8, 8], sizes = [8, 8], strides = [1, 1]} : vector<16x32xf32> to vector<8x8xf32>
    %390 = vector.extract_strided_slice %289 {offsets = [8, 8], sizes = [8, 8], strides = [1, 1]} : vector<16x32xf32> to vector<8x8xf32>
    %391 = vector.extract_strided_slice %290 {offsets = [8, 8], sizes = [8, 8], strides = [1, 1]} : vector<16x32xf32> to vector<8x8xf32>
    %cst_136 = arith.constant dense<0.000000e+00> : vector<8x8xf32>
    %392 = tpu.matmul %389, %390, %cst_136 {dimension_numbers = #tpu.dot_dimension_numbers<[1], [1], [0], [0], [0, 0, 1, 0], [], []>} : vector<8x8xf32>, vector<8x8xf32>, vector<8x8xf32> -> vector<8x8xf32>
    %cst_137 = arith.constant 0.353553385 : f32
    %393 = vector.broadcast %cst_137 : f32 to vector<8x8xf32>
    %394 = arith.mulf %392, %393 : vector<8x8xf32>
    %395 = vector.broadcast %369 : vector<1x8xf32> to vector<8x8xf32>
    %396 = arith.addf %394, %395 : vector<8x8xf32>
    %cst_138 = arith.constant dense<0xFF800000> : vector<8xf32>
    %397 = vector.multi_reduction <maximumf>, %396, %cst_138 [1] : vector<8x8xf32> to vector<8xf32>
    %398 = vector.shape_cast %397 : vector<8xf32> to vector<8x1xf32>
    %399 = vector.broadcast %398 : vector<8x1xf32> to vector<8x8xf32>
    %400 = arith.subf %396, %399 : vector<8x8xf32>
    %401 = math.exp %400 : vector<8x8xf32>
    %cst_139 = arith.constant dense<0.000000e+00> : vector<8xf32>
    %402 = vector.multi_reduction <add>, %401, %cst_139 [1] : vector<8x8xf32> to vector<8xf32>
    %403 = vector.shape_cast %402 : vector<8xf32> to vector<8x1xf32>
    %404 = tpu.reciprocal %403 {approx = true} : vector<8x1xf32> -> vector<8x1xf32>
    %405 = vector.broadcast %404 : vector<8x1xf32> to vector<8x8xf32>
    %406 = arith.mulf %401, %405 : vector<8x8xf32>
    %cst_140 = arith.constant dense<0.000000e+00> : vector<8x8xf32>
    %407 = tpu.matmul %406, %391, %cst_140 {dimension_numbers = #tpu.dot_dimension_numbers<[1], [0], [0], [1], [0, 0, 1, 1], [], []>} : vector<8x8xf32>, vector<8x8xf32>, vector<8x8xf32> -> vector<8x8xf32>
    %408 = vector.extract_strided_slice %288 {offsets = [8, 16], sizes = [8, 8], strides = [1, 1]} : vector<16x32xf32> to vector<8x8xf32>
    %409 = vector.extract_strided_slice %289 {offsets = [8, 16], sizes = [8, 8], strides = [1, 1]} : vector<16x32xf32> to vector<8x8xf32>
    %410 = vector.extract_strided_slice %290 {offsets = [8, 16], sizes = [8, 8], strides = [1, 1]} : vector<16x32xf32> to vector<8x8xf32>
    %cst_141 = arith.constant dense<0.000000e+00> : vector<8x8xf32>
    %411 = tpu.matmul %408, %409, %cst_141 {dimension_numbers = #tpu.dot_dimension_numbers<[1], [1], [0], [0], [0, 0, 1, 0], [], []>} : vector<8x8xf32>, vector<8x8xf32>, vector<8x8xf32> -> vector<8x8xf32>
    %cst_142 = arith.constant 0.353553385 : f32
    %412 = vector.broadcast %cst_142 : f32 to vector<8x8xf32>
    %413 = arith.mulf %411, %412 : vector<8x8xf32>
    %414 = vector.broadcast %369 : vector<1x8xf32> to vector<8x8xf32>
    %415 = arith.addf %413, %414 : vector<8x8xf32>
    %cst_143 = arith.constant dense<0xFF800000> : vector<8xf32>
    %416 = vector.multi_reduction <maximumf>, %415, %cst_143 [1] : vector<8x8xf32> to vector<8xf32>
    %417 = vector.shape_cast %416 : vector<8xf32> to vector<8x1xf32>
    %418 = vector.broadcast %417 : vector<8x1xf32> to vector<8x8xf32>
    %419 = arith.subf %415, %418 : vector<8x8xf32>
    %420 = math.exp %419 : vector<8x8xf32>
    %cst_144 = arith.constant dense<0.000000e+00> : vector<8xf32>
    %421 = vector.multi_reduction <add>, %420, %cst_144 [1] : vector<8x8xf32> to vector<8xf32>
    %422 = vector.shape_cast %421 : vector<8xf32> to vector<8x1xf32>
    %423 = tpu.reciprocal %422 {approx = true} : vector<8x1xf32> -> vector<8x1xf32>
    %424 = vector.broadcast %423 : vector<8x1xf32> to vector<8x8xf32>
    %425 = arith.mulf %420, %424 : vector<8x8xf32>
    %cst_145 = arith.constant dense<0.000000e+00> : vector<8x8xf32>
    %426 = tpu.matmul %425, %410, %cst_145 {dimension_numbers = #tpu.dot_dimension_numbers<[1], [0], [0], [1], [0, 0, 1, 1], [], []>} : vector<8x8xf32>, vector<8x8xf32>, vector<8x8xf32> -> vector<8x8xf32>
    %427 = vector.extract_strided_slice %288 {offsets = [8, 24], sizes = [8, 8], strides = [1, 1]} : vector<16x32xf32> to vector<8x8xf32>
    %428 = vector.extract_strided_slice %289 {offsets = [8, 24], sizes = [8, 8], strides = [1, 1]} : vector<16x32xf32> to vector<8x8xf32>
    %429 = vector.extract_strided_slice %290 {offsets = [8, 24], sizes = [8, 8], strides = [1, 1]} : vector<16x32xf32> to vector<8x8xf32>
    %cst_146 = arith.constant dense<0.000000e+00> : vector<8x8xf32>
    %430 = tpu.matmul %427, %428, %cst_146 {dimension_numbers = #tpu.dot_dimension_numbers<[1], [1], [0], [0], [0, 0, 1, 0], [], []>} : vector<8x8xf32>, vector<8x8xf32>, vector<8x8xf32> -> vector<8x8xf32>
    %cst_147 = arith.constant 0.353553385 : f32
    %431 = vector.broadcast %cst_147 : f32 to vector<8x8xf32>
    %432 = arith.mulf %430, %431 : vector<8x8xf32>
    %433 = vector.broadcast %369 : vector<1x8xf32> to vector<8x8xf32>
    %434 = arith.addf %432, %433 : vector<8x8xf32>
    %cst_148 = arith.constant dense<0xFF800000> : vector<8xf32>
    %435 = vector.multi_reduction <maximumf>, %434, %cst_148 [1] : vector<8x8xf32> to vector<8xf32>
    %436 = vector.shape_cast %435 : vector<8xf32> to vector<8x1xf32>
    %437 = vector.broadcast %436 : vector<8x1xf32> to vector<8x8xf32>
    %438 = arith.subf %434, %437 : vector<8x8xf32>
    %439 = math.exp %438 : vector<8x8xf32>
    %cst_149 = arith.constant dense<0.000000e+00> : vector<8xf32>
    %440 = vector.multi_reduction <add>, %439, %cst_149 [1] : vector<8x8xf32> to vector<8xf32>
    %441 = vector.shape_cast %440 : vector<8xf32> to vector<8x1xf32>
    %442 = tpu.reciprocal %441 {approx = true} : vector<8x1xf32> -> vector<8x1xf32>
    %443 = vector.broadcast %442 : vector<8x1xf32> to vector<8x8xf32>
    %444 = arith.mulf %439, %443 : vector<8x8xf32>
    %cst_150 = arith.constant dense<0.000000e+00> : vector<8x8xf32>
    %445 = tpu.matmul %444, %429, %cst_150 {dimension_numbers = #tpu.dot_dimension_numbers<[1], [0], [0], [1], [0, 0, 1, 1], [], []>} : vector<8x8xf32>, vector<8x8xf32>, vector<8x8xf32> -> vector<8x8xf32>
    %446 = tpu.concatenate %388, %407, %426, %445 in 1 : vector<8x8xf32>, vector<8x8xf32>, vector<8x8xf32>, vector<8x8xf32> -> vector<8x32xf32>
    %447 = tpu.concatenate %368, %446 in 0 : vector<8x32xf32>, vector<8x32xf32> -> vector<16x32xf32>
    %c1_151 = arith.constant 1 : index
    %c0_152 = arith.constant 0 : index
    %c0_153 = arith.constant 0 : index
    %448 = vector.load %arg7[%c1_151, %c0_152, %c0_153] : memref<2x32x32xf32, #tpu.memory_space<vmem>>, vector<1x32x32xf32>
    %449 = vector.shape_cast %448 : vector<1x32x32xf32> to vector<32x32xf32>
    %cst_154 = arith.constant dense<0.000000e+00> : vector<16x32xf32>
    %450 = tpu.matmul %447, %449, %cst_154 {dimension_numbers = #tpu.dot_dimension_numbers<[1], [0], [0], [1], [0, 0, 1, 1], [], []>} : vector<16x32xf32>, vector<32x32xf32>, vector<16x32xf32> -> vector<16x32xf32>
    %c1_155 = arith.constant 1 : index
    %c0_156 = arith.constant 0 : index
    %c0_157 = arith.constant 0 : index
    %451 = vector.load %arg8[%c1_155, %c0_156, %c0_157] : memref<2x1x32xf32, #tpu.memory_space<vmem>>, vector<1x1x32xf32>
    %452 = vector.shape_cast %451 : vector<1x1x32xf32> to vector<1x32xf32>
    %453 = vector.broadcast %452 : vector<1x32xf32> to vector<16x32xf32>
    %454 = arith.addf %450, %453 : vector<16x32xf32>
    %455 = arith.addf %454, %280 : vector<16x32xf32>
    %c1_158 = arith.constant 1 : index
    %c0_159 = arith.constant 0 : index
    %c0_160 = arith.constant 0 : index
    %456 = vector.load %arg9[%c1_158, %c0_159, %c0_160] : memref<2x1x32xf32, #tpu.memory_space<vmem>>, vector<1x1x32xf32>
    %457 = vector.shape_cast %456 : vector<1x1x32xf32> to vector<1x32xf32>
    %c1_161 = arith.constant 1 : index
    %c0_162 = arith.constant 0 : index
    %c0_163 = arith.constant 0 : index
    %458 = vector.load %arg10[%c1_161, %c0_162, %c0_163] : memref<2x1x32xf32, #tpu.memory_space<vmem>>, vector<1x1x32xf32>
    %459 = vector.shape_cast %458 : vector<1x1x32xf32> to vector<1x32xf32>
    %cst_164 = arith.constant dense<0.000000e+00> : vector<16xf32>
    %460 = vector.multi_reduction <add>, %455, %cst_164 [1] : vector<16x32xf32> to vector<16xf32>
    %461 = vector.shape_cast %460 : vector<16xf32> to vector<16x1xf32>
    %cst_165 = arith.constant 3.200000e+01 : f32
    %462 = vector.broadcast %cst_165 : f32 to vector<16x1xf32>
    %463 = arith.divf %461, %462 : vector<16x1xf32>
    %464 = vector.broadcast %463 : vector<16x1xf32> to vector<16x32xf32>
    %465 = arith.subf %455, %464 : vector<16x32xf32>
    %466 = arith.mulf %465, %465 : vector<16x32xf32>
    %cst_166 = arith.constant dense<0.000000e+00> : vector<16xf32>
    %467 = vector.multi_reduction <add>, %466, %cst_166 [1] : vector<16x32xf32> to vector<16xf32>
    %468 = vector.shape_cast %467 : vector<16xf32> to vector<16x1xf32>
    %cst_167 = arith.constant 3.200000e+01 : f32
    %469 = vector.broadcast %cst_167 : f32 to vector<16x1xf32>
    %470 = arith.divf %468, %469 : vector<16x1xf32>
    %471 = vector.broadcast %463 : vector<16x1xf32> to vector<16x32xf32>
    %472 = arith.subf %455, %471 : vector<16x32xf32>
    %cst_168 = arith.constant 9.99999996E-13 : f32
    %473 = vector.broadcast %cst_168 : f32 to vector<16x1xf32>
    %474 = arith.addf %470, %473 : vector<16x1xf32>
    %475 = math.rsqrt %474 : vector<16x1xf32>
    %476 = vector.broadcast %475 : vector<16x1xf32> to vector<16x32xf32>
    %477 = arith.mulf %472, %476 : vector<16x32xf32>
    %478 = vector.broadcast %457 : vector<1x32xf32> to vector<16x32xf32>
    %479 = arith.mulf %477, %478 : vector<16x32xf32>
    %480 = vector.broadcast %459 : vector<1x32xf32> to vector<16x32xf32>
    %481 = arith.addf %479, %480 : vector<16x32xf32>
    %c1_169 = arith.constant 1 : index
    %c0_170 = arith.constant 0 : index
    %c0_171 = arith.constant 0 : index
    %482 = vector.load %arg11[%c1_169, %c0_170, %c0_171] : memref<2x32x64xf32, #tpu.memory_space<vmem>>, vector<1x32x64xf32>
    %483 = vector.shape_cast %482 : vector<1x32x64xf32> to vector<32x64xf32>
    %cst_172 = arith.constant dense<0.000000e+00> : vector<16x64xf32>
    %484 = tpu.matmul %481, %483, %cst_172 {dimension_numbers = #tpu.dot_dimension_numbers<[1], [0], [0], [1], [0, 0, 1, 1], [], []>} : vector<16x32xf32>, vector<32x64xf32>, vector<16x64xf32> -> vector<16x64xf32>
    %c1_173 = arith.constant 1 : index
    %c0_174 = arith.constant 0 : index
    %c0_175 = arith.constant 0 : index
    %485 = vector.load %arg12[%c1_173, %c0_174, %c0_175] : memref<2x1x64xf32, #tpu.memory_space<vmem>>, vector<1x1x64xf32>
    %486 = vector.shape_cast %485 : vector<1x1x64xf32> to vector<1x64xf32>
    %487 = vector.broadcast %486 : vector<1x64xf32> to vector<16x64xf32>
    %488 = arith.addf %484, %487 : vector<16x64xf32>
    %cst_176 = arith.constant 5.000000e-01 : f32
    %489 = vector.broadcast %cst_176 : f32 to vector<16x64xf32>
    %490 = arith.mulf %489, %488 : vector<16x64xf32>
    %cst_177 = arith.constant 4.471500e-02 : f32
    %491 = vector.broadcast %cst_177 : f32 to vector<16x64xf32>
    %492 = arith.mulf %491, %488 : vector<16x64xf32>
    %493 = arith.mulf %492, %488 : vector<16x64xf32>
    %494 = arith.mulf %493, %488 : vector<16x64xf32>
    %495 = arith.addf %488, %494 : vector<16x64xf32>
    %cst_178 = arith.constant 0.797884583 : f32
    %496 = vector.broadcast %cst_178 : f32 to vector<16x64xf32>
    %497 = arith.mulf %496, %495 : vector<16x64xf32>
    %498 = math.tanh %497 : vector<16x64xf32>
    %cst_179 = arith.constant 1.000000e+00 : f32
    %499 = vector.broadcast %cst_179 : f32 to vector<16x64xf32>
    %500 = arith.addf %499, %498 : vector<16x64xf32>
    %501 = arith.mulf %490, %500 : vector<16x64xf32>
    %c1_180 = arith.constant 1 : index
    %c0_181 = arith.constant 0 : index
    %c0_182 = arith.constant 0 : index
    %502 = vector.load %arg13[%c1_180, %c0_181, %c0_182] : memref<2x64x32xf32, #tpu.memory_space<vmem>>, vector<1x64x32xf32>
    %503 = vector.shape_cast %502 : vector<1x64x32xf32> to vector<64x32xf32>
    %cst_183 = arith.constant dense<0.000000e+00> : vector<16x32xf32>
    %504 = tpu.matmul %501, %503, %cst_183 {dimension_numbers = #tpu.dot_dimension_numbers<[1], [0], [0], [1], [0, 0, 1, 1], [], []>} : vector<16x64xf32>, vector<64x32xf32>, vector<16x32xf32> -> vector<16x32xf32>
    %c1_184 = arith.constant 1 : index
    %c0_185 = arith.constant 0 : index
    %c0_186 = arith.constant 0 : index
    %505 = vector.load %arg14[%c1_184, %c0_185, %c0_186] : memref<2x1x32xf32, #tpu.memory_space<vmem>>, vector<1x1x32xf32>
    %506 = vector.shape_cast %505 : vector<1x1x32xf32> to vector<1x32xf32>
    %507 = vector.broadcast %506 : vector<1x32xf32> to vector<16x32xf32>
    %508 = arith.addf %504, %507 : vector<16x32xf32>
    %509 = arith.addf %508, %481 : vector<16x32xf32>
    %c1_187 = arith.constant 1 : index
    %c0_188 = arith.constant 0 : index
    %c0_189 = arith.constant 0 : index
    %510 = vector.load %arg15[%c1_187, %c0_188, %c0_189] : memref<2x1x32xf32, #tpu.memory_space<vmem>>, vector<1x1x32xf32>
    %511 = vector.shape_cast %510 : vector<1x1x32xf32> to vector<1x32xf32>
    %c1_190 = arith.constant 1 : index
    %c0_191 = arith.constant 0 : index
    %c0_192 = arith.constant 0 : index
    %512 = vector.load %arg16[%c1_190, %c0_191, %c0_192] : memref<2x1x32xf32, #tpu.memory_space<vmem>>, vector<1x1x32xf32>
    %513 = vector.shape_cast %512 : vector<1x1x32xf32> to vector<1x32xf32>
    %cst_193 = arith.constant dense<0.000000e+00> : vector<16xf32>
    %514 = vector.multi_reduction <add>, %509, %cst_193 [1] : vector<16x32xf32> to vector<16xf32>
    %515 = vector.shape_cast %514 : vector<16xf32> to vector<16x1xf32>
    %cst_194 = arith.constant 3.200000e+01 : f32
    %516 = vector.broadcast %cst_194 : f32 to vector<16x1xf32>
    %517 = arith.divf %515, %516 : vector<16x1xf32>
    %518 = vector.broadcast %517 : vector<16x1xf32> to vector<16x32xf32>
    %519 = arith.subf %509, %518 : vector<16x32xf32>
    %520 = arith.mulf %519, %519 : vector<16x32xf32>
    %cst_195 = arith.constant dense<0.000000e+00> : vector<16xf32>
    %521 = vector.multi_reduction <add>, %520, %cst_195 [1] : vector<16x32xf32> to vector<16xf32>
    %522 = vector.shape_cast %521 : vector<16xf32> to vector<16x1xf32>
    %cst_196 = arith.constant 3.200000e+01 : f32
    %523 = vector.broadcast %cst_196 : f32 to vector<16x1xf32>
    %524 = arith.divf %522, %523 : vector<16x1xf32>
    %525 = vector.broadcast %517 : vector<16x1xf32> to vector<16x32xf32>
    %526 = arith.subf %509, %525 : vector<16x32xf32>
    %cst_197 = arith.constant 9.99999996E-13 : f32
    %527 = vector.broadcast %cst_197 : f32 to vector<16x1xf32>
    %528 = arith.addf %524, %527 : vector<16x1xf32>
    %529 = math.rsqrt %528 : vector<16x1xf32>
    %530 = vector.broadcast %529 : vector<16x1xf32> to vector<16x32xf32>
    %531 = arith.mulf %526, %530 : vector<16x32xf32>
    %532 = vector.broadcast %511 : vector<1x32xf32> to vector<16x32xf32>
    %533 = arith.mulf %531, %532 : vector<16x32xf32>
    %534 = vector.broadcast %513 : vector<1x32xf32> to vector<16x32xf32>
    %535 = arith.addf %533, %534 : vector<16x32xf32>
    %536 = vector.extract_strided_slice %535 {offsets = [0, 0], sizes = [1, 32], strides = [1, 1]} : vector<16x32xf32> to vector<1x32xf32>
    %537 = vector.extract_strided_slice %535 {offsets = [8, 0], sizes = [1, 32], strides = [1, 1]} : vector<16x32xf32> to vector<1x32xf32>
    %538 = tpu.concatenate %536, %537 in 0 : vector<1x32xf32>, vector<1x32xf32> -> vector<2x32xf32>
    %c0_198 = arith.constant 0 : index
    %c0_199 = arith.constant 0 : index
    %539 = vector.load %arg17[%c0_198, %c0_199] : memref<32x32xf32, #tpu.memory_space<vmem>>, vector<32x32xf32>
    %cst_200 = arith.constant dense<0.000000e+00> : vector<2x32xf32>
    %540 = tpu.matmul %538, %539, %cst_200 {dimension_numbers = #tpu.dot_dimension_numbers<[1], [0], [0], [1], [0, 0, 1, 1], [], []>} : vector<2x32xf32>, vector<32x32xf32>, vector<2x32xf32> -> vector<2x32xf32>
    %c0_201 = arith.constant 0 : index
    %c0_202 = arith.constant 0 : index
    %541 = vector.load %arg18[%c0_201, %c0_202] : memref<1x32xf32, #tpu.memory_space<vmem>>, vector<1x32xf32>
    %542 = vector.broadcast %541 : vector<1x32xf32> to vector<2x32xf32>
    %543 = arith.addf %540, %542 : vector<2x32xf32>
    %544 = math.tanh %543 : vector<2x32xf32>
    %c0_203 = arith.constant 0 : index
    %c0_204 = arith.constant 0 : index
    %545 = vector.load %arg19[%c0_203, %c0_204] : memref<32x128xf32, #tpu.memory_space<vmem>>, vector<32x128xf32>
    %cst_205 = arith.constant dense<0.000000e+00> : vector<2x128xf32>
    %546 = tpu.matmul %544, %545, %cst_205 {dimension_numbers = #tpu.dot_dimension_numbers<[1], [0], [0], [1], [0, 0, 1, 1], [], []>} : vector<2x32xf32>, vector<32x128xf32>, vector<2x128xf32> -> vector<2x128xf32>
    %c0_206 = arith.constant 0 : index
    %c0_207 = arith.constant 0 : index
    %547 = vector.load %arg20[%c0_206, %c0_207] : memref<1x128xf32, #tpu.memory_space<vmem>>, vector<1x128xf32>
    %548 = vector.broadcast %547 : vector<1x128xf32> to vector<2x128xf32>
    %549 = arith.addf %546, %548 : vector<2x128xf32>
    %c0_208 = arith.constant 0 : index
    %c0_209 = arith.constant 0 : index
    %550 = vector.load %arg21[%c0_208, %c0_209] : memref<2x128xf32, #tpu.memory_space<vmem>>, vector<2x128xf32>
    tpu.vector_store %arg21[%c0_208, %c0_209], %549 {strides = array<i32>} : memref<2x128xf32, #tpu.memory_space<vmem>>, vector<2x128xf32>,
    return
  }
  func.func @transform_0(%arg0: i32) -> (i32, i32) {
    %c0_i32 = arith.constant 0 : i32
    %c0_i32_0 = arith.constant 0 : i32
    %c0_i32_1 = arith.constant 0 : i32
    return %c0_i32, %c0_i32_0 : i32, i32
  }
  func.func @transform_1(%arg0: i32) -> (i32, i32) {
    %c0_i32 = arith.constant 0 : i32
    %c0_i32_0 = arith.constant 0 : i32
    %c0_i32_1 = arith.constant 0 : i32
    return %c0_i32, %c0_i32_0 : i32, i32
  }
  func.func @transform_2(%arg0: i32) -> (i32, i32) {
    %c0_i32 = arith.constant 0 : i32
    %c0_i32_0 = arith.constant 0 : i32
    %c0_i32_1 = arith.constant 0 : i32
    return %c0_i32, %c0_i32_0 : i32, i32
  }
  func.func @transform_3(%arg0: i32) -> (i32, i32) {
    %c0_i32 = arith.constant 0 : i32
    %c0_i32_0 = arith.constant 0 : i32
    %c0_i32_1 = arith.constant 0 : i32
    return %c0_i32, %c0_i32_0 : i32, i32
  }
  func.func @transform_4(%arg0: i32) -> (i32, i32, i32) {
    %c0_i32 = arith.constant 0 : i32
    %c0_i32_0 = arith.constant 0 : i32
    %c0_i32_1 = arith.constant 0 : i32
    %c0_i32_2 = arith.constant 0 : i32
    return %c0_i32, %c0_i32_0, %c0_i32_1 : i32, i32, i32
  }
  func.func @transform_5(%arg0: i32) -> (i32, i32, i32) {
    %c0_i32 = arith.constant 0 : i32
    %c0_i32_0 = arith.constant 0 : i32
    %c0_i32_1 = arith.constant 0 : i32
    %c0_i32_2 = arith.constant 0 : i32
    return %c0_i32, %c0_i32_0, %c0_i32_1 : i32, i32, i32
  }
  func.func @transform_6(%arg0: i32) -> (i32, i32, i32) {
    %c0_i32 = arith.constant 0 : i32
    %c0_i32_0 = arith.constant 0 : i32
    %c0_i32_1 = arith.constant 0 : i32
    %c0_i32_2 = arith.constant 0 : i32
    return %c0_i32, %c0_i32_0, %c0_i32_1 : i32, i32, i32
  }
  func.func @transform_7(%arg0: i32) -> (i32, i32, i32) {
    %c0_i32 = arith.constant 0 : i32
    %c0_i32_0 = arith.constant 0 : i32
    %c0_i32_1 = arith.constant 0 : i32
    %c0_i32_2 = arith.constant 0 : i32
    return %c0_i32, %c0_i32_0, %c0_i32_1 : i32, i32, i32
  }
  func.func @transform_8(%arg0: i32) -> (i32, i32, i32) {
    %c0_i32 = arith.constant 0 : i32
    %c0_i32_0 = arith.constant 0 : i32
    %c0_i32_1 = arith.constant 0 : i32
    %c0_i32_2 = arith.constant 0 : i32
    return %c0_i32, %c0_i32_0, %c0_i32_1 : i32, i32, i32
  }
  func.func @transform_9(%arg0: i32) -> (i32, i32, i32) {
    %c0_i32 = arith.constant 0 : i32
    %c0_i32_0 = arith.constant 0 : i32
    %c0_i32_1 = arith.constant 0 : i32
    %c0_i32_2 = arith.constant 0 : i32
    return %c0_i32, %c0_i32_0, %c0_i32_1 : i32, i32, i32
  }
  func.func @transform_10(%arg0: i32) -> (i32, i32, i32) {
    %c0_i32 = arith.constant 0 : i32
    %c0_i32_0 = arith.constant 0 : i32
    %c0_i32_1 = arith.constant 0 : i32
    %c0_i32_2 = arith.constant 0 : i32
    return %c0_i32, %c0_i32_0, %c0_i32_1 : i32, i32, i32
  }
  func.func @transform_11(%arg0: i32) -> (i32, i32, i32) {
    %c0_i32 = arith.constant 0 : i32
    %c0_i32_0 = arith.constant 0 : i32
    %c0_i32_1 = arith.constant 0 : i32
    %c0_i32_2 = arith.constant 0 : i32
    return %c0_i32, %c0_i32_0, %c0_i32_1 : i32, i32, i32
  }
  func.func @transform_12(%arg0: i32) -> (i32, i32, i32) {
    %c0_i32 = arith.constant 0 : i32
    %c0_i32_0 = arith.constant 0 : i32
    %c0_i32_1 = arith.constant 0 : i32
    %c0_i32_2 = arith.constant 0 : i32
    return %c0_i32, %c0_i32_0, %c0_i32_1 : i32, i32, i32
  }
  func.func @transform_13(%arg0: i32) -> (i32, i32, i32) {
    %c0_i32 = arith.constant 0 : i32
    %c0_i32_0 = arith.constant 0 : i32
    %c0_i32_1 = arith.constant 0 : i32
    %c0_i32_2 = arith.constant 0 : i32
    return %c0_i32, %c0_i32_0, %c0_i32_1 : i32, i32, i32
  }
  func.func @transform_14(%arg0: i32) -> (i32, i32, i32) {
    %c0_i32 = arith.constant 0 : i32
    %c0_i32_0 = arith.constant 0 : i32
    %c0_i32_1 = arith.constant 0 : i32
    %c0_i32_2 = arith.constant 0 : i32
    return %c0_i32, %c0_i32_0, %c0_i32_1 : i32, i32, i32
  }
  func.func @transform_15(%arg0: i32) -> (i32, i32, i32) {
    %c0_i32 = arith.constant 0 : i32
    %c0_i32_0 = arith.constant 0 : i32
    %c0_i32_1 = arith.constant 0 : i32
    %c0_i32_2 = arith.constant 0 : i32
    return %c0_i32, %c0_i32_0, %c0_i32_1 : i32, i32, i32
  }
  func.func @transform_16(%arg0: i32) -> (i32, i32) {
    %c0_i32 = arith.constant 0 : i32
    %c0_i32_0 = arith.constant 0 : i32
    %c0_i32_1 = arith.constant 0 : i32
    return %c0_i32, %c0_i32_0 : i32, i32
  }
  func.func @transform_17(%arg0: i32) -> (i32, i32) {
    %c0_i32 = arith.constant 0 : i32
    %c0_i32_0 = arith.constant 0 : i32
    %c0_i32_1 = arith.constant 0 : i32
    return %c0_i32, %c0_i32_0 : i32, i32
  }
  func.func @transform_18(%arg0: i32) -> (i32, i32) {
    %c0_i32 = arith.constant 0 : i32
    %c0_i32_0 = arith.constant 0 : i32
    %c0_i32_1 = arith.constant 0 : i32
    return %c0_i32, %c0_i32_0 : i32, i32
  }
  func.func @transform_19(%arg0: i32) -> (i32, i32) {
    %c0_i32 = arith.constant 0 : i32
    %c0_i32_0 = arith.constant 0 : i32
    %c0_i32_1 = arith.constant 0 : i32
    return %c0_i32, %c0_i32_0 : i32, i32
  }
  func.func @transform_20(%arg0: i32) -> (i32, i32) {
    %c0_i32 = arith.constant 0 : i32
    %c0_i32_0 = arith.constant 0 : i32
    %c0_i32_1 = arith.constant 0 : i32
    return %c0_i32, %c0_i32_0 : i32, i32
  }
}

</mosaic_0001>

<bundles_post_ra>
// kernel: tpu_custom_call.1
= control target key start
LH: loop header
LB: loop body
LE: loop exit
PB: predicated region body
PF: predicated region fallthrough
CT: control target
= control target key end

     0   :  { %s6004_s0 = inlined_call_operand.hbm [shape: f32[16,32], index: 0, kind: input, shape index: {}]   ;;  %s6005_s1 = inlined_call_operand.hbm [shape: f32[2,8], index: 1, kind: input, shape index: {}]   ;;  %s6006_s2 = inlined_call_operand.hbm [shape: f32[1,32], index: 2, kind: input, shape index: {}]   ;;  %s6007_s3 = inlined_call_operand.hbm [shape: f32[1,32], index: 3, kind: input, shape index: {}]   ;;  %s6008_s4 = inlined_call_operand.vmem [shape: f32[2,32,96], index: 4, kind: input, shape index: {}]   ;;  %s6009_s5 = inlined_call_operand.hbm [shape: f32[2,1,96], index: 5, kind: input, shape index: {}]   ;;  %s6010_s6 = inlined_call_operand.vmem [shape: f32[2,32,32], index: 6, kind: input, shape index: {}]   ;;  %s6011_s7 = inlined_call_operand.hbm [shape: f32[2,1,32], index: 7, kind: input, shape index: {}]   ;;  %s6012_s8 = inlined_call_operand.hbm [shape: f32[2,1,32], index: 8, kind: input, shape index: {}]   ;;  %s6013_s9 = inlined_call_operand.hbm [shape: f32[2,1,32], index: 9, kind: input, shape index: {}]   ;;  %s6014_s10 = inlined_call_operand.vmem [shape: f32[2,32,64], index: 10, kind: input, shape index: {}]   ;;  %s6015_s11 = inlined_call_operand.hbm [shape: f32[2,1,64], index: 11, kind: input, shape index: {}]   ;;  %s6016_s12 = inlined_call_operand.vmem [shape: f32[2,64,32], index: 12, kind: input, shape index: {}]   ;;  %s6017_s13 = inlined_call_operand.hbm [shape: f32[2,1,32], index: 13, kind: input, shape index: {}]   ;;  %s6018_s14 = inlined_call_operand.hbm [shape: f32[2,1,32], index: 14, kind: input, shape index: {}]   ;;  %s6019_s15 = inlined_call_operand.hbm [shape: f32[2,1,32], index: 15, kind: input, shape index: {}]   ;;  %s6020_s16 = inlined_call_operand.hbm [shape: f32[32,32], index: 16, kind: input, shape index: {}]   ;;  %s6021_s17 = inlined_call_operand.hbm [shape: f32[1,32], index: 17, kind: input, shape index: {}]   ;;  %s6022_s18 = inlined_call_operand.vmem [shape: f32[32,128], index: 18, kind: input, shape index: {}]   ;;  %s6023_s19 = inlined_call_operand.hbm [shape: f32[1,128], index: 19, kind: input, shape index: {}]   ;;  %s6024_s20 = inlined_call_operand.hbm [shape: f32[2,128], index: 20, kind: output, shape index: {}]  }
   0x1   :  { %6026 = sst [smem:[#allocation36_spill]] %s6004_s0 }
   0x2   :  { %6027 = sst [smem:[#allocation37_spill]] %s6005_s1 }
   0x3   :  { %6028 = sst [smem:[#allocation38_spill]] %s6006_s2 }
   0x4   :  { %6029 = sst [smem:[#allocation39_spill]] %s6007_s3 }
   0x5   :  { %6030 = sst [smem:[#allocation40_spill]] %s6008_s4 }
   0x6   :  { %25 = vsyncpa [#allocation3], 0 }
   0x7   :  { %26 = vsyncpa [#allocation6], 0 }
   0x8   :  { %27 = vsyncpa [#allocation9], 0 }
   0x9   :  { %28 = vsyncpa [#allocation12], 0 }
   0xa   :  { %29 = vsyncpa [#allocation15], 0 }
   0xb   :  { %30 = vsyncpa [#allocation18], 0 }
   0xc   :  { %31 = vsyncpa [#allocation21], 0 }
   0xd   :  { %32 = vsyncpa [#allocation24], 0 }
   0xe   :  { %33 = vsyncpa [#allocation4], 0  ;;  %s5209_s1 = smov [#allocation5]   ;;  %s5210_s23 = smov [#allocation8]  }
   0xf   :  { %s52_s22 = sshll.u32 %s5209_s1, 4  ;;  %s72_s24 = sshll.u32 %s5210_s23, 4  ;;  %s53_s22 = int_to_ptr.vmem [resolvable:$true] %s52_s22  ;;  %s73_s24 = int_to_ptr.vmem [resolvable:$true] %s72_s24 }
  0x10   :  { %s4879_s2 = scalar_lea.vmem %s53_s22, 32  ;;  %p4884_p1 = scmp.lt.s32.totalorder %s53_s22, %s53_s22 }
  0x11   :  { %p4880_p0 = scmp.ne.s32.totalorder %s53_s22, %s4879_s2  ;;  %p4885_p2 = scmp.lt.s32.totalorder %s4879_s2, %s4879_s2 }
  0x13   :  { %p4886_p3 = por %p4885_p2, %p4884_p1 }
  0x15   :  { %p4887_p4 = pnand %p4886_p3, %p4880_p0 }
  0x17   :  { %4890 = shalt.err (!%p4887_p4)
}
  0x18   :  { %s6031_s26 = sld [smem:[#allocation37_spill]]  ;;  %s4899_s27 = scalar_lea.vmem %s73_s24, 16 }
  0x19   :  { %p4900_p5 = scmp.ne.s32.totalorder %s73_s24, %s4899_s27  ;;  %s4903_s28 = scalar_lea.vmem %s73_s24, 32 }
  0x1a   :  { %p4904_p6 = scmp.lt.s32.totalorder %s73_s24, %s73_s24  ;;  %p4905_p7 = scmp.lt.s32.totalorder %s4903_s28, %s4899_s27 }
  0x1c   :  { %p4906_p8 = por %p4905_p7, %p4904_p6 }
  0x1e   :  { %55 = dma.hbm_to_vmem [thread:$0]  %s6031_s26, 32, %s53_s22, [#allocation6]  }
  0x1f   :  { %p4907_p9 = pnand %p4906_p8, %p4900_p5 }
  0x21   :  { %4910 = shalt.err (!%p4907_p9)
}
  0x22   :  { %s6032_s30 = sld [smem:[#allocation39_spill]]  ;;  %s5211_s0 = smov [#allocation11]  }
  0x23   :  { %s97_s21 = sshll.u32 %s5211_s0, 4  ;;  %s5212_s1 = smov [#allocation14]   ;;  %s98_s21 = int_to_ptr.vmem [resolvable:$true] %s97_s21 }
  0x24   :  { %s121_s23 = sshll.u32 %s5212_s1, 4  ;;  %s4919_s2 = scalar_lea.vmem %s98_s21, 32  ;;  %s122_s23 = int_to_ptr.vmem [resolvable:$true] %s121_s23 }
  0x25   :  { %p4920_p10 = scmp.ne.s32.totalorder %s98_s21, %s4919_s2  ;;  %p4924_p11 = scmp.lt.s32.totalorder %s98_s21, %s98_s21 }
  0x26   :  { %p4925_p12 = scmp.lt.s32.totalorder %s4919_s2, %s4919_s2 }
  0x28   :  { %75 = dma.hbm_to_vmem [thread:$0]  %s6032_s30, 16, %s73_s24, [#allocation9]  }
  0x29   :  { %p4926_p13 = por %p4925_p12, %p4924_p11 }
  0x2b   :  { %p4927_p0 = pnand %p4926_p13, %p4920_p10 }
  0x2d   :  { %4930 = shalt.err (!%p4927_p0)
}
  0x2e   :  { %s5213_s22 = smov 16   ;;  %s5214_s25 = smov 1  }
  0x2f   :  { %103 = dma.hbm_to_vmem [thread:$0]  %s6011_s7, 32, %s98_s21, [#allocation12], %s5213_s22, %s5213_s22, %s5214_s25  }
  0x30   :  { %s4939_s26 = scalar_lea.vmem %s122_s23, 32  ;;  %p4944_p2 = scmp.lt.s32.totalorder %s122_s23, %s122_s23 }
  0x31   :  { %p4940_p1 = scmp.ne.s32.totalorder %s122_s23, %s4939_s26  ;;  %p4945_p3 = scmp.lt.s32.totalorder %s4939_s26, %s4939_s26 }
  0x33   :  { %p4946_p4 = por %p4945_p3, %p4944_p2 }
  0x35   :  { %p4947_p5 = pnand %p4946_p4, %p4940_p1 }
  0x37   :  { %4950 = shalt.err (!%p4947_p5)
}
  0x38   :  { %127 = dma.hbm_to_vmem [thread:$0]  %s6013_s9, 32, %s122_s23, [#allocation15], %s5213_s22, %s5213_s22, %s5214_s25  }
  0x39   :  { %s5215_s4 = smov [#allocation17]   ;;  %s5216_s30 = smov [#allocation20]  }
  0x3a   :  { %s149_s29 = sshll.u32 %s5215_s4, 4  ;;  %s173_s0 = sshll.u32 %s5216_s30, 4  ;;  %s150_s29 = int_to_ptr.vmem [resolvable:$true] %s149_s29  ;;  %s174_s0 = int_to_ptr.vmem [resolvable:$true] %s173_s0 }
  0x3b   :  { %s4959_s7 = scalar_lea.vmem %s150_s29, 32  ;;  %p4964_p7 = scmp.lt.s32.totalorder %s150_s29, %s150_s29 }
  0x3c   :  { %p4960_p6 = scmp.ne.s32.totalorder %s150_s29, %s4959_s7  ;;  %p4965_p8 = scmp.lt.s32.totalorder %s4959_s7, %s4959_s7 }
  0x3e   :  { %p4966_p9 = por %p4965_p8, %p4964_p7 }
  0x40   :  { %p4967_p10 = pnand %p4966_p9, %p4960_p6 }
  0x42   :  { %4970 = shalt.err (!%p4967_p10)
}
  0x43   :  { %155 = dma.hbm_to_vmem [thread:$0]  %s6017_s13, 32, %s150_s29, [#allocation18], %s5213_s22, %s5213_s22, %s5214_s25  }
  0x44   :  { %s4979_s9 = scalar_lea.vmem %s174_s0, 32  ;;  %p4984_p12 = scmp.lt.s32.totalorder %s174_s0, %s174_s0 }
  0x45   :  { %p4980_p11 = scmp.ne.s32.totalorder %s174_s0, %s4979_s9  ;;  %p4985_p13 = scmp.lt.s32.totalorder %s4979_s9, %s4979_s9 }
  0x47   :  { %p4986_p0 = por %p4985_p13, %p4984_p12 }
  0x49   :  { %p4987_p1 = pnand %p4986_p0, %p4980_p11 }
  0x4b   :  { %4990 = shalt.err (!%p4987_p1)
}
  0x4c   :  { %179 = dma.hbm_to_vmem [thread:$0]  %s6019_s15, 32, %s174_s0, [#allocation21], %s5213_s22, %s5213_s22, %s5214_s25  }
  0x4d   :  { %s5217_s3 = smov [#allocation23]   ;;  %s5218_s26 = smov [#allocation2]  }
  0x4e   :  { %s198_s24 = sshll.u32 %s5217_s3, 4  ;;  %s39_s27 = sshll.u32 %s5218_s26, 4  ;;  %s199_s24 = int_to_ptr.vmem [resolvable:$true] %s198_s24  ;;  %s40_s27 = int_to_ptr.vmem [resolvable:$true] %s39_s27 }
  0x4f   :  { %s4999_s13 = scalar_lea.vmem %s199_s24, 16  ;;  %s5003_s28 = scalar_lea.vmem %s199_s24, 32 }
  0x50   :  { %p5000_p2 = scmp.ne.s32.totalorder %s199_s24, %s4999_s13  ;;  %p5004_p3 = scmp.lt.s32.totalorder %s199_s24, %s199_s24 }
  0x51   :  { %p5005_p4 = scmp.lt.s32.totalorder %s5003_s28, %s4999_s13 }
  0x53   :  { %p5006_p5 = por %p5005_p4, %p5004_p3 }
  0x55   :  { %p5007_p6 = pnand %p5006_p5, %p5000_p2 }
  0x57   :  { %5010 = shalt.err (!%p5007_p6)
}
  0x58   :  { %201 = dma.hbm_to_vmem [thread:$0]  %s6021_s17, 16, %s199_s24, [#allocation24]  }
  0x59   :  { %s5019_s30 = scalar_lea.vmem %s40_s27, 256  ;;  %p5024_p8 = scmp.lt.s32.totalorder %s40_s27, %s40_s27 }
  0x5a   :  { %p5020_p7 = scmp.ne.s32.totalorder %s40_s27, %s5019_s30  ;;  %p5025_p9 = scmp.lt.s32.totalorder %s5019_s30, %s5019_s30 }
  0x5c   :  { %p5026_p10 = por %p5025_p9, %p5024_p8 }
  0x5e   :  { %p5027_p11 = pnand %p5026_p10, %p5020_p7 }
  0x60   :  { %5030 = shalt.err (!%p5027_p11)
}
  0x61   :  { %s5219_s15 = smov 128   ;;  %s5220_s0 = smov 8  }
  0x62   :  { %s6033_s1 = sld [smem:[#allocation36_spill]]  ;;  %s5221_s9 = smov [#allocation7]  }
  0x63   :  { %s62_s23 = sshll.u32 %s5221_s9, 4  ;;  %s5222_s2 = smov [#allocation10]   ;;  %s63_s23 = int_to_ptr.vmem [resolvable:$true] %s62_s23 }
  0x64   :  { %s83_s17 = sshll.u32 %s5222_s2, 4  ;;  %s5039_s3 = scalar_lea.vmem %s63_s23, 16  ;;  %s84_s17 = int_to_ptr.vmem [resolvable:$true] %s83_s17 }
  0x65   :  { %p5040_p12 = scmp.ne.s32.totalorder %s63_s23, %s5039_s3  ;;  %s5043_s24 = scalar_lea.vmem %s63_s23, 32 }
  0x66   :  { %p5044_p13 = scmp.lt.s32.totalorder %s63_s23, %s63_s23  ;;  %p5045_p0 = scmp.lt.s32.totalorder %s5043_s24, %s5039_s3 }
  0x68   :  { %45 = dma.hbm_to_vmem [thread:$0]  %s6033_s1, 256, %s40_s27, [#allocation3], %s5219_s15, %s5219_s15, %s5220_s0  }
  0x69   :  { %p5046_p1 = por %p5045_p0, %p5044_p13 }
  0x6b   :  { %p5047_p2 = pnand %p5046_p1, %p5040_p12 }
  0x6d   :  { %5050 = shalt.err (!%p5047_p2)
}
  0x6e   :  { %s6034_s28 = sld [smem:[#allocation38_spill]]  ;;  %s5059_s4 = scalar_lea.vmem %s84_s17, 32 }
  0x6f   :  { %p5060_p3 = scmp.ne.s32.totalorder %s84_s17, %s5059_s4  ;;  %p5064_p4 = scmp.lt.s32.totalorder %s84_s17, %s84_s17 }
  0x70   :  { %p5065_p5 = scmp.lt.s32.totalorder %s5059_s4, %s5059_s4 }
  0x72   :  { %p5066_p6 = por %p5065_p5, %p5064_p4 }
  0x74   :  { %65 = dma.hbm_to_vmem [thread:$0]  %s6034_s28, 16, %s63_s23, [#allocation6]  }
  0x75   :  { %p5067_p7 = pnand %p5066_p6, %p5060_p3 }
  0x77   :  { %5070 = shalt.err (!%p5067_p7)
}
  0x78   :  { %89 = dma.hbm_to_vmem [thread:$0]  %s6009_s5, 32, %s84_s17, [#allocation9], %s5213_s22, %s5213_s22, %s5214_s25  }
  0x79   :  { %s5223_s30 = smov [#allocation13]   ;;  %s5224_s21 = smov [#allocation16]  }
  0x7a   :  { %s109_s7 = sshll.u32 %s5223_s30, 4  ;;  %s135_s1 = sshll.u32 %s5224_s21, 4  ;;  %s110_s7 = int_to_ptr.vmem [resolvable:$true] %s109_s7  ;;  %s136_s1 = int_to_ptr.vmem [resolvable:$true] %s135_s1 }
  0x7b   :  { %s5079_s9 = scalar_lea.vmem %s110_s7, 32  ;;  %p5084_p9 = scmp.lt.s32.totalorder %s110_s7, %s110_s7 }
  0x7c   :  { %p5080_p8 = scmp.ne.s32.totalorder %s110_s7, %s5079_s9  ;;  %p5085_p10 = scmp.lt.s32.totalorder %s5079_s9, %s5079_s9 }
  0x7e   :  { %p5086_p11 = por %p5085_p10, %p5084_p9 }
  0x80   :  { %p5087_p12 = pnand %p5086_p11, %p5080_p8 }
  0x82   :  { %5090 = shalt.err (!%p5087_p12)
}
  0x83   :  { %115 = dma.hbm_to_vmem [thread:$0]  %s6012_s8, 32, %s110_s7, [#allocation12], %s5213_s22, %s5213_s22, %s5214_s25  }
  0x84   :  { %s5099_s5 = scalar_lea.vmem %s136_s1, 32  ;;  %p5104_p0 = scmp.lt.s32.totalorder %s136_s1, %s136_s1 }
  0x85   :  { %p5100_p13 = scmp.ne.s32.totalorder %s136_s1, %s5099_s5  ;;  %p5105_p1 = scmp.lt.s32.totalorder %s5099_s5, %s5099_s5 }
  0x87   :  { %p5106_p2 = por %p5105_p1, %p5104_p0 }
  0x89   :  { %p5107_p3 = pnand %p5106_p2, %p5100_p13 }
  0x8b   :  { %5110 = shalt.err (!%p5107_p3)
}
  0x8c   :  { %141 = dma.hbm_to_vmem [thread:$0]  %s6015_s11, 32, %s136_s1, [#allocation15], %s5213_s22, %s5213_s22, %s5214_s25  }
  0x8d   :  { %s5225_s24 = smov [#allocation19]   ;;  %s5226_s13 = smov [#allocation22]  }
  0x8e   :  { %s161_s26 = sshll.u32 %s5225_s24, 4  ;;  %s185_s28 = sshll.u32 %s5226_s13, 4  ;;  %s162_s26 = int_to_ptr.vmem [resolvable:$true] %s161_s26  ;;  %s186_s28 = int_to_ptr.vmem [resolvable:$true] %s185_s28 }
  0x8f   :  { %s5119_s8 = scalar_lea.vmem %s162_s26, 32  ;;  %p5124_p5 = scmp.lt.s32.totalorder %s162_s26, %s162_s26 }
  0x90   :  { %p5120_p4 = scmp.ne.s32.totalorder %s162_s26, %s5119_s8  ;;  %p5125_p6 = scmp.lt.s32.totalorder %s5119_s8, %s5119_s8 }
  0x92   :  { %p5126_p7 = por %p5125_p6, %p5124_p5 }
  0x94   :  { %p5127_p8 = pnand %p5126_p7, %p5120_p4 }
  0x96   :  { %5130 = shalt.err (!%p5127_p8)
}
  0x97   :  { %167 = dma.hbm_to_vmem [thread:$0]  %s6018_s14, 32, %s162_s26, [#allocation18], %s5213_s22, %s5213_s22, %s5214_s25  }
  0x98   :  { %s5139_s11 = scalar_lea.vmem %s186_s28, 512  ;;  %p5144_p10 = scmp.lt.s32.totalorder %s186_s28, %s186_s28 }
  0x99   :  { %p5140_p9 = scmp.ne.s32.totalorder %s186_s28, %s5139_s11  ;;  %p5145_p11 = scmp.lt.s32.totalorder %s5139_s11, %s5139_s11 }
  0x9b   :  { %p5146_p12 = por %p5145_p11, %p5144_p10 }
  0x9d   :  { %p5147_p13 = pnand %p5146_p12, %p5140_p9 }
  0x9f   :  { %5150 = shalt.err (!%p5147_p13)
}
  0xa0   :  { %191 = dma.hbm_to_vmem [thread:$0]  %s6020_s16, 512, %s186_s28, [#allocation21], %s5219_s15, %s5219_s15, %s5220_s0  }
  0xa1   :  { %s5227_s7 = smov [#allocation25]  }
  0xa2   :  { %s210_s21 = sshll.u32 %s5227_s7, 4  ;;  %s211_s21 = int_to_ptr.vmem [resolvable:$true] %s210_s21 }
  0xa3   :  { %s5159_s1 = scalar_lea.vmem %s211_s21, 16  ;;  %s5163_s14 = scalar_lea.vmem %s211_s21, 32 }
  0xa4   :  { %p5160_p0 = scmp.ne.s32.totalorder %s211_s21, %s5159_s1  ;;  %p5164_p1 = scmp.lt.s32.totalorder %s211_s21, %s211_s21 }
  0xa5   :  { %p5165_p2 = scmp.lt.s32.totalorder %s5163_s14, %s5159_s1 }
  0xa7   :  { %p5166_p3 = por %p5165_p2, %p5164_p1 }
  0xa9   :  { %p5167_p4 = pnand %p5166_p3, %p5160_p0 }
  0xab   :  { %5170 = shalt.err (!%p5167_p4)
}
  0xac   :  { %213 = dma.hbm_to_vmem [thread:$0]  %s6023_s19, 16, %s211_s21, [#allocation24]  }
  0xad   :  { %5191 = dma.done.wait [#allocation3], 256  }
  0xae   :  { %5192 = vsyncadd [#allocation3], 4294967040 }
  0xaf   :  { %5193 = dma.done.wait [#allocation6], 48  }
  0xb0   :  { %5194 = vsyncadd [#allocation6], 4294967248 }
  0xb1   :  { %5195 = dma.done.wait [#allocation9], 48  }
  0xb2   :  { %5196 = vsyncadd [#allocation9], 4294967248 }
  0xb3   :  { %5197 = dma.done.wait [#allocation12], 64  }
  0xb4   :  { %5198 = vsyncadd [#allocation12], 4294967232 }
  0xb5   :  { %5199 = dma.done.wait [#allocation15], 64  }
  0xb6   :  { %5200 = vsyncadd [#allocation15], 4294967232 }
  0xb7   :  { %5201 = dma.done.wait [#allocation18], 64  }
  0xb8   :  { %5202 = vsyncadd [#allocation18], 4294967232 }
  0xb9   :  { %5203 = dma.done.wait [#allocation21], 544  }
  0xba   :  { %5204 = vsyncadd [#allocation21], 4294966752 }
  0xbb   :  { %5205 = dma.done.wait [#allocation24], 32  }
  0xbc   :  { %5206 = vsyncadd [#allocation24], 4294967264  ;;  %vm263_vm0 = vcmask 261120   ;;  %v259_v0 = vld [vmem:[#allocation2] sm:$0xff]  ;;  %v260_v1 = vld [vmem:[#allocation2 + $0x8] sm:$0xff]  ;;  %s6035_s15 = sld [smem:[#allocation40_spill]]  ;;  %v479_v54 = vlaneseq }
  0xbd   :  { %v264_v2 = vsel %vm263_vm0, %v259_v0, 0.0  ;;  %v267_v3 = vsel %vm263_vm0, %v260_v1, 0.0  ;;  %v4221_v25 = vld [vmem:[#allocation7] ss:$0 sm:$0xff]  ;;  %v4222_v27 = vld [vmem:[#allocation8] ss:$0 sm:$0xff] }
  0xbe   :  { %265 = vadd.xlane.f32.xlu0 %v264_v2  ;;  %v5228_v34 = vmov 0.0   ;;  %vm5229_vm1 = vmmov 0   ;;  %v4223_v36 = vld [vmem:[#allocation10] ss:$0 sm:$0xff]  ;;  %s5230_s26 = smov 88   ;;  %s5231_s13 = smov 96  }
  0xbf   :  { %4468 = vmatprep.subr.mxu1 %v5228_v34  ;;  %4470 = vmatprep.mubr.msk.f32.mxu1 %vm5229_vm1, %v5228_v34  ;;  %s5232_s28 = smov 120   ;;  %s5233_s8 = smov 112   ;;  %vm403_vm2 = vcmask 64512   ;;  %v480_v55 = vshrl.u32 %v479_v54, 7  ;;  %v307_v57 = vld [vmem:[#allocation5] sm:$0x3] }
  0xc0   :  { %s5234_s4 = smov 80   ;;  %s5235_s27 = smov 104   ;;  %vm1085_vm3 = vcmask 130048   ;;  %vm1087_vm4 = vcmask 195584   ;;  %vm2038_vm5 = vcmask 523264   ;;  %vm4027_vm6 = vcmask 1040384  }
  0xc1   :  { %s5236_s11 = smov 72   ;;  %v481_v56 = vsub.s32 0, %v480_v55  ;;  %s5237_s29 = smov 64  }
  0xc2   :  { %268 = vadd.xlane.f32.xlu0 %v267_v3  ;;  %v311_v14 = vld [vmem:[%s6035_s15 + $0x18] sm:$0xff]  ;;  %v310_v15 = vld [vmem:[%s6035_s15 + $0x10] sm:$0xff]  ;;  %v309_v16 = vld [vmem:[%s6035_s15 + $0x8] sm:$0xff]  ;;  %s5238_s30 = smov 48   ;;  %s5239_s7 = smov 40  }
  0xc3   :  { %4457 = vmatprep.subr.mxu0 %v311_v14  ;;  %v308_v17 = vld [vmem:[%s6035_s15] sm:$0xff]  ;;  %v5524_v58 = vrot.slane %v307_v57, %v481_v56  ;;  %s5240_s21 = smov 56   ;;  %s5241_s5 = smov 24  }
  0xc4   :  { %4458 = vmatpush3.msra.mxu0 %v311_v14 }
  0xc5   :  { %4459 = vmatprep.subr.mxu0 %v310_v15 }
  0xc6   :  { %4460 = vmatpush3.msra.mxu0 %v310_v15 }
  0xc7   :  { %4461 = vmatprep.subr.mxu0 %v309_v16 }
  0xc8   :  { %4462 = vmatpush3.msra.mxu0 %v309_v16 }
  0xc9   :  { %4463 = vmatprep.subr.mxu0 %v308_v17 }
  0xca   :  { %4464 = vmatpush3.msra.mxu0 %v308_v17 }
  0xcb   :  { %4478 = vmatprep.subr.mxu0 %v5228_v34 }
 0x147   :  { %v266_v4 = vpop.xlane.xlu0 %265 }
 0x148   :  { %v271_v5 = vmul.f32 0.03125, %v266_v4 }
 0x14a   :  { %v273_v6 = vsub.f32 %v259_v0, %v271_v5 }
 0x14b   :  { %v269_v7 = vpop.xlane.xlu0 %268 }
 0x14c   :  { %v272_v8 = vmul.f32 0.03125, %v269_v7  ;;  %v275_v9 = vmul.f32 %v273_v6, %v273_v6 }
 0x14e   :  { %v274_v10 = vsub.f32 %v260_v1, %v272_v8  ;;  %v277_v11 = vsel %vm263_vm0, %v275_v9, 0.0  ;;  %v1169_v9 = vsub.s32 1, %v480_v55 }
 0x14f   :  { %278 = vadd.xlane.f32.xlu1 %v277_v11 }
 0x150   :  { %v276_v12 = vmul.f32 %v274_v10, %v274_v10  ;;  %v5536_v15 = vrot.slane %v307_v57, %v1169_v9 }
 0x152   :  { %v280_v13 = vsel %vm263_vm0, %v276_v12, 0.0 }
 0x153   :  { %281 = vadd.xlane.f32.xlu1 %v280_v13 }
 0x1d8   :  { %v279_v18 = vpop.xlane.xlu1 %278 }
 0x1d9   :  { %v283_v19 = vmul.f32 0.03125, %v279_v18 }
 0x1db   :  { %v285_v20 = vadd.f32 1e-12, %v283_v19 }
 0x1dc   :  { %v282_v21 = vpop.xlane.xlu1 %281 }
 0x1dd   :  { %4777 = vrsqrt.f32 %v285_v20  ;;  %v284_v22 = vmul.f32 0.03125, %v282_v21 }
 0x1df   :  { %v286_v23 = vadd.f32 1e-12, %v284_v22 }
 0x1e1   :  { %4779 = vrsqrt.f32 %v286_v23 }
 0x1ea   :  { %v4778_v24 = vpop.eup %4777 }
 0x1eb   :  { %v289_v26 = vmul.f32 %v4778_v24, %v273_v6 }
 0x1ed   :  { %v297_v28 = vmul.f32 %v4221_v25, %v289_v26 }
 0x1ee   :  { %v4780_v29 = vpop.eup %4779 }
 0x1ef   :  { %v290_v30 = vmul.f32 %v4780_v29, %v274_v10  ;;  %v5439_v31 = vadd.f32 %v4222_v27, %v297_v28 }
 0x1f1   :  { %v298_v32 = vmul.f32 %v4221_v25, %v290_v30  ;;  %4465 = vmatprep.mubr.msk.f32.mxu0 %vm263_vm0, %v5439_v31 }
 0x1f3   :  { %v5443_v33 = vadd.f32 %v4222_v27, %v298_v32 }
 0x1f5   :  { %4466 = vmatmul.mubr.msk.f32.vlgmr.msra.gmra.mxu0 %vm263_vm0, %v5443_v33 }
 0x1f6   :  { %4480 = vmatprep.mubr.msk.f32.mxu0 %vm5229_vm1, %v5228_v34 }
 0x2b5   :  { %v4467_v35 = vpop.f32.mrf.mxu0 }
 0x2b6   :  { %v5467_v39 = vadd.f32 %v4467_v35, %v4223_v36 }
 0x2b7   :  { %v391_v37 = vpop.f32.mrf.mxu0 }
 0x2b8   :  { %v5453_v38 = vadd.f32 %v4223_v36, %v391_v37 }
 0x2ba   :  { %573 = vrot.lane.b32.xlu1 %v5453_v38, %s5230_s26  ;;  %401 = vrot.lane.b32.xlu0 %v5453_v38, %s5231_s13 }
 0x2be   :  { %571 = vrot.lane.b32.xlu1 %v5453_v38, %s5232_s28  ;;  %738 = vrot.lane.b32.xlu0 %v5453_v38, %s5233_s8 }
 0x2c2   :  { %740 = vrot.lane.b32.xlu1 %v5453_v38, %s5234_s4  ;;  %905 = vrot.lane.b32.xlu0 %v5453_v38, %s5235_s27 }
 0x2c6   :  { %907 = vrot.lane.b32.xlu1 %v5453_v38, %s5236_s11  ;;  %1261 = vrot.lane.b32.xlu0 %v5467_v39, %s5230_s26 }
 0x2ca   :  { %1090 = vrot.lane.b32.xlu1 %v5467_v39, %s5231_s13  ;;  %1428 = vrot.lane.b32.xlu0 %v5467_v39, %s5234_s4 }
 0x2ce   :  { %1259 = vrot.lane.b32.xlu1 %v5467_v39, %s5232_s28  ;;  %1595 = vrot.lane.b32.xlu0 %v5467_v39, %s5236_s11 }
 0x2d2   :  { %1426 = vrot.lane.b32.xlu1 %v5467_v39, %s5233_s8 }
 0x2d6   :  { %1593 = vrot.lane.b32.xlu1 %v5467_v39, %s5235_s27 }
 0x32c   :  { %v574_v40 = vpop.permute.xlu1 %573  ;;  %v402_v41 = vpop.permute.xlu0 %401 }
 0x32d   :  { %4469 = vmatpush3.xpose.msk.msra.mxu1 %vm403_vm2, %v402_v41  ;;  %4479 = vmatpush3.xpose.msk.msra.mxu0 %vm403_vm2, %v574_v40 }
 0x32e   :  { %4488 = vmatprep.subr.mxu0 %v5228_v34  ;;  %4473 = vmatprep.subr.mxu1 %v5228_v34 }
 0x330   :  { %v572_v42 = vpop.permute.xlu1 %571  ;;  %4471 = vmatmul.mubr.msk.f32.vlgmr.msra.gmra.mxu1 %vm403_vm2, %v5453_v38  ;;  %v739_v43 = vpop.permute.xlu0 %738 }
 0x331   :  { %4481 = vmatmul.mubr.msk.f32.vlgmr.msra.gmra.mxu0 %vm403_vm2, %v572_v42  ;;  %4475 = vmatprep.mubr.msk.f32.mxu1 %vm5229_vm1, %v5228_v34 }
 0x332   :  { %4490 = vmatprep.mubr.msk.f32.mxu0 %vm5229_vm1, %v5228_v34 }
 0x334   :  { %v741_v44 = vpop.permute.xlu1 %740  ;;  %v906_v45 = vpop.permute.xlu0 %905 }
 0x335   :  { %4489 = vmatpush3.xpose.msk.msra.mxu0 %vm403_vm2, %v741_v44 }
 0x336   :  { %4498 = vmatprep.subr.mxu0 %v5228_v34 }
 0x338   :  { %v908_v46 = vpop.permute.xlu1 %907  ;;  %4491 = vmatmul.mubr.msk.f32.vlgmr.msra.gmra.mxu0 %vm403_vm2, %v739_v43  ;;  %v1262_v47 = vpop.permute.xlu0 %1261 }
 0x339   :  { %4499 = vmatpush3.xpose.msk.msra.mxu0 %vm403_vm2, %v908_v46  ;;  %4500 = vmatprep.mubr.msk.f32.mxu0 %vm5229_vm1, %v5228_v34 }
 0x33a   :  { %4508 = vmatprep.subr.mxu0 %v5228_v34 }
 0x33c   :  { %v1091_v48 = vpop.permute.xlu1 %1090  ;;  %4501 = vmatmul.mubr.msk.f32.vlgmr.msra.gmra.mxu0 %vm403_vm2, %v906_v45  ;;  %v1429_v50 = vpop.permute.xlu0 %1428 }
 0x33d   :  { %4509 = vmatpush3.xpose.msk.msra.mxu0 %vm403_vm2, %v1091_v48  ;;  %4510 = vmatprep.mubr.msk.f32.mxu0 %vm5229_vm1, %v5228_v34 }
 0x33e   :  { %4518 = vmatprep.subr.mxu0 %v5228_v34 }
 0x340   :  { %v1260_v49 = vpop.permute.xlu1 %1259  ;;  %4511 = vmatmul.mubr.msk.f32.vlgmr.msra.gmra.mxu0 %vm403_vm2, %v5467_v39  ;;  %v1596_v52 = vpop.permute.xlu0 %1595 }
 0x341   :  { %4519 = vmatpush3.xpose.msk.msra.mxu0 %vm403_vm2, %v1262_v47  ;;  %4520 = vmatprep.mubr.msk.f32.mxu0 %vm5229_vm1, %v5228_v34 }
 0x342   :  { %4528 = vmatprep.subr.mxu0 %v5228_v34 }
 0x344   :  { %4521 = vmatmul.mubr.msk.f32.vlgmr.msra.gmra.mxu0 %vm403_vm2, %v1260_v49  ;;  %v1427_v51 = vpop.permute.xlu1 %1426 }
 0x345   :  { %4529 = vmatpush3.xpose.msk.msra.mxu0 %vm403_vm2, %v1429_v50  ;;  %4530 = vmatprep.mubr.msk.f32.mxu0 %vm5229_vm1, %v5228_v34 }
 0x346   :  { %4538 = vmatprep.subr.mxu0 %v5228_v34 }
 0x348   :  { %4531 = vmatmul.mubr.msk.f32.vlgmr.msra.gmra.mxu0 %vm403_vm2, %v1427_v51  ;;  %v1594_v53 = vpop.permute.xlu1 %1593 }
 0x349   :  { %4539 = vmatpush3.xpose.msk.msra.mxu0 %vm403_vm2, %v1596_v52  ;;  %4540 = vmatprep.mubr.msk.f32.mxu0 %vm5229_vm1, %v5228_v34 }
 0x34c   :  { %4541 = vmatmul.mubr.msk.f32.vlgmr.msra.gmra.mxu0 %vm403_vm2, %v1594_v53 }
 0x3f0   :  { %v474_v59 = vpop.f32.mrf.mxu1 }
 0x3f1   :  { %v478_v60 = vmul.f32 0.35355338, %v474_v59  ;;  %v645_v61 = vpop.f32.mrf.mxu0 }
 0x3f2   :  { %v649_v62 = vmul.f32 0.35355338, %v645_v61  ;;  %v4472_v63 = vpop.f32.mrf.mxu1 }
 0x3f3   :  { %v4482_v0 = vpop.f32.mrf.mxu0  ;;  %v483_v1 = vadd.f32 %v5524_v58, %v478_v60 }
 0x3f4   :  { %v650_v2 = vadd.f32 %v649_v62, %v5524_v58 }
 0x3f5   :  { %v484_v3 = vsel %vm403_vm2, %v483_v1, -inf }
 0x3f6   :  { %485 = vmax.xlane.f32.xlu0 %v484_v3  ;;  %v651_v4 = vsel %vm403_vm2, %v650_v2, -inf }
 0x3f7   :  { %652 = vmax.xlane.f32.xlu1 %v651_v4 }
 0x3f8   :  { %v812_v5 = vpop.f32.mrf.mxu0 }
 0x3f9   :  { %v816_v6 = vmul.f32 0.35355338, %v812_v5 }
 0x3fa   :  { %v4492_v7 = vpop.f32.mrf.mxu0 }
 0x3fb   :  { %v5531_v8 = vadd.f32 %v816_v6, %v5524_v58 }
 0x3fc   :  { %v979_v10 = vpop.f32.mrf.mxu0 }
 0x3fd   :  { %v983_v11 = vmul.f32 0.35355338, %v979_v10  ;;  %v818_v12 = vsel %vm403_vm2, %v5531_v8, -inf }
 0x3fe   :  { %819 = vmax.xlane.f32.xlu0 %v818_v12  ;;  %v4502_v13 = vpop.f32.mrf.mxu0 }
 0x3ff   :  { %v984_v14 = vadd.f32 %v983_v11, %v5524_v58 }
 0x400   :  { %v1162_v16 = vpop.f32.mrf.mxu0 }
 0x401   :  { %v1166_v17 = vmul.f32 0.35355338, %v1162_v16  ;;  %v985_v18 = vsel %vm403_vm2, %v984_v14, -inf }
 0x402   :  { %986 = vmax.xlane.f32.xlu0 %v985_v18  ;;  %v4512_v19 = vpop.f32.mrf.mxu0 }
 0x403   :  { %v5540_v20 = vadd.f32 %v5536_v15, %v1166_v17 }
 0x404   :  { %v1333_v21 = vpop.f32.mrf.mxu0 }
 0x405   :  { %v1337_v22 = vmul.f32 0.35355338, %v1333_v21  ;;  %v1172_v23 = vsel %vm403_vm2, %v5540_v20, -inf }
 0x406   :  { %1173 = vmax.xlane.f32.xlu0 %v1172_v23  ;;  %v4522_v24 = vpop.f32.mrf.mxu0 }
 0x407   :  { %v1338_v25 = vadd.f32 %v1337_v22, %v5536_v15 }
 0x408   :  { %v1500_v26 = vpop.f32.mrf.mxu0 }
 0x409   :  { %v1504_v27 = vmul.f32 0.35355338, %v1500_v26  ;;  %v1339_v28 = vsel %vm403_vm2, %v1338_v25, -inf }
 0x40a   :  { %1340 = vmax.xlane.f32.xlu1 %v1339_v28  ;;  %v4532_v29 = vpop.f32.mrf.mxu0 }
 0x40b   :  { %v1505_v30 = vadd.f32 %v1504_v27, %v5536_v15 }
 0x40c   :  { %v1667_v32 = vpop.f32.mrf.mxu0 }
 0x40d   :  { %v1506_v35 = vsel %vm403_vm2, %v1505_v30, -inf  ;;  %v1671_v37 = vmul.f32 0.35355338, %v1667_v32 }
 0x40e   :  { %1507 = vmax.xlane.f32.xlu0 %v1506_v35  ;;  %v4542_v36 = vpop.f32.mrf.mxu0 }
 0x40f   :  { %v1672_v40 = vadd.f32 %v1671_v37, %v5536_v15 }
 0x411   :  { %v1673_v41 = vsel %vm403_vm2, %v1672_v40, -inf }
 0x41b   :  { %495 = vrot.lane.b32.xlu1 %v5453_v38, %s5237_s29 }
 0x43f   :  { %1674 = vmax.xlane.f32.xlu1 %v1673_v41 }
 0x450   :  { %829 = vrot.lane.b32.xlu1 %v5453_v38, %s5238_s30 }
 0x454   :  { %996 = vrot.lane.b32.xlu1 %v5453_v38, %s5239_s7 }
 0x458   :  { %1183 = vrot.lane.b32.xlu1 %v5467_v39, %s5237_s29 }
 0x47f   :  { %v486_v42 = vpop.xlane.xlu0 %485 }
 0x480   :  { %v487_v43 = vsub.f32 %v483_v1, %v486_v42  ;;  %v653_v44 = vpop.xlane.xlu1 %652 }
 0x481   :  { %v654_v45 = vsub.f32 %v650_v2, %v653_v44 }
 0x482   :  { %v488_v46 = vmul.f32 1.442695, %v487_v43 }
 0x483   :  { %v655_v47 = vmul.f32 1.442695, %v654_v45 }
 0x484   :  { %4781 = vpow2.f32 %v488_v46 }
 0x485   :  { %4783 = vpow2.f32 %v655_v47 }
 0x487   :  { %v820_v48 = vpop.xlane.xlu0 %819 }
 0x488   :  { %v821_v61 = vsub.f32 %v5531_v8, %v820_v48 }
 0x48a   :  { %v822_v63 = vmul.f32 1.442695, %v821_v61  ;;  %v1778_v61 = vld [vmem:[%s6010_s6 + $0x18] sm:$0xff] }
 0x48b   :  { %v987_v49 = vpop.xlane.xlu0 %986  ;;  %4548 = vmatprep.subr.mxu0 %v1778_v61 }
 0x48c   :  { %v988_v50 = vsub.f32 %v984_v14, %v987_v49  ;;  %4549 = vmatpush3.msra.mxu0 %v1778_v61 }
 0x48e   :  { %v989_v51 = vmul.f32 1.442695, %v988_v50 }
 0x48f   :  { %v1174_v62 = vpop.xlane.xlu0 %1173 }
 0x490   :  { %4785 = vpow2.f32 %v989_v51  ;;  %v1175_v0 = vsub.f32 %v5540_v20, %v1174_v62  ;;  %v1777_v62 = vld [vmem:[%s6010_s6 + $0x10] sm:$0xff] }
 0x491   :  { %v4782_v52 = vpop.eup %4781  ;;  %4787 = vpow2.f32 %v822_v63  ;;  %4550 = vmatprep.subr.mxu0 %v1777_v62 }
 0x492   :  { %v5558_v53 = vpop.eup %4783  ;;  %v490_v54 = vsel %vm403_vm2, %v4782_v52, 0.0  ;;  %v1176_v2 = vmul.f32 1.442695, %v1175_v0  ;;  %4551 = vmatpush3.msra.mxu0 %v1777_v62 }
 0x493   :  { %v1341_v55 = vpop.xlane.xlu1 %1340  ;;  %491 = vadd.xlane.f32.xlu0 %v490_v54  ;;  %v657_v56 = vsel %vm403_vm2, %v5558_v53, 0.0 }
 0x494   :  { %658 = vadd.xlane.f32.xlu1 %v657_v56  ;;  %4789 = vpow2.f32 %v1176_v2  ;;  %v1342_v4 = vsub.f32 %v1338_v25, %v1341_v55  ;;  %v1775_v2 = vld [vmem:[%s6010_s6] sm:$0xff] }
 0x496   :  { %v1343_v6 = vmul.f32 1.442695, %v1342_v4 }
 0x497   :  { %v496_v57 = vpop.permute.xlu1 %495  ;;  %v1508_v1 = vpop.xlane.xlu0 %1507 }
 0x498   :  { %4474 = vmatpush3.msra.mxu1 %v496_v57  ;;  %v1509_v3 = vsub.f32 %v1505_v30, %v1508_v1  ;;  %v1776_v1 = vld [vmem:[%s6010_s6 + $0x8] sm:$0xff] }
 0x499   :  { %4483 = vmatprep.subr.mxu1 %v5228_v34  ;;  %4552 = vmatprep.subr.mxu0 %v1776_v1 }
 0x49a   :  { %v1510_v5 = vmul.f32 1.442695, %v1509_v3  ;;  %4553 = vmatpush3.msra.mxu0 %v1776_v1 }
 0x49b   :  { %4554 = vmatprep.subr.mxu0 %v1775_v2 }
 0x49c   :  { %4791 = vpow2.f32 %v1510_v5  ;;  %4555 = vmatpush3.msra.mxu0 %v1775_v2  ;;  %v2030_v2 = vld [vmem:[%s6016_s12 + $0x38] sm:$0xff] }
 0x49d   :  { %v5564_v59 = vpop.eup %4785  ;;  %4793 = vpow2.f32 %v1343_v6  ;;  %4570 = vmatprep.subr.mxu0 %v2030_v2 }
 0x49e   :  { %v991_v60 = vsel %vm403_vm2, %v5564_v59, 0.0 }
 0x49f   :  { %992 = vadd.xlane.f32.xlu1 %v991_v60 }
 0x4a9   :  { %662 = vrot.lane.b32.xlu0 %v5453_v38, %s5240_s21  ;;  %v4788_v38 = vpop.eup %4787 }
 0x4aa   :  { %v824_v7 = vsel %vm403_vm2, %v4788_v38, 0.0  ;;  %v5575_v8 = vpop.eup %4789 }
 0x4ab   :  { %v1178_v12 = vsel %vm403_vm2, %v5575_v8, 0.0  ;;  %v5579_v13 = vpop.eup %4791 }
 0x4ac   :  { %v1512_v14 = vsel %vm403_vm2, %v5579_v13, 0.0  ;;  %v4794_v16 = vpop.eup %4793 }
 0x4ad   :  { %v1345_v17 = vsel %vm403_vm2, %v4794_v16, 0.0 }
 0x4b0   :  { %1350 = vrot.lane.b32.xlu1 %v5467_v39, %s5240_s21 }
 0x4c8   :  { %v1675_v9 = vpop.xlane.xlu1 %1674  ;;  %825 = vadd.xlane.f32.xlu0 %v824_v7 }
 0x4c9   :  { %v1676_v10 = vsub.f32 %v1672_v40, %v1675_v9 }
 0x4cb   :  { %v1677_v11 = vmul.f32 1.442695, %v1676_v10 }
 0x4cc   :  { %1179 = vadd.xlane.f32.xlu0 %v1178_v12  ;;  %v830_v20 = vpop.permute.xlu1 %829 }
 0x4cd   :  { %4795 = vpow2.f32 %v1677_v11 }
 0x4d0   :  { %1513 = vadd.xlane.f32.xlu0 %v1512_v14  ;;  %v997_v21 = vpop.permute.xlu1 %996 }
 0x4d4   :  { %1346 = vadd.xlane.f32.xlu1 %v1345_v17  ;;  %v1184_v22 = vpop.permute.xlu1 %1183 }
 0x4da   :  { %v5584_v18 = vpop.eup %4795 }
 0x4db   :  { %v1679_v19 = vsel %vm403_vm2, %v5584_v18, 0.0 }
 0x4dc   :  { %1680 = vadd.xlane.f32.xlu0 %v1679_v19 }
 0x4e5   :  { %1684 = vrot.lane.b32.xlu1 %v5467_v39, %s5239_s7 }
 0x4f2   :  { %1517 = vrot.lane.b32.xlu0 %v5467_v39, %s5238_s30 }
 0x51c   :  { %v492_v23 = vpop.xlane.xlu0 %491 }
 0x51d   :  { %4797 = vrcp.f32 %v492_v23  ;;  %v659_v24 = vpop.xlane.xlu1 %658 }
 0x51e   :  { %4799 = vrcp.f32 %v659_v24  ;;  %v4250_v24 = vld [vmem:[#allocation11] ss:$0 sm:$0xff] }
 0x520   :  { %v663_v28 = vpop.permute.xlu0 %662 }
 0x528   :  { %v993_v29 = vpop.xlane.xlu1 %992 }
 0x52a   :  { %v4798_v25 = vpop.eup %4797 }
 0x52b   :  { %v494_v26 = vmul.f32 %v4798_v25, %v4782_v52  ;;  %v4800_v27 = vpop.eup %4799 }
 0x52c   :  { %v661_v39 = vmul.f32 %v4800_v27, %v5558_v53  ;;  %v1351_v35 = vpop.permute.xlu1 %1350 }
 0x52d   :  { %4476 = vmatmul.mubr.msk.f32.vlgmr.msra.gmra.mxu1 %vm403_vm2, %v494_v26 }
 0x52e   :  { %4484 = vmatpush3.msra.mxu1 %v663_v28  ;;  %4485 = vmatprep.mubr.msk.f32.mxu1 %vm5229_vm1, %v5228_v34 }
 0x52f   :  { %4493 = vmatprep.subr.mxu1 %v5228_v34 }
 0x531   :  { %4486 = vmatmul.mubr.msk.f32.vlgmr.msra.gmra.mxu1 %vm403_vm2, %v661_v39 }
 0x532   :  { %4494 = vmatpush3.msra.mxu1 %v830_v20  ;;  %4495 = vmatprep.mubr.msk.f32.mxu1 %vm5229_vm1, %v5228_v34 }
 0x533   :  { %4503 = vmatprep.subr.mxu1 %v5228_v34 }
 0x551   :  { %v826_v30 = vpop.xlane.xlu0 %825 }
 0x552   :  { %4801 = vrcp.f32 %v826_v30 }
 0x553   :  { %4803 = vrcp.f32 %v993_v29 }
 0x555   :  { %v1180_v32 = vpop.xlane.xlu0 %1179 }
 0x556   :  { %4805 = vrcp.f32 %v1180_v32 }
 0x559   :  { %v1514_v36 = vpop.xlane.xlu0 %1513 }
 0x55d   :  { %v1347_v37 = vpop.xlane.xlu1 %1346 }
 0x55e   :  { %4807 = vrcp.f32 %v1347_v37 }
 0x55f   :  { %v4802_v40 = vpop.eup %4801  ;;  %4809 = vrcp.f32 %v1514_v36 }
 0x560   :  { %v828_v41 = vmul.f32 %v4802_v40, %v4788_v38  ;;  %v4804_v42 = vpop.eup %4803 }
 0x561   :  { %v995_v43 = vmul.f32 %v4804_v42, %v5564_v59  ;;  %v1685_v52 = vpop.permute.xlu1 %1684 }
 0x562   :  { %4496 = vmatmul.mubr.msk.f32.vlgmr.msra.gmra.mxu1 %vm403_vm2, %v828_v41 }
 0x563   :  { %4504 = vmatpush3.msra.mxu1 %v997_v21  ;;  %4505 = vmatprep.mubr.msk.f32.mxu1 %vm5229_vm1, %v5228_v34  ;;  %v4806_v44 = vpop.eup %4805 }
 0x564   :  { %4513 = vmatprep.subr.mxu1 %v5228_v34  ;;  %v1182_v46 = vmul.f32 %v4806_v44, %v5575_v8 }
 0x565   :  { %v1681_v45 = vpop.xlane.xlu0 %1680 }
 0x566   :  { %4811 = vrcp.f32 %v1681_v45  ;;  %4506 = vmatmul.mubr.msk.f32.vlgmr.msra.gmra.mxu1 %vm403_vm2, %v995_v43 }
 0x567   :  { %4514 = vmatpush3.msra.mxu1 %v1184_v22  ;;  %4515 = vmatprep.mubr.msk.f32.mxu1 %vm5229_vm1, %v5228_v34 }
 0x568   :  { %4523 = vmatprep.subr.mxu1 %v5228_v34 }
 0x569   :  { %v1518_v50 = vpop.permute.xlu0 %1517 }
 0x56a   :  { %4516 = vmatmul.mubr.msk.f32.vlgmr.msra.gmra.mxu1 %vm403_vm2, %v1182_v46  ;;  %v1915_v46 = vld [vmem:[%s6014_s10 + $0x10] sm:$0xff] }
 0x56b   :  { %v4808_v47 = vpop.eup %4807  ;;  %4524 = vmatpush3.msra.mxu1 %v1351_v35  ;;  %4525 = vmatprep.mubr.msk.f32.mxu1 %vm5229_vm1, %v5228_v34 }
 0x56c   :  { %4533 = vmatprep.subr.mxu1 %v5228_v34  ;;  %v1349_v48 = vmul.f32 %v4808_v47, %v4794_v16  ;;  %v4810_v49 = vpop.eup %4809  ;;  %v1914_v47 = vld [vmem:[%s6014_s10 + $0x8] sm:$0xff] }
 0x56d   :  { %v1516_v51 = vmul.f32 %v4810_v49, %v5579_v13 }
 0x56e   :  { %4526 = vmatmul.mubr.msk.f32.vlgmr.msra.gmra.mxu1 %vm403_vm2, %v1349_v48  ;;  %v1913_v48 = vld [vmem:[%s6014_s10] sm:$0xff] }
 0x56f   :  { %4534 = vmatpush3.msra.mxu1 %v1518_v50  ;;  %4535 = vmatprep.mubr.msk.f32.mxu1 %vm5229_vm1, %v5228_v34 }
 0x570   :  { %4543 = vmatprep.subr.mxu1 %v5228_v34 }
 0x572   :  { %4536 = vmatmul.mubr.msk.f32.vlgmr.msra.gmra.mxu1 %vm403_vm2, %v1516_v51 }
 0x573   :  { %v4812_v53 = vpop.eup %4811  ;;  %4544 = vmatpush3.msra.mxu1 %v1685_v52  ;;  %4545 = vmatprep.mubr.msk.f32.mxu1 %vm5229_vm1, %v5228_v34 }
 0x574   :  { %v1683_v54 = vmul.f32 %v4812_v53, %v5584_v18 }
 0x576   :  { %4546 = vmatmul.mubr.msk.f32.vlgmr.msra.gmra.mxu1 %vm403_vm2, %v1683_v54 }
 0x5ed   :  { %v567_v55 = vpop.f32.mrf.mxu1 }
 0x5ef   :  { %v4477_v56 = vpop.f32.mrf.mxu1 }
 0x5f0   :  { %v4253_v56 = vld [vmem:[#allocation13] ss:$0 sm:$0xff] }
 0x5f1   :  { %v734_v57 = vpop.f32.mrf.mxu1 }
 0x5f2   :  { %1073 = vrot.lane.b32.xlu0 %v734_v57, %s5220_s0 }
 0x5f3   :  { %v4487_v59 = vpop.f32.mrf.mxu1 }
 0x5f4   :  { %v4254_v59 = vld [vmem:[#allocation14] ss:$0 sm:$0xff] }
 0x622   :  { %v901_v60 = vpop.f32.mrf.mxu1 }
 0x623   :  { %1077 = vrot.lane.b32.xlu1 %v901_v60, %s5213_s22 }
 0x624   :  { %v4497_v63 = vpop.f32.mrf.mxu1 }
 0x626   :  { %v1068_v0 = vpop.f32.mrf.mxu1 }
 0x627   :  { %1081 = vrot.lane.b32.xlu1 %v1068_v0, %s5241_s5 }
 0x628   :  { %v4507_v3 = vpop.f32.mrf.mxu1 }
 0x629   :  { %v2029_v3 = vld [vmem:[%s6016_s12 + $0x30] sm:$0xff] }
 0x62a   :  { %v1255_v4 = vpop.f32.mrf.mxu1 }
 0x62c   :  { %v4517_v5 = vpop.f32.mrf.mxu1 }
 0x62d   :  { %v2027_v5 = vld [vmem:[%s6016_s12 + $0x20] sm:$0xff] }
 0x62e   :  { %v1422_v6 = vpop.f32.mrf.mxu1 }
 0x62f   :  { %1761 = vrot.lane.b32.xlu0 %v1422_v6, %s5220_s0  ;;  %v2026_v6 = vld [vmem:[%s6016_s12 + $0x18] sm:$0xff] }
 0x630   :  { %v4527_v38 = vpop.f32.mrf.mxu1 }
 0x631   :  { %v2025_v38 = vld [vmem:[%s6016_s12 + $0x10] sm:$0xff] }
 0x632   :  { %v1589_v7 = vpop.f32.mrf.mxu1 }
 0x633   :  { %1765 = vrot.lane.b32.xlu0 %v1589_v7, %s5213_s22  ;;  %v2024_v7 = vld [vmem:[%s6016_s12 + $0x8] sm:$0xff] }
 0x634   :  { %v4537_v8 = vpop.f32.mrf.mxu1 }
 0x635   :  { %v2023_v8 = vld [vmem:[%s6016_s12] sm:$0xff] }
 0x636   :  { %v1756_v9 = vpop.f32.mrf.mxu1 }
 0x637   :  { %1769 = vrot.lane.b32.xlu1 %v1756_v9, %s5241_s5  ;;  %v4255_v9 = vld [vmem:[#allocation16] ss:$0 sm:$0xff] }
 0x638   :  { %v4547_v10 = vpop.f32.mrf.mxu1 }
 0x664   :  { %v1074_v11 = vpop.permute.xlu0 %1073 }
 0x665   :  { %v1084_v13 = vsel %vm403_vm2, %v567_v55, %v1074_v11 }
 0x695   :  { %v1078_v12 = vpop.permute.xlu1 %1077 }
 0x696   :  { %v1086_v14 = vsel %vm1085_vm3, %v1084_v13, %v1078_v12 }
 0x699   :  { %v1082_v16 = vpop.permute.xlu1 %1081 }
 0x69a   :  { %v1088_v17 = vsel %vm1087_vm4, %v1086_v14, %v1082_v16 }
 0x69b   :  { %4556 = vmatprep.mubr.msk.f32.mxu0 %vm263_vm0, %v1088_v17 }
 0x6a1   :  { %v1762_v18 = vpop.permute.xlu0 %1761 }
 0x6a2   :  { %v1772_v20 = vsel %vm403_vm2, %v1255_v4, %v1762_v18  ;;  %v2028_v4 = vld [vmem:[%s6016_s12 + $0x28] sm:$0xff] }
 0x6a5   :  { %v1766_v19 = vpop.permute.xlu0 %1765 }
 0x6a6   :  { %v1773_v21 = vsel %vm1085_vm3, %v1772_v20, %v1766_v19 }
 0x6a9   :  { %v1770_v22 = vpop.permute.xlu1 %1769 }
 0x6aa   :  { %v1774_v23 = vsel %vm1087_vm4, %v1773_v21, %v1770_v22 }
 0x6ab   :  { %4557 = vmatmul.mubr.msk.f32.vlgmr.msra.gmra.mxu0 %vm263_vm0, %v1774_v23 }
 0x6ac   :  { %4571 = vmatpush3.msra.mxu0 %v2030_v2  ;;  %v4261_v2 = vld [vmem:[#allocation19] ss:$0 sm:$0xff] }
 0x6ad   :  { %4572 = vmatprep.subr.mxu0 %v2029_v3 }
 0x6ae   :  { %4573 = vmatpush3.msra.mxu0 %v2029_v3 }
 0x6af   :  { %4574 = vmatprep.subr.mxu0 %v2028_v4 }
 0x6b0   :  { %4575 = vmatpush3.msra.mxu0 %v2028_v4 }
 0x6b1   :  { %4576 = vmatprep.subr.mxu0 %v2027_v5 }
 0x6b2   :  { %4577 = vmatpush3.msra.mxu0 %v2027_v5 }
 0x6b3   :  { %4578 = vmatprep.subr.mxu0 %v2026_v6 }
 0x6b4   :  { %4579 = vmatpush3.msra.mxu0 %v2026_v6 }
 0x6b5   :  { %4580 = vmatprep.subr.mxu0 %v2025_v38 }
 0x6b6   :  { %4581 = vmatpush3.msra.mxu0 %v2025_v38  ;;  %v4262_v38 = vld [vmem:[#allocation20] ss:$0 sm:$0xff] }
 0x6b7   :  { %4582 = vmatprep.subr.mxu0 %v2024_v7 }
 0x6b8   :  { %4583 = vmatpush3.msra.mxu0 %v2024_v7 }
 0x6b9   :  { %4584 = vmatprep.subr.mxu0 %v2023_v8 }
 0x6ba   :  { %4585 = vmatpush3.msra.mxu0 %v2023_v8 }
 0x6bb   :  { %4610 = vmatprep.subr.mxu0 %v5228_v34 }
 0x76b   :  { %v4558_v25 = vpop.f32.mrf.mxu0 }
 0x76c   :  { %v1864_v26 = vadd.f32 %v4558_v25, %v4250_v24 }
 0x76d   :  { %v1858_v27 = vpop.f32.mrf.mxu0 }
 0x76e   :  { %v1859_v28 = vadd.f32 %v4250_v24, %v1858_v27  ;;  %v1868_v39 = vadd.f32 %v1864_v26, %v5443_v33 }
 0x770   :  { %v1874_v29 = vsel %vm263_vm0, %v1868_v39, 0.0  ;;  %v1867_v30 = vadd.f32 %v1859_v28, %v5439_v31  ;;  %v1916_v31 = vld [vmem:[%s6014_s10 + $0x18] sm:$0xff] }
 0x771   :  { %1875 = vadd.xlane.f32.xlu1 %v1874_v29  ;;  %4559 = vmatprep.subr.mxu1 %v1916_v31 }
 0x772   :  { %v1871_v32 = vsel %vm263_vm0, %v1867_v30, 0.0  ;;  %4560 = vmatpush3.msra.mxu1 %v1916_v31 }
 0x773   :  { %1872 = vadd.xlane.f32.xlu0 %v1871_v32  ;;  %4561 = vmatprep.subr.mxu1 %v1915_v46 }
 0x774   :  { %4562 = vmatpush3.msra.mxu1 %v1915_v46 }
 0x775   :  { %4563 = vmatprep.subr.mxu1 %v1914_v47 }
 0x776   :  { %4564 = vmatpush3.msra.mxu1 %v1914_v47 }
 0x777   :  { %4565 = vmatprep.subr.mxu1 %v1913_v48 }
 0x778   :  { %4566 = vmatpush3.msra.mxu1 %v1913_v48 }
 0x7fa   :  { %v1876_v35 = vpop.xlane.xlu1 %1875 }
 0x7fb   :  { %v1878_v36 = vmul.f32 0.03125, %v1876_v35  ;;  %v4258_v35 = vld [vmem:[#allocation17] ss:$0 sm:$0xff] }
 0x7fc   :  { %v1873_v37 = vpop.xlane.xlu0 %1872 }
 0x7fd   :  { %v1877_v40 = vmul.f32 0.03125, %v1873_v37  ;;  %v1880_v41 = vsub.f32 %v1868_v39, %v1878_v36 }
 0x7ff   :  { %v1879_v42 = vsub.f32 %v1867_v30, %v1877_v40  ;;  %v1882_v45 = vmul.f32 %v1880_v41, %v1880_v41 }
 0x801   :  { %v1881_v43 = vmul.f32 %v1879_v42, %v1879_v42  ;;  %v1886_v33 = vsel %vm263_vm0, %v1882_v45, 0.0 }
 0x803   :  { %v1883_v44 = vsel %vm263_vm0, %v1881_v43, 0.0 }
 0x804   :  { %1884 = vadd.xlane.f32.xlu0 %v1883_v44 }
 0x808   :  { %1887 = vadd.xlane.f32.xlu0 %v1886_v33 }
 0x88d   :  { %v1885_v49 = vpop.xlane.xlu0 %1884 }
 0x88e   :  { %v1889_v50 = vmul.f32 0.03125, %v1885_v49 }
 0x890   :  { %v1891_v51 = vadd.f32 1e-12, %v1889_v50 }
 0x891   :  { %v1888_v52 = vpop.xlane.xlu0 %1887 }
 0x892   :  { %4813 = vrsqrt.f32 %v1891_v51  ;;  %v1890_v53 = vmul.f32 0.03125, %v1888_v52 }
 0x894   :  { %v1892_v54 = vadd.f32 1e-12, %v1890_v53 }
 0x896   :  { %4815 = vrsqrt.f32 %v1892_v54  ;;  %v4266_v54 = vld [vmem:[%s6035_s15 + $0x38] sm:$0xff] }
 0x897   :  { %4589 = vmatprep.subr.mxu1 %v4266_v54 }
 0x89f   :  { %v4814_v55 = vpop.eup %4813 }
 0x8a0   :  { %v1895_v57 = vmul.f32 %v4814_v55, %v1879_v42  ;;  %v4265_v55 = vld [vmem:[%s6035_s15 + $0x30] sm:$0xff] }
 0x8a2   :  { %v1903_v60 = vmul.f32 %v4253_v56, %v1895_v57  ;;  %v4263_v57 = vld [vmem:[%s6035_s15 + $0x20] sm:$0xff] }
 0x8a3   :  { %v4816_v61 = vpop.eup %4815 }
 0x8a4   :  { %v1896_v62 = vmul.f32 %v4816_v61, %v1880_v41  ;;  %v5669_v63 = vadd.f32 %v4254_v59, %v1903_v60 }
 0x8a6   :  { %v1904_v0 = vmul.f32 %v4253_v56, %v1896_v62  ;;  %4567 = vmatprep.mubr.msk.f32.mxu1 %vm263_vm0, %v5669_v63  ;;  %v4264_v56 = vld [vmem:[%s6035_s15 + $0x28] sm:$0xff] }
 0x8a8   :  { %v1912_v1 = vadd.f32 %v4254_v59, %v1904_v0 }
 0x8aa   :  { %4568 = vmatmul.mubr.msk.f32.vlgmr.msra.gmra.mxu1 %vm263_vm0, %v1912_v1 }
 0x8ab   :  { %4590 = vmatpush3.msra.mxu1 %v4266_v54 }
 0x8ac   :  { %4591 = vmatprep.subr.mxu1 %v4265_v55 }
 0x8ad   :  { %4592 = vmatpush3.msra.mxu1 %v4265_v55 }
 0x8ae   :  { %4593 = vmatprep.subr.mxu1 %v4264_v56 }
 0x8af   :  { %4594 = vmatpush3.msra.mxu1 %v4264_v56 }
 0x8b0   :  { %4595 = vmatprep.subr.mxu1 %v4263_v57 }
 0x8b1   :  { %4596 = vmatpush3.msra.mxu1 %v4263_v57 }
 0x8b2   :  { %4600 = vmatprep.subr.mxu1 %v5228_v34 }
 0x96a   :  { %v4569_v10 = vpop.f32.mrf.mxu1 }
 0x96b   :  { %v2002_v11 = vadd.f32 %v4569_v10, %v4255_v9 }
 0x96c   :  { %v1996_v12 = vpop.f32.mrf.mxu1 }
 0x96d   :  { %v2008_v13 = vmul.f32 0.044715, %v2002_v11  ;;  %v1997_v14 = vadd.f32 %v4255_v9, %v1996_v12  ;;  %v2006_v29 = vmul.f32 0.5, %v2002_v11 }
 0x96f   :  { %v2010_v16 = vmul.f32 %v2008_v13, %v2002_v11  ;;  %v2007_v17 = vmul.f32 0.044715, %v1997_v14  ;;  %v2005_v28 = vmul.f32 0.5, %v1997_v14 }
 0x971   :  { %v2012_v18 = vmul.f32 %v2010_v16, %v2002_v11  ;;  %v2009_v19 = vmul.f32 %v2007_v17, %v1997_v14 }
 0x973   :  { %v2014_v20 = vadd.f32 %v2012_v18, %v2002_v11  ;;  %v2011_v21 = vmul.f32 %v2009_v19, %v1997_v14  ;;  %v4267_v11 = vld [vmem:[#allocation10 + $0x1] ss:$0 sm:$0xff] }
 0x975   :  { %v2016_v22 = vmul.f32 0.7978846, %v2014_v20  ;;  %v2013_v23 = vadd.f32 %v2011_v21, %v1997_v14 }
 0x977   :  { %4817 = vtanh.f32 %v2016_v22  ;;  %v2015_v24 = vmul.f32 0.7978846, %v2013_v23 }
 0x979   :  { %4819 = vtanh.f32 %v2015_v24 }
 0x984   :  { %v4818_v25 = vpop.eup %4817 }
 0x985   :  { %v2020_v27 = vadd.f32 1.0, %v4818_v25 }
 0x986   :  { %v4820_v26 = vpop.eup %4819 }
 0x987   :  { %v2019_v39 = vadd.f32 1.0, %v4820_v26  ;;  %v2022_v32 = vmul.f32 %v2020_v27, %v2006_v29 }
 0x989   :  { %v2021_v30 = vmul.f32 %v2019_v39, %v2005_v28 }
 0x98b   :  { %4586 = vmatprep.mubr.msk.f32.mxu0 %vm2038_vm5, %v2021_v30 }
 0x98c   :  { %4587 = vmatmul.mubr.msk.f32.vlgmr.msra.gmra.mxu0 %vm2038_vm5, %v2022_v32 }
 0x98d   :  { %4612 = vmatprep.mubr.msk.f32.mxu0 %vm5229_vm1, %v5228_v34 }
 0xa4c   :  { %v4588_v36 = vpop.f32.mrf.mxu0 }
 0xa4d   :  { %v2117_v37 = vadd.f32 %v4588_v36, %v4258_v35 }
 0xa4e   :  { %v2111_v40 = vpop.f32.mrf.mxu0 }
 0xa4f   :  { %v2112_v41 = vadd.f32 %v4258_v35, %v2111_v40  ;;  %v2121_v42 = vadd.f32 %v2117_v37, %v1912_v1 }
 0xa51   :  { %v2127_v43 = vsel %vm263_vm0, %v2121_v42, 0.0  ;;  %v2120_v44 = vadd.f32 %v2112_v41, %v5669_v63 }
 0xa52   :  { %2128 = vadd.xlane.f32.xlu1 %v2127_v43 }
 0xa53   :  { %v2124_v45 = vsel %vm263_vm0, %v2120_v44, 0.0 }
 0xa54   :  { %2125 = vadd.xlane.f32.xlu0 %v2124_v45 }
 0xadb   :  { %v2129_v33 = vpop.xlane.xlu1 %2128 }
 0xadc   :  { %v2131_v31 = vmul.f32 0.03125, %v2129_v33 }
 0xadd   :  { %v2126_v46 = vpop.xlane.xlu0 %2125 }
 0xade   :  { %v2133_v47 = vsub.f32 %v2121_v42, %v2131_v31  ;;  %v2130_v48 = vmul.f32 0.03125, %v2126_v46 }
 0xae0   :  { %v2132_v49 = vsub.f32 %v2120_v44, %v2130_v48  ;;  %v2135_v50 = vmul.f32 %v2133_v47, %v2133_v47 }
 0xae2   :  { %v2139_v51 = vsel %vm263_vm0, %v2135_v50, 0.0  ;;  %v2134_v52 = vmul.f32 %v2132_v49, %v2132_v49 }
 0xae3   :  { %2140 = vadd.xlane.f32.xlu1 %v2139_v51 }
 0xae4   :  { %v2136_v53 = vsel %vm263_vm0, %v2134_v52, 0.0 }
 0xae5   :  { %2137 = vadd.xlane.f32.xlu0 %v2136_v53 }
 0xb6c   :  { %v2141_v59 = vpop.xlane.xlu1 %2140 }
 0xb6d   :  { %v2143_v60 = vmul.f32 0.03125, %v2141_v59 }
 0xb6e   :  { %v2138_v61 = vpop.xlane.xlu0 %2137 }
 0xb6f   :  { %v2145_v62 = vadd.f32 1e-12, %v2143_v60  ;;  %v2142_v63 = vmul.f32 0.03125, %v2138_v61 }
 0xb71   :  { %4821 = vrsqrt.f32 %v2145_v62  ;;  %v2144_v0 = vadd.f32 1e-12, %v2142_v63 }
 0xb73   :  { %4823 = vrsqrt.f32 %v2144_v0 }
 0xb7e   :  { %v4822_v1 = vpop.eup %4821 }
 0xb7f   :  { %v2149_v3 = vmul.f32 %v4822_v1, %v2133_v47 }
 0xb80   :  { %v4824_v4 = vpop.eup %4823 }
 0xb81   :  { %v2148_v5 = vmul.f32 %v4824_v4, %v2132_v49  ;;  %v2157_v6 = vmul.f32 %v4261_v2, %v2149_v3 }
 0xb83   :  { %v2156_v7 = vmul.f32 %v4261_v2, %v2148_v5  ;;  %v5723_v9 = vadd.f32 %v4262_v38, %v2157_v6 }
 0xb85   :  { %v5721_v8 = vadd.f32 %v4262_v38, %v2156_v7 }
 0xb87   :  { %4597 = vmatprep.mubr.msk.f32.mxu1 %vm263_vm0, %v5721_v8 }
 0xb88   :  { %4598 = vmatmul.mubr.msk.f32.vlgmr.msra.gmra.mxu1 %vm263_vm0, %v5723_v9 }
 0xb89   :  { %4602 = vmatprep.mubr.msk.f32.mxu1 %vm5229_vm1, %v5228_v34 }
 0xc48   :  { %v4599_v10 = vpop.f32.mrf.mxu1 }
 0xc49   :  { %v5745_v14 = vadd.f32 %v4599_v10, %v4267_v11 }
 0xc4a   :  { %v2251_v12 = vpop.f32.mrf.mxu1 }
 0xc4b   :  { %v5731_v13 = vadd.f32 %v4267_v11, %v2251_v12 }
 0xc4d   :  { %2428 = vrot.lane.b32.xlu1 %v5731_v13, %s5230_s26  ;;  %2261 = vrot.lane.b32.xlu0 %v5731_v13, %s5231_s13 }
 0xc51   :  { %2426 = vrot.lane.b32.xlu1 %v5731_v13, %s5232_s28  ;;  %2593 = vrot.lane.b32.xlu0 %v5731_v13, %s5233_s8 }
 0xc55   :  { %2595 = vrot.lane.b32.xlu1 %v5731_v13, %s5234_s4  ;;  %2760 = vrot.lane.b32.xlu0 %v5731_v13, %s5235_s27 }
 0xc59   :  { %2762 = vrot.lane.b32.xlu1 %v5731_v13, %s5236_s11  ;;  %3110 = vrot.lane.b32.xlu0 %v5745_v14, %s5230_s26 }
 0xc5d   :  { %2943 = vrot.lane.b32.xlu1 %v5745_v14, %s5231_s13  ;;  %3277 = vrot.lane.b32.xlu0 %v5745_v14, %s5234_s4 }
 0xc61   :  { %3108 = vrot.lane.b32.xlu1 %v5745_v14, %s5232_s28  ;;  %3444 = vrot.lane.b32.xlu0 %v5745_v14, %s5236_s11 }
 0xc65   :  { %3275 = vrot.lane.b32.xlu1 %v5745_v14, %s5233_s8 }
 0xc69   :  { %3442 = vrot.lane.b32.xlu1 %v5745_v14, %s5235_s27 }
 0xcbf   :  { %v2429_v16 = vpop.permute.xlu1 %2428  ;;  %v2262_v17 = vpop.permute.xlu0 %2261 }
 0xcc0   :  { %4601 = vmatpush3.xpose.msk.msra.mxu1 %vm403_vm2, %v2262_v17  ;;  %4611 = vmatpush3.xpose.msk.msra.mxu0 %vm403_vm2, %v2429_v16 }
 0xcc1   :  { %4620 = vmatprep.subr.mxu0 %v5228_v34  ;;  %4605 = vmatprep.subr.mxu1 %v5228_v34 }
 0xcc3   :  { %v2427_v18 = vpop.permute.xlu1 %2426  ;;  %4603 = vmatmul.mubr.msk.f32.vlgmr.msra.gmra.mxu1 %vm403_vm2, %v5731_v13  ;;  %v2594_v19 = vpop.permute.xlu0 %2593 }
 0xcc4   :  { %4613 = vmatmul.mubr.msk.f32.vlgmr.msra.gmra.mxu0 %vm403_vm2, %v2427_v18  ;;  %4607 = vmatprep.mubr.msk.f32.mxu1 %vm5229_vm1, %v5228_v34 }
 0xcc5   :  { %4622 = vmatprep.mubr.msk.f32.mxu0 %vm5229_vm1, %v5228_v34 }
 0xcc7   :  { %v2596_v20 = vpop.permute.xlu1 %2595  ;;  %v2761_v21 = vpop.permute.xlu0 %2760 }
 0xcc8   :  { %4621 = vmatpush3.xpose.msk.msra.mxu0 %vm403_vm2, %v2596_v20 }
 0xcc9   :  { %4630 = vmatprep.subr.mxu0 %v5228_v34 }
 0xccb   :  { %v2763_v22 = vpop.permute.xlu1 %2762  ;;  %4623 = vmatmul.mubr.msk.f32.vlgmr.msra.gmra.mxu0 %vm403_vm2, %v2594_v19  ;;  %v3111_v23 = vpop.permute.xlu0 %3110 }
 0xccc   :  { %4631 = vmatpush3.xpose.msk.msra.mxu0 %vm403_vm2, %v2763_v22  ;;  %4632 = vmatprep.mubr.msk.f32.mxu0 %vm5229_vm1, %v5228_v34 }
 0xccd   :  { %4640 = vmatprep.subr.mxu0 %v5228_v34 }
 0xccf   :  { %v2944_v24 = vpop.permute.xlu1 %2943  ;;  %4633 = vmatmul.mubr.msk.f32.vlgmr.msra.gmra.mxu0 %vm403_vm2, %v2761_v21  ;;  %v3278_v26 = vpop.permute.xlu0 %3277 }
 0xcd0   :  { %4641 = vmatpush3.xpose.msk.msra.mxu0 %vm403_vm2, %v2944_v24  ;;  %4642 = vmatprep.mubr.msk.f32.mxu0 %vm5229_vm1, %v5228_v34 }
 0xcd1   :  { %4650 = vmatprep.subr.mxu0 %v5228_v34 }
 0xcd3   :  { %v3109_v25 = vpop.permute.xlu1 %3108  ;;  %4643 = vmatmul.mubr.msk.f32.vlgmr.msra.gmra.mxu0 %vm403_vm2, %v5745_v14  ;;  %v3445_v28 = vpop.permute.xlu0 %3444 }
 0xcd4   :  { %4651 = vmatpush3.xpose.msk.msra.mxu0 %vm403_vm2, %v3111_v23  ;;  %4652 = vmatprep.mubr.msk.f32.mxu0 %vm5229_vm1, %v5228_v34 }
 0xcd5   :  { %4660 = vmatprep.subr.mxu0 %v5228_v34 }
 0xcd7   :  { %4653 = vmatmul.mubr.msk.f32.vlgmr.msra.gmra.mxu0 %vm403_vm2, %v3109_v25  ;;  %v3276_v27 = vpop.permute.xlu1 %3275 }
 0xcd8   :  { %4661 = vmatpush3.xpose.msk.msra.mxu0 %vm403_vm2, %v3278_v26  ;;  %4662 = vmatprep.mubr.msk.f32.mxu0 %vm5229_vm1, %v5228_v34 }
 0xcd9   :  { %4670 = vmatprep.subr.mxu0 %v5228_v34 }
 0xcdb   :  { %4663 = vmatmul.mubr.msk.f32.vlgmr.msra.gmra.mxu0 %vm403_vm2, %v3276_v27  ;;  %v3443_v39 = vpop.permute.xlu1 %3442 }
 0xcdc   :  { %4671 = vmatpush3.xpose.msk.msra.mxu0 %vm403_vm2, %v3445_v28  ;;  %4672 = vmatprep.mubr.msk.f32.mxu0 %vm5229_vm1, %v5228_v34 }
 0xcdf   :  { %4673 = vmatmul.mubr.msk.f32.vlgmr.msra.gmra.mxu0 %vm403_vm2, %v3443_v39 }
 0xd83   :  { %v2333_v29 = vpop.f32.mrf.mxu1 }
 0xd84   :  { %v2337_v30 = vmul.f32 0.35355338, %v2333_v29  ;;  %v2500_v32 = vpop.f32.mrf.mxu0 }
 0xd85   :  { %v2504_v35 = vmul.f32 0.35355338, %v2500_v32  ;;  %v4604_v36 = vpop.f32.mrf.mxu1 }
 0xd86   :  { %v4614_v37 = vpop.f32.mrf.mxu0  ;;  %v2338_v40 = vadd.f32 %v2337_v30, %v5524_v58 }
 0xd87   :  { %v2505_v41 = vadd.f32 %v2504_v35, %v5524_v58 }
 0xd88   :  { %v2339_v42 = vsel %vm403_vm2, %v2338_v40, -inf }
 0xd89   :  { %2340 = vmax.xlane.f32.xlu0 %v2339_v42  ;;  %v2506_v43 = vsel %vm403_vm2, %v2505_v41, -inf }
 0xd8a   :  { %2507 = vmax.xlane.f32.xlu1 %v2506_v43 }
 0xd8b   :  { %v2667_v44 = vpop.f32.mrf.mxu0 }
 0xd8c   :  { %v2671_v45 = vmul.f32 0.35355338, %v2667_v44 }
 0xd8d   :  { %v4624_v33 = vpop.f32.mrf.mxu0 }
 0xd8e   :  { %v5807_v31 = vadd.f32 %v2671_v45, %v5524_v58 }
 0xd8f   :  { %v2834_v46 = vpop.f32.mrf.mxu0 }
 0xd90   :  { %v2838_v47 = vmul.f32 0.35355338, %v2834_v46  ;;  %v2673_v48 = vsel %vm403_vm2, %v5807_v31, -inf }
 0xd91   :  { %2674 = vmax.xlane.f32.xlu0 %v2673_v48  ;;  %v4634_v49 = vpop.f32.mrf.mxu0 }
 0xd92   :  { %v2839_v50 = vadd.f32 %v2838_v47, %v5524_v58 }
 0xd93   :  { %v3015_v51 = vpop.f32.mrf.mxu0 }
 0xd94   :  { %v3019_v52 = vmul.f32 0.35355338, %v3015_v51  ;;  %v2840_v53 = vsel %vm403_vm2, %v2839_v50, -inf }
 0xd95   :  { %2841 = vmax.xlane.f32.xlu0 %v2840_v53  ;;  %v4644_v54 = vpop.f32.mrf.mxu0 }
 0xd96   :  { %v3020_v55 = vadd.f32 %v3019_v52, %v5536_v15 }
 0xd97   :  { %v3182_v56 = vpop.f32.mrf.mxu0 }
 0xd98   :  { %v3186_v57 = vmul.f32 0.35355338, %v3182_v56  ;;  %v3021_v59 = vsel %vm403_vm2, %v3020_v55, -inf }
 0xd99   :  { %3022 = vmax.xlane.f32.xlu0 %v3021_v59  ;;  %v4654_v60 = vpop.f32.mrf.mxu0 }
 0xd9a   :  { %v3187_v61 = vadd.f32 %v3186_v57, %v5536_v15 }
 0xd9b   :  { %v3349_v62 = vpop.f32.mrf.mxu0 }
 0xd9c   :  { %v3353_v63 = vmul.f32 0.35355338, %v3349_v62  ;;  %v3188_v58 = vsel %vm403_vm2, %v3187_v61, -inf }
 0xd9d   :  { %3189 = vmax.xlane.f32.xlu1 %v3188_v58  ;;  %v4664_v0 = vpop.f32.mrf.mxu0 }
 0xd9e   :  { %v3354_v1 = vadd.f32 %v3353_v63, %v5536_v15 }
 0xd9f   :  { %v3516_v2 = vpop.f32.mrf.mxu0 }
 0xda0   :  { %v3355_v3 = vsel %vm403_vm2, %v3354_v1, -inf  ;;  %v3520_v5 = vmul.f32 0.35355338, %v3516_v2 }
 0xda1   :  { %3356 = vmax.xlane.f32.xlu0 %v3355_v3  ;;  %v4674_v4 = vpop.f32.mrf.mxu0 }
 0xda2   :  { %v3521_v6 = vadd.f32 %v3520_v5, %v5536_v15 }
 0xda4   :  { %v3522_v38 = vsel %vm403_vm2, %v3521_v6, -inf }
 0xdae   :  { %2350 = vrot.lane.b32.xlu1 %v5731_v13, %s5237_s29 }
 0xdd2   :  { %3523 = vmax.xlane.f32.xlu1 %v3522_v38 }
 0xde3   :  { %2684 = vrot.lane.b32.xlu1 %v5731_v13, %s5238_s30 }
 0xde7   :  { %2851 = vrot.lane.b32.xlu1 %v5731_v13, %s5239_s7 }
 0xdeb   :  { %3032 = vrot.lane.b32.xlu1 %v5745_v14, %s5237_s29  ;;  %s5242_s29 = smov [#allocation26]  }
 0xe12   :  { %v2341_v7 = vpop.xlane.xlu0 %2340 }
 0xe13   :  { %v2342_v10 = vsub.f32 %v2338_v40, %v2341_v7  ;;  %v2508_v11 = vpop.xlane.xlu1 %2507 }
 0xe14   :  { %v2509_v12 = vsub.f32 %v2505_v41, %v2508_v11 }
 0xe15   :  { %v2343_v16 = vmul.f32 1.442695, %v2342_v10 }
 0xe16   :  { %v2510_v17 = vmul.f32 1.442695, %v2509_v12 }
 0xe17   :  { %4825 = vpow2.f32 %v2343_v16 }
 0xe18   :  { %4827 = vpow2.f32 %v2510_v17 }
 0xe1a   :  { %v2675_v15 = vpop.xlane.xlu0 %2674 }
 0xe1b   :  { %v2676_v39 = vsub.f32 %v5807_v31, %v2675_v15 }
 0xe1d   :  { %v2677_v30 = vmul.f32 1.442695, %v2676_v39 }
 0xe1e   :  { %v2842_v18 = vpop.xlane.xlu0 %2841 }
 0xe1f   :  { %v2843_v19 = vsub.f32 %v2839_v50, %v2842_v18 }
 0xe21   :  { %v2844_v20 = vmul.f32 1.442695, %v2843_v19 }
 0xe22   :  { %v3023_v29 = vpop.xlane.xlu0 %3022 }
 0xe23   :  { %4829 = vpow2.f32 %v2844_v20  ;;  %v3024_v32 = vsub.f32 %v3020_v55, %v3023_v29 }
 0xe24   :  { %v4826_v21 = vpop.eup %4825  ;;  %4831 = vpow2.f32 %v2677_v30  ;;  %v4295_v30 = vld [vmem:[%s6010_s6 + $0x28] sm:$0xff] }
 0xe25   :  { %v5829_v22 = vpop.eup %4827  ;;  %v2345_v23 = vsel %vm403_vm2, %v4826_v21, 0.0  ;;  %v3025_v36 = vmul.f32 1.442695, %v3024_v32  ;;  %v4294_v32 = vld [vmem:[%s6010_s6 + $0x20] sm:$0xff] }
 0xe26   :  { %v3190_v24 = vpop.xlane.xlu1 %3189  ;;  %2346 = vadd.xlane.f32.xlu0 %v2345_v23  ;;  %v2512_v25 = vsel %vm403_vm2, %v5829_v22, 0.0 }
 0xe27   :  { %2513 = vadd.xlane.f32.xlu1 %v2512_v25  ;;  %4833 = vpow2.f32 %v3025_v36  ;;  %v3191_v40 = vsub.f32 %v3187_v61, %v3190_v24 }
 0xe29   :  { %v3192_v42 = vmul.f32 1.442695, %v3191_v40 }
 0xe2a   :  { %v2351_v26 = vpop.permute.xlu1 %2350  ;;  %v3357_v35 = vpop.xlane.xlu0 %3356 }
 0xe2b   :  { %4606 = vmatpush3.msra.mxu1 %v2351_v26  ;;  %v3358_v37 = vsub.f32 %v3354_v1, %v3357_v35 }
 0xe2c   :  { %4615 = vmatprep.subr.mxu1 %v5228_v34 }
 0xe2d   :  { %v3359_v41 = vmul.f32 1.442695, %v3358_v37 }
 0xe2f   :  { %4835 = vpow2.f32 %v3359_v41 }
 0xe30   :  { %v5835_v27 = vpop.eup %4829  ;;  %4837 = vpow2.f32 %v3192_v42 }
 0xe31   :  { %v2846_v28 = vsel %vm403_vm2, %v5835_v27, 0.0  ;;  %v4832_v43 = vpop.eup %4831 }
 0xe32   :  { %2847 = vadd.xlane.f32.xlu1 %v2846_v28  ;;  %v4296_v28 = vld [vmem:[%s6010_s6 + $0x30] sm:$0xff] }
 0xe34   :  { %v5845_v44 = vpop.eup %4833 }
 0xe35   :  { %v3027_v46 = vsel %vm403_vm2, %v5845_v44, 0.0 }
 0xe3c   :  { %2517 = vrot.lane.b32.xlu0 %v5731_v13, %s5240_s21  ;;  %v2679_v13 = vsel %vm403_vm2, %v4832_v43, 0.0  ;;  %v5849_v47 = vpop.eup %4835 }
 0xe3d   :  { %v3361_v48 = vsel %vm403_vm2, %v5849_v47, 0.0  ;;  %v4838_v49 = vpop.eup %4837 }
 0xe3e   :  { %v3194_v50 = vsel %vm403_vm2, %v4838_v49, 0.0 }
 0xe43   :  { %3199 = vrot.lane.b32.xlu1 %v5745_v14, %s5240_s21 }
 0xe5b   :  { %v3524_v45 = vpop.xlane.xlu1 %3523  ;;  %2680 = vadd.xlane.f32.xlu0 %v2679_v13 }
 0xe5c   :  { %v3525_v33 = vsub.f32 %v3521_v6, %v3524_v45 }
 0xe5e   :  { %v3526_v31 = vmul.f32 1.442695, %v3525_v33 }
 0xe5f   :  { %3028 = vadd.xlane.f32.xlu0 %v3027_v46  ;;  %v2685_v53 = vpop.permute.xlu1 %2684 }
 0xe60   :  { %4839 = vpow2.f32 %v3526_v31 }
 0xe63   :  { %3362 = vadd.xlane.f32.xlu0 %v3361_v48  ;;  %v2852_v54 = vpop.permute.xlu1 %2851 }
 0xe67   :  { %3195 = vadd.xlane.f32.xlu1 %v3194_v50  ;;  %v3033_v55 = vpop.permute.xlu1 %3032 }
 0xe6d   :  { %v5854_v51 = vpop.eup %4839 }
 0xe6e   :  { %v3528_v52 = vsel %vm403_vm2, %v5854_v51, 0.0 }
 0xe6f   :  { %3529 = vadd.xlane.f32.xlu0 %v3528_v52 }
 0xe78   :  { %3533 = vrot.lane.b32.xlu1 %v5745_v14, %s5239_s7 }
 0xe85   :  { %3366 = vrot.lane.b32.xlu0 %v5745_v14, %s5238_s30  ;;  %s4205_s30 = sshll.u32 %s5242_s29, 4  ;;  %s4206_s30 = int_to_ptr.vmem [resolvable:$true] %s4205_s30 }
 0xe86   :  { %p5176_p6 = scmp.lt.s32.totalorder %s4206_s30, %s4206_s30 }
 0xeaf   :  { %v2347_v56 = vpop.xlane.xlu0 %2346 }
 0xeb0   :  { %4841 = vrcp.f32 %v2347_v56  ;;  %v2514_v57 = vpop.xlane.xlu1 %2513 }
 0xeb1   :  { %4843 = vrcp.f32 %v2514_v57 }
 0xeb3   :  { %v2518_v62 = vpop.permute.xlu0 %2517 }
 0xebb   :  { %v2848_v63 = vpop.xlane.xlu1 %2847 }
 0xebd   :  { %v4842_v59 = vpop.eup %4841 }
 0xebe   :  { %v2349_v60 = vmul.f32 %v4842_v59, %v4826_v21  ;;  %v4844_v61 = vpop.eup %4843 }
 0xebf   :  { %v2516_v14 = vmul.f32 %v4844_v61, %v5829_v22  ;;  %v3200_v1 = vpop.permute.xlu1 %3199 }
 0xec0   :  { %4608 = vmatmul.mubr.msk.f32.vlgmr.msra.gmra.mxu1 %vm403_vm2, %v2349_v60 }
 0xec1   :  { %4616 = vmatpush3.msra.mxu1 %v2518_v62  ;;  %4617 = vmatprep.mubr.msk.f32.mxu1 %vm5229_vm1, %v5228_v34 }
 0xec2   :  { %4625 = vmatprep.subr.mxu1 %v5228_v34 }
 0xec4   :  { %4618 = vmatmul.mubr.msk.f32.vlgmr.msra.gmra.mxu1 %vm403_vm2, %v2516_v14 }
 0xec5   :  { %4626 = vmatpush3.msra.mxu1 %v2685_v53  ;;  %4627 = vmatprep.mubr.msk.f32.mxu1 %vm5229_vm1, %v5228_v34 }
 0xec6   :  { %4635 = vmatprep.subr.mxu1 %v5228_v34 }
 0xee4   :  { %v2681_v58 = vpop.xlane.xlu0 %2680 }
 0xee5   :  { %4845 = vrcp.f32 %v2681_v58 }
 0xee6   :  { %4847 = vrcp.f32 %v2848_v63 }
 0xee8   :  { %v3029_v0 = vpop.xlane.xlu0 %3028 }
 0xee9   :  { %4849 = vrcp.f32 %v3029_v0 }
 0xeec   :  { %v3363_v2 = vpop.xlane.xlu0 %3362 }
 0xef0   :  { %v3196_v3 = vpop.xlane.xlu1 %3195 }
 0xef1   :  { %4851 = vrcp.f32 %v3196_v3 }
 0xef2   :  { %v4846_v4 = vpop.eup %4845  ;;  %4853 = vrcp.f32 %v3363_v2 }
 0xef3   :  { %v2683_v5 = vmul.f32 %v4846_v4, %v4832_v43  ;;  %v4848_v6 = vpop.eup %4847 }
 0xef4   :  { %v2850_v38 = vmul.f32 %v4848_v6, %v5835_v27  ;;  %v3534_v19 = vpop.permute.xlu1 %3533  ;;  %v4297_v27 = vld [vmem:[%s6010_s6 + $0x38] sm:$0xff] }
 0xef5   :  { %4628 = vmatmul.mubr.msk.f32.vlgmr.msra.gmra.mxu1 %vm403_vm2, %v2683_v5  ;;  %4680 = vmatprep.subr.mxu0 %v4297_v27 }
 0xef6   :  { %4636 = vmatpush3.msra.mxu1 %v2852_v54  ;;  %4637 = vmatprep.mubr.msk.f32.mxu1 %vm5229_vm1, %v5228_v34  ;;  %v4850_v7 = vpop.eup %4849 }
 0xef7   :  { %4645 = vmatprep.subr.mxu1 %v5228_v34  ;;  %v3031_v11 = vmul.f32 %v4850_v7, %v5845_v44  ;;  %4681 = vmatpush3.msra.mxu0 %v4297_v27  ;;  %v4305_v7 = vld [vmem:[%s6014_s10 + $0x30] sm:$0xff] }
 0xef8   :  { %v3530_v10 = vpop.xlane.xlu0 %3529  ;;  %4682 = vmatprep.subr.mxu0 %v4296_v28 }
 0xef9   :  { %4855 = vrcp.f32 %v3530_v10  ;;  %4638 = vmatmul.mubr.msk.f32.vlgmr.msra.gmra.mxu1 %vm403_vm2, %v2850_v38  ;;  %4683 = vmatpush3.msra.mxu0 %v4296_v28  ;;  %v4304_v10 = vld [vmem:[%s6014_s10 + $0x28] sm:$0xff] }
 0xefa   :  { %4646 = vmatpush3.msra.mxu1 %v3033_v55  ;;  %4647 = vmatprep.mubr.msk.f32.mxu1 %vm5229_vm1, %v5228_v34  ;;  %v4298_v55 = vld [vmem:[#allocation11 + $0x1] ss:$0 sm:$0xff] }
 0xefb   :  { %4655 = vmatprep.subr.mxu1 %v5228_v34  ;;  %4684 = vmatprep.subr.mxu0 %v4295_v30 }
 0xefc   :  { %v3367_v15 = vpop.permute.xlu0 %3366  ;;  %4685 = vmatpush3.msra.mxu0 %v4295_v30  ;;  %v4316_v30 = vld [vmem:[%s6016_s12 + $0x70] sm:$0xff] }
 0xefd   :  { %4648 = vmatmul.mubr.msk.f32.vlgmr.msra.gmra.mxu1 %vm403_vm2, %v3031_v11  ;;  %4686 = vmatprep.subr.mxu0 %v4294_v32  ;;  %v4303_v11 = vld [vmem:[%s6014_s10 + $0x20] sm:$0xff] }
 0xefe   :  { %v4852_v12 = vpop.eup %4851  ;;  %4656 = vmatpush3.msra.mxu1 %v3200_v1  ;;  %4657 = vmatprep.mubr.msk.f32.mxu1 %vm5229_vm1, %v5228_v34 }
 0xeff   :  { %4665 = vmatprep.subr.mxu1 %v5228_v34  ;;  %v3198_v16 = vmul.f32 %v4852_v12, %v4838_v49  ;;  %v4854_v17 = vpop.eup %4853  ;;  %4687 = vmatpush3.msra.mxu0 %v4294_v32  ;;  %v4315_v32 = vld [vmem:[%s6016_s12 + $0x68] sm:$0xff] }
 0xf00   :  { %v3365_v18 = vmul.f32 %v4854_v17, %v5849_v47 }
 0xf01   :  { %4658 = vmatmul.mubr.msk.f32.vlgmr.msra.gmra.mxu1 %vm403_vm2, %v3198_v16 }
 0xf02   :  { %4666 = vmatpush3.msra.mxu1 %v3367_v15  ;;  %4667 = vmatprep.mubr.msk.f32.mxu1 %vm5229_vm1, %v5228_v34 }
 0xf03   :  { %4675 = vmatprep.subr.mxu1 %v5228_v34 }
 0xf05   :  { %4668 = vmatmul.mubr.msk.f32.vlgmr.msra.gmra.mxu1 %vm403_vm2, %v3365_v18 }
 0xf06   :  { %v4856_v20 = vpop.eup %4855  ;;  %4676 = vmatpush3.msra.mxu1 %v3534_v19  ;;  %4677 = vmatprep.mubr.msk.f32.mxu1 %vm5229_vm1, %v5228_v34 }
 0xf07   :  { %v3532_v21 = vmul.f32 %v4856_v20, %v5854_v51 }
 0xf09   :  { %4678 = vmatmul.mubr.msk.f32.vlgmr.msra.gmra.mxu1 %vm403_vm2, %v3532_v21  ;;  %v4301_v21 = vld [vmem:[#allocation13 + $0x1] ss:$0 sm:$0xff] }
 0xf80   :  { %v2422_v22 = vpop.f32.mrf.mxu1 }
 0xf82   :  { %v4609_v23 = vpop.f32.mrf.mxu1 }
 0xf83   :  { %v4302_v23 = vld [vmem:[#allocation14 + $0x1] ss:$0 sm:$0xff] }
 0xf84   :  { %v2589_v24 = vpop.f32.mrf.mxu1 }
 0xf85   :  { %2928 = vrot.lane.b32.xlu0 %v2589_v24, %s5220_s0 }
 0xf86   :  { %v4619_v25 = vpop.f32.mrf.mxu1 }
 0xfb5   :  { %v2756_v26 = vpop.f32.mrf.mxu1 }
 0xfb6   :  { %2932 = vrot.lane.b32.xlu1 %v2756_v26, %s5213_s22 }
 0xfb7   :  { %v4629_v39 = vpop.f32.mrf.mxu1 }
 0xfb9   :  { %v2923_v29 = vpop.f32.mrf.mxu1 }
 0xfba   :  { %2936 = vrot.lane.b32.xlu1 %v2923_v29, %s5241_s5  ;;  %v4317_v29 = vld [vmem:[%s6016_s12 + $0x78] sm:$0xff] }
 0xfbb   :  { %v4639_v35 = vpop.f32.mrf.mxu1  ;;  %4702 = vmatprep.subr.mxu0 %v4317_v29 }
 0xfbc   :  { %v4314_v35 = vld [vmem:[%s6016_s12 + $0x60] sm:$0xff] }
 0xfbd   :  { %v3104_v36 = vpop.f32.mrf.mxu1 }
 0xfbf   :  { %v4649_v37 = vpop.f32.mrf.mxu1 }
 0xfc0   :  { %v4312_v37 = vld [vmem:[%s6016_s12 + $0x50] sm:$0xff] }
 0xfc1   :  { %v3271_v40 = vpop.f32.mrf.mxu1 }
 0xfc2   :  { %3610 = vrot.lane.b32.xlu0 %v3271_v40, %s5220_s0  ;;  %v4311_v40 = vld [vmem:[%s6016_s12 + $0x48] sm:$0xff] }
 0xfc3   :  { %v4659_v41 = vpop.f32.mrf.mxu1 }
 0xfc4   :  { %v4310_v41 = vld [vmem:[%s6016_s12 + $0x40] sm:$0xff] }
 0xfc5   :  { %v3438_v42 = vpop.f32.mrf.mxu1 }
 0xfc6   :  { %3614 = vrot.lane.b32.xlu0 %v3438_v42, %s5213_s22  ;;  %v4307_v42 = vld [vmem:[#allocation16 + $0x1] ss:$0 sm:$0xff] }
 0xfc7   :  { %v4669_v43 = vpop.f32.mrf.mxu1 }
 0xfc9   :  { %v3605_v13 = vpop.f32.mrf.mxu1 }
 0xfca   :  { %3618 = vrot.lane.b32.xlu1 %v3605_v13, %s5241_s5 }
 0xfcb   :  { %v4679_v44 = vpop.f32.mrf.mxu1 }
 0xff7   :  { %v2929_v45 = vpop.permute.xlu0 %2928 }
 0xff8   :  { %v2939_v31 = vsel %vm403_vm2, %v2422_v22, %v2929_v45 }
0x1028   :  { %v2933_v33 = vpop.permute.xlu1 %2932 }
0x1029   :  { %v2940_v46 = vsel %vm1085_vm3, %v2939_v31, %v2933_v33 }
0x102c   :  { %v2937_v47 = vpop.permute.xlu1 %2936 }
0x102d   :  { %v2941_v48 = vsel %vm1087_vm4, %v2940_v46, %v2937_v47 }
0x102e   :  { %4688 = vmatprep.mubr.msk.f32.mxu0 %vm263_vm0, %v2941_v48 }
0x1034   :  { %v3611_v49 = vpop.permute.xlu0 %3610 }
0x1035   :  { %v3621_v51 = vsel %vm403_vm2, %v3104_v36, %v3611_v49  ;;  %v4313_v36 = vld [vmem:[%s6016_s12 + $0x58] sm:$0xff] }
0x1038   :  { %v3615_v50 = vpop.permute.xlu0 %3614 }
0x1039   :  { %v3622_v52 = vsel %vm1085_vm3, %v3621_v51, %v3615_v50 }
0x103c   :  { %v3619_v53 = vpop.permute.xlu1 %3618 }
0x103d   :  { %v3623_v54 = vsel %vm1087_vm4, %v3622_v52, %v3619_v53 }
0x103e   :  { %4689 = vmatmul.mubr.msk.f32.vlgmr.msra.gmra.mxu0 %vm263_vm0, %v3623_v54 }
0x103f   :  { %4703 = vmatpush3.msra.mxu0 %v4317_v29 }
0x1040   :  { %4704 = vmatprep.subr.mxu0 %v4316_v30 }
0x1041   :  { %4705 = vmatpush3.msra.mxu0 %v4316_v30  ;;  %v4322_v30 = vld [vmem:[#allocation20 + $0x1] ss:$0 sm:$0xff] }
0x1042   :  { %4706 = vmatprep.subr.mxu0 %v4315_v32 }
0x1043   :  { %4707 = vmatpush3.msra.mxu0 %v4315_v32 }
0x1044   :  { %4708 = vmatprep.subr.mxu0 %v4314_v35 }
0x1045   :  { %4709 = vmatpush3.msra.mxu0 %v4314_v35 }
0x1046   :  { %4710 = vmatprep.subr.mxu0 %v4313_v36 }
0x1047   :  { %4711 = vmatpush3.msra.mxu0 %v4313_v36 }
0x1048   :  { %4712 = vmatprep.subr.mxu0 %v4312_v37 }
0x1049   :  { %4713 = vmatpush3.msra.mxu0 %v4312_v37 }
0x104a   :  { %4714 = vmatprep.subr.mxu0 %v4311_v40 }
0x104b   :  { %4715 = vmatpush3.msra.mxu0 %v4311_v40 }
0x104c   :  { %4716 = vmatprep.subr.mxu0 %v4310_v41 }
0x104d   :  { %4717 = vmatpush3.msra.mxu0 %v4310_v41 }
0x10fe   :  { %v4690_v56 = vpop.f32.mrf.mxu0 }
0x10ff   :  { %v3715_v57 = vadd.f32 %v4690_v56, %v4298_v55 }
0x1100   :  { %v3709_v59 = vpop.f32.mrf.mxu0 }
0x1101   :  { %v3719_v60 = vadd.f32 %v3715_v57, %v5723_v9  ;;  %v3710_v61 = vadd.f32 %v4298_v55, %v3709_v59 }
0x1103   :  { %v3718_v62 = vadd.f32 %v3710_v61, %v5721_v8  ;;  %v3727_v14 = vsel %vm263_vm0, %v3719_v60, 0.0  ;;  %v4306_v8 = vld [vmem:[%s6014_s10 + $0x38] sm:$0xff] }
0x1104   :  { %3728 = vadd.xlane.f32.xlu1 %v3727_v14  ;;  %4691 = vmatprep.subr.mxu1 %v4306_v8  ;;  %v4318_v14 = vld [vmem:[#allocation17 + $0x1] ss:$0 sm:$0xff] }
0x1105   :  { %v3724_v63 = vsel %vm263_vm0, %v3718_v62, 0.0  ;;  %4692 = vmatpush3.msra.mxu1 %v4306_v8 }
0x1106   :  { %3725 = vadd.xlane.f32.xlu0 %v3724_v63  ;;  %4693 = vmatprep.subr.mxu1 %v4305_v7 }
0x1107   :  { %4694 = vmatpush3.msra.mxu1 %v4305_v7 }
0x1108   :  { %4695 = vmatprep.subr.mxu1 %v4304_v10 }
0x1109   :  { %4696 = vmatpush3.msra.mxu1 %v4304_v10 }
0x110a   :  { %4697 = vmatprep.subr.mxu1 %v4303_v11 }
0x110b   :  { %4698 = vmatpush3.msra.mxu1 %v4303_v11 }
0x110c   :  { %4721 = vmatprep.subr.mxu1 %v5228_v34 }
0x118d   :  { %v3729_v58 = vpop.xlane.xlu1 %3728 }
0x118e   :  { %v3731_v0 = vmul.f32 0.03125, %v3729_v58 }
0x118f   :  { %v3726_v1 = vpop.xlane.xlu0 %3725 }
0x1190   :  { %v3730_v2 = vmul.f32 0.03125, %v3726_v1  ;;  %v3733_v3 = vsub.f32 %v3719_v60, %v3731_v0 }
0x1192   :  { %v3732_v4 = vsub.f32 %v3718_v62, %v3730_v2  ;;  %v3735_v38 = vmul.f32 %v3733_v3, %v3733_v3 }
0x1194   :  { %v3734_v5 = vmul.f32 %v3732_v4, %v3732_v4  ;;  %v3739_v9 = vsel %vm263_vm0, %v3735_v38, 0.0 }
0x1196   :  { %v3736_v6 = vsel %vm263_vm0, %v3734_v5, 0.0 }
0x1197   :  { %3737 = vadd.xlane.f32.xlu0 %v3736_v6 }
0x119b   :  { %3740 = vadd.xlane.f32.xlu0 %v3739_v9 }
0x1220   :  { %v3738_v12 = vpop.xlane.xlu0 %3737 }
0x1221   :  { %v3742_v16 = vmul.f32 0.03125, %v3738_v12 }
0x1223   :  { %v3744_v17 = vadd.f32 1e-12, %v3742_v16 }
0x1224   :  { %v3741_v15 = vpop.xlane.xlu0 %3740 }
0x1225   :  { %4857 = vrsqrt.f32 %v3744_v17  ;;  %v3743_v18 = vmul.f32 0.03125, %v3741_v15  ;;  %v4032_v15 = vld [vmem:[#allocation22 + $0x18] sm:$0xff] }
0x1227   :  { %v3745_v19 = vadd.f32 1e-12, %v3743_v18  ;;  %v4031_v18 = vld [vmem:[#allocation22 + $0x10] sm:$0xff] }
0x1229   :  { %4859 = vrsqrt.f32 %v3745_v19  ;;  %v4030_v19 = vld [vmem:[#allocation22 + $0x8] sm:$0xff] }
0x1232   :  { %v4858_v20 = vpop.eup %4857 }
0x1233   :  { %v3748_v22 = vmul.f32 %v4858_v20, %v3732_v4  ;;  %v4029_v20 = vld [vmem:[#allocation22] sm:$0xff] }
0x1235   :  { %v3756_v24 = vmul.f32 %v4301_v21, %v3748_v22 }
0x1236   :  { %v4860_v25 = vpop.eup %4859 }
0x1237   :  { %v3749_v26 = vmul.f32 %v4860_v25, %v3733_v3  ;;  %v5940_v27 = vadd.f32 %v4302_v23, %v3756_v24 }
0x1239   :  { %v3757_v28 = vmul.f32 %v4301_v21, %v3749_v26  ;;  %4699 = vmatprep.mubr.msk.f32.mxu1 %vm263_vm0, %v5940_v27 }
0x123b   :  { %v3765_v39 = vadd.f32 %v4302_v23, %v3757_v28  ;;  %v4321_v28 = vld [vmem:[#allocation19 + $0x1] ss:$0 sm:$0xff] }
0x123d   :  { %4700 = vmatmul.mubr.msk.f32.vlgmr.msra.gmra.mxu1 %vm263_vm0, %v3765_v39 }
0x123e   :  { %4729 = vmatprep.mubr.msk.f32.mxu1 %vm5229_vm1, %v5228_v34  ;;  %4722 = vmatpush3.msra.mxu1 %v4032_v15 }
0x123f   :  { %4723 = vmatprep.subr.mxu1 %v5228_v34 }
0x1240   :  { %4724 = vmatpush3.msra.mxu1 %v4031_v18 }
0x1241   :  { %4725 = vmatprep.subr.mxu1 %v5228_v34 }
0x1242   :  { %4726 = vmatpush3.msra.mxu1 %v4030_v19 }
0x1243   :  { %4727 = vmatprep.subr.mxu1 %v5228_v34 }
0x1244   :  { %4728 = vmatpush3.msra.mxu1 %v4029_v20 }
0x1245   :  { %4732 = vmatprep.subr.mxu1 %v5228_v34 }
0x12fd   :  { %v4701_v43 = vpop.f32.mrf.mxu1 }
0x12fe   :  { %v3857_v13 = vadd.f32 %v4701_v43, %v4307_v42  ;;  %v4117_v43 = vld [vmem:[%s6022_s18 + $0x18] sm:$0xff] }
0x12ff   :  { %v3851_v44 = vpop.f32.mrf.mxu1 }
0x1300   :  { %v3863_v45 = vmul.f32 0.044715, %v3857_v13  ;;  %v3852_v33 = vadd.f32 %v4307_v42, %v3851_v44  ;;  %v3861_v60 = vmul.f32 0.5, %v3857_v13  ;;  %v4115_v44 = vld [vmem:[%s6022_s18 + $0x8] sm:$0xff] }
0x1302   :  { %v3865_v31 = vmul.f32 %v3863_v45, %v3857_v13  ;;  %v3862_v46 = vmul.f32 0.044715, %v3852_v33  ;;  %v3860_v57 = vmul.f32 0.5, %v3852_v33  ;;  %v4114_v45 = vld [vmem:[%s6022_s18] sm:$0xff] }
0x1304   :  { %v3867_v47 = vmul.f32 %v3865_v31, %v3857_v13  ;;  %v3864_v48 = vmul.f32 %v3862_v46, %v3852_v33 }
0x1306   :  { %v3869_v49 = vadd.f32 %v3867_v47, %v3857_v13  ;;  %v3866_v50 = vmul.f32 %v3864_v48, %v3852_v33  ;;  %v4116_v13 = vld [vmem:[%s6022_s18 + $0x10] sm:$0xff]  ;;  %s5171_s18 = scalar_lea.vmem %s4206_s30, 32 }
0x1307   :  { %p5172_p5 = scmp.ne.s32.totalorder %s4206_s30, %s5171_s18  ;;  %p5177_p7 = scmp.lt.s32.totalorder %s5171_s18, %s5171_s18 }
0x1308   :  { %v3871_v51 = vmul.f32 0.7978846, %v3869_v49  ;;  %v3868_v52 = vadd.f32 %v3866_v50, %v3852_v33  ;;  %v4323_v33 = vld [vmem:[#allocation23] ss:$0 sm:$0xff]  ;;  %v4325_v49 = vld [vmem:[#allocation25] ss:$0 sm:$0xff] }
0x1309   :  { %p5178_p8 = por %p5177_p7, %p5176_p6 }
0x130a   :  { %4861 = vtanh.f32 %v3871_v51  ;;  %v3870_v53 = vmul.f32 0.7978846, %v3868_v52 }
0x130b   :  { %p5179_p9 = pnand %p5178_p8, %p5172_p5 }
0x130c   :  { %4863 = vtanh.f32 %v3870_v53 }
0x1317   :  { %v4862_v54 = vpop.eup %4861 }
0x1318   :  { %v3875_v56 = vadd.f32 1.0, %v4862_v54 }
0x1319   :  { %v4864_v55 = vpop.eup %4863 }
0x131a   :  { %v3874_v59 = vadd.f32 1.0, %v4864_v55  ;;  %v3877_v62 = vmul.f32 %v3875_v56, %v3861_v60 }
0x131c   :  { %v3876_v61 = vmul.f32 %v3874_v59, %v3860_v57 }
0x131e   :  { %4718 = vmatprep.mubr.msk.f32.mxu0 %vm2038_vm5, %v3876_v61 }
0x131f   :  { %4719 = vmatmul.mubr.msk.f32.vlgmr.msra.gmra.mxu0 %vm2038_vm5, %v3877_v62 }
0x13df   :  { %v4720_v63 = vpop.f32.mrf.mxu0 }
0x13e0   :  { %v3973_v58 = vadd.f32 %v4720_v63, %v4318_v14 }
0x13e1   :  { %v3967_v0 = vpop.f32.mrf.mxu0 }
0x13e2   :  { %v3977_v1 = vadd.f32 %v3973_v58, %v3765_v39  ;;  %v3968_v2 = vadd.f32 %v4318_v14, %v3967_v0 }
0x13e4   :  { %v3976_v3 = vadd.f32 %v3968_v2, %v5940_v27  ;;  %v3985_v4 = vsel %vm263_vm0, %v3977_v1, 0.0 }
0x13e5   :  { %3986 = vadd.xlane.f32.xlu0 %v3985_v4 }
0x13e6   :  { %v3982_v5 = vsel %vm263_vm0, %v3976_v3, 0.0 }
0x13e7   :  { %3983 = vadd.xlane.f32.xlu1 %v3982_v5 }
0x146e   :  { %v3987_v6 = vpop.xlane.xlu0 %3986 }
0x146f   :  { %v3989_v38 = vmul.f32 0.03125, %v3987_v6 }
0x1470   :  { %v3984_v9 = vpop.xlane.xlu1 %3983 }
0x1471   :  { %v3991_v8 = vsub.f32 %v3977_v1, %v3989_v38  ;;  %v3988_v7 = vmul.f32 0.03125, %v3984_v9 }
0x1473   :  { %v3990_v10 = vsub.f32 %v3976_v3, %v3988_v7  ;;  %v3993_v11 = vmul.f32 %v3991_v8, %v3991_v8 }
0x1475   :  { %v3997_v12 = vsel %vm263_vm0, %v3993_v11, 0.0  ;;  %v3992_v16 = vmul.f32 %v3990_v10, %v3990_v10 }
0x1476   :  { %3998 = vadd.xlane.f32.xlu0 %v3997_v12 }
0x1477   :  { %v3994_v17 = vsel %vm263_vm0, %v3992_v16, 0.0 }
0x1478   :  { %3995 = vadd.xlane.f32.xlu1 %v3994_v17 }
0x14ff   :  { %v3999_v21 = vpop.xlane.xlu0 %3998 }
0x1500   :  { %v4001_v22 = vmul.f32 0.03125, %v3999_v21 }
0x1501   :  { %v3996_v23 = vpop.xlane.xlu1 %3995 }
0x1502   :  { %v4003_v24 = vadd.f32 1e-12, %v4001_v22  ;;  %v4000_v25 = vmul.f32 0.03125, %v3996_v23 }
0x1504   :  { %4865 = vrsqrt.f32 %v4003_v24  ;;  %v4002_v26 = vadd.f32 1e-12, %v4000_v25 }
0x1506   :  { %4867 = vrsqrt.f32 %v4002_v26 }
0x1511   :  { %v4866_v27 = vpop.eup %4865 }
0x1512   :  { %v4007_v39 = vmul.f32 %v4866_v27, %v3991_v8 }
0x1513   :  { %v4868_v29 = vpop.eup %4867 }
0x1514   :  { %v4006_v32 = vmul.f32 %v4868_v29, %v3990_v10  ;;  %v4015_v35 = vmul.f32 %v4321_v28, %v4007_v39 }
0x1516   :  { %v4014_v36 = vmul.f32 %v4321_v28, %v4006_v32  ;;  %v4023_v37 = vadd.f32 %v4322_v30, %v4015_v35 }
0x1518   :  { %v4022_v40 = vadd.f32 %v4322_v30, %v4014_v36  ;;  %v4025_v41 = vrot.slane %v4023_v37, 7 }
0x151a   :  { %v4028_v42 = vsel %vm4027_vm6, %v4022_v40, %v4025_v41 }
0x151b   :  { %4730 = vmatmul.mubr.msk.f32.vlgmr.msra.gmra.mxu1 %vm263_vm0, %v4028_v42 }
0x151c   :  { %4740 = vmatprep.mubr.msk.f32.mxu1 %vm5229_vm1, %v5228_v34  ;;  %4733 = vmatpush3.msra.mxu1 %v4117_v43 }
0x151d   :  { %4734 = vmatprep.subr.mxu1 %v5228_v34 }
0x151e   :  { %4735 = vmatpush3.msra.mxu1 %v4116_v13 }
0x151f   :  { %4736 = vmatprep.subr.mxu1 %v5228_v34 }
0x1520   :  { %4737 = vmatpush3.msra.mxu1 %v4115_v44 }
0x1521   :  { %4738 = vmatprep.subr.mxu1 %v5228_v34 }
0x1522   :  { %4739 = vmatpush3.msra.mxu1 %v4114_v45 }
0x15db   :  { %v4109_v31 = vpop.f32.mrf.mxu1 }
0x15dc   :  { %v4110_v46 = vadd.f32 %v4323_v33, %v4109_v31 }
0x15dd   :  { %v4731_v47 = vpop.f32.mrf.mxu1 }
0x15de   :  { %4869 = vtanh.f32 %v4110_v46 }
0x15eb   :  { %v4870_v48 = vpop.eup %4869 }
0x15ec   :  { %4741 = vmatmul.mubr.msk.f32.vlgmr.msra.gmra.mxu1 %vm263_vm0, %v4870_v48 }
0x16ac   :  { %v4194_v50 = vpop.f32.mrf.mxu1 }
0x16ad   :  { %v4195_v51 = vadd.f32 %v4325_v49, %v4194_v50 }
0x16ae   :  { %v4742_v52 = vpop.f32.mrf.mxu1 }
0x16af   :  { %4198 = vst [vmem:[#allocation26] sm:$0x3] %v4195_v51 }
0x16b0   :  { %5182 = shalt.err (!%p5179_p9)
}
0x16b1   :  { %4208 = dma.vmem_to_hbm [thread:$0]  %s4206_s30, 32, %s6024_s20, [#allocation4]  }
0x16b2   :  { %5207 = dma.done.wait [#allocation4], 32  }
0x16b3   :  { %5208 = vsyncadd [#allocation4], 4294967264 }
0x16b4   :  { %4212 = vsyncpa [#allocation3], 1 }
0x16b5   :  { %4213 = vsyncpa [#allocation6], 1 }
0x16b6   :  { %4214 = vsyncpa [#allocation9], 1 }
0x16b7   :  { %4215 = vsyncpa [#allocation12], 1 }
0x16b8   :  { %4216 = vsyncpa [#allocation15], 1 }
0x16b9   :  { %4217 = vsyncpa [#allocation18], 1 }
0x16ba   :  { %4218 = vsyncpa [#allocation21], 1 }
0x16bb   :  { %4219 = vsyncpa [#allocation24], 1 }
0x16bc   :  { %4220 = vsyncpa [#allocation4], 1 }

</bundles_post_ra>
